<compile_context>
chip_gen: v7x
topology: tpu7x:2x2x1
jax: 0.10.0
libtpu: 0.0.40
codegen_flags: <defaults>
</compile_context>

<pallas_src>
import functools

import numpy as np
import jax
import jax.numpy as jnp
from jax.experimental import pallas as pl
from jax.experimental.pallas import tpu as pltpu


def _round_up(x, m):
    return ((x + m - 1) // m) * m


# ----------------------------------------------------------------------------
# In-kernel building blocks (trace-time helpers operating on Refs)
# ----------------------------------------------------------------------------
def _conv3x3_relu(src, stk, w_ref, b_ref, dst, *, cin, grid_w, n_cols):
    """3x3 VALID conv + bias + ReLU on the flattened 'wide grid' layout.

    src:   (cin, >= n_cols + 2*grid_w + 2) bf16, col = n*slab + y*grid_w + x
    stk:   (>= 9*cin, >= n_cols)           bf16 tap-stacked RHS scratch
    w_ref: (cout, 9*cin)                   bf16, col = t*cin + ci, t = dy*3+dx
    b_ref: (cout, 1)                       f32
    dst:   (cout, >= n_cols)               bf16; cols [0, n_cols) written.
    """
    # Stack the 9 lane-shifted tap copies once -> K = 9*cin contraction dim,
    # then a single MXU dot (accumulation happens inside the MXU).
    for t in range(9):
        dy, dx = divmod(t, 3)
        shift = dy * grid_w + dx
        stk[t * cin:(t + 1) * cin, 0:n_cols] = src[:, shift:shift + n_cols]
    acc = jnp.dot(w_ref[...], stk[0:9 * cin, 0:n_cols],
                  preferred_element_type=jnp.float32)
    dst[:, 0:n_cols] = jnp.maximum(acc + b_ref[...], 0.0).astype(dst.dtype)


def _maxpool2x2(src, pmat_ref, dst, *, nb, grid_w, s_in, s_out):
    """MaxPool2d(2): vertical+horizontal lane-shifted maxima, then one bf16
    0/1 compaction matmul and one lane-dense 128-aligned store per image.
    (max is exact in bf16 since the values are already bf16-rounded)."""
    for n in range(nb):
        b = n * s_in
        m = jnp.maximum(
            jnp.maximum(src[:, b:b + s_in], src[:, b + 1:b + 1 + s_in]),
            jnp.maximum(src[:, b + grid_w:b + grid_w + s_in],
                        src[:, b + grid_w + 1:b + grid_w + 1 + s_in]))
        pooled = jnp.dot(m, pmat_ref[...], preferred_element_type=jnp.float32)
        dst[:, n * s_out:(n + 1) * s_out] = pooled.astype(dst.dtype)


def _cnn_kernel(x_ref, w1_ref, b1_ref, w2_ref, b2_ref, w3_ref, b3_ref,
                w4_ref, b4_ref, pm1_ref, pm2_ref, wl_ref, bl_ref,
                out_ref,
                stk, a1, a2, p1, a3, a4, p2, cls,
                *, nb, cin_p, hidden, hw):
    hw2, hw3 = hw // 2, hw // 4
    s1 = _round_up(hw * hw, 128)          # per-image slab stride, 28-grid
    s2 = _round_up(hw2 * hw2, 128)        # 14-grid
    s3 = _round_up(hw3 * hw3, 128)        # 7-grid
    n1, n2 = nb * s1, nb * s2

    # Zero ONLY the 128-lane trailing slack of buffers whose slack is reached
    # by a later tap read / pooling max (keeps everything finite; the bulk of
    # every buffer is defined by the full-width conv/pool stores themselves).
    for ref, w in ((a1, n1), (a2, n1), (p1, n2), (a3, n2), (a4, n2)):
        ref[:, w:w + 128] = jnp.zeros((hidden, 128), dtype=ref.dtype)

    # block_1: conv -> relu -> conv -> relu -> maxpool2
    _conv3x3_relu(x_ref, stk, w1_ref, b1_ref, a1,
                  cin=cin_p, grid_w=hw, n_cols=n1)
    _conv3x3_relu(a1, stk, w2_ref, b2_ref, a2,
                  cin=hidden, grid_w=hw, n_cols=n1)
    _maxpool2x2(a2, pm1_ref, p1, nb=nb, grid_w=hw, s_in=s1, s_out=s2)

    # block_2: conv -> relu -> conv -> relu -> maxpool2
    _conv3x3_relu(p1, stk, w3_ref, b3_ref, a3,
                  cin=hidden, grid_w=hw2, n_cols=n2)
    _conv3x3_relu(a3, stk, w4_ref, b4_ref, a4,
                  cin=hidden, grid_w=hw2, n_cols=n2)
    _maxpool2x2(a4, pm2_ref, p2, nb=nb, grid_w=hw2, s_in=s2, s_out=s3)

    # classifier: Flatten + Linear == single (out_dim, 16*hidden) @ (16*hidden, nb)
    # dot; the 16 taps x hidden channels per image are gathered into a small
    # bf16 RHS (PyTorch's (C,4,4) flatten order is folded into wl at pack time).
    for t in range(16):
        y, x = divmod(t, 4)
        off = y * hw3 + x
        for n in range(nb):
            col = n * s3 + off
            cls[t * hidden:(t + 1) * hidden, n:n + 1] = p2[:, col:col + 1]
    logits = jnp.dot(wl_ref[...], cls[...],
                     preferred_element_type=jnp.float32) + bl_ref[...]
    out_ref[0, :, :] = logits


# ----------------------------------------------------------------------------
# Host-side parameter packing (run once at init time)
# ----------------------------------------------------------------------------
def pack_params(params, *, input_hw=28):
    hidden = params["w1"].shape[0]
    cin = params["w1"].shape[1]
    out_dim = params["wl"].shape[0]
    cin_p = _round_up(cin, 8)             # pad conv1 input channels to 8
    hw, hw2 = input_hw, input_hw // 2
    s1 = _round_up(hw * hw, 128)
    s2 = _round_up(hw2 * hw2, 128)
    s3 = _round_up((input_hw // 4) ** 2, 128)

    def conv_w(w, ci_pad):  # (O,I,3,3) OIHW -> (O, 9*ci_pad), col = t*ci_pad + ci
        o, i = w.shape[0], w.shape[1]
        w = jnp.transpose(w, (0, 2, 3, 1))                       # (O, dy, dx, I)
        w = jnp.pad(w, ((0, 0), (0, 0), (0, 0), (0, ci_pad - i)))
        return w.reshape(o, 9 * ci_pad).astype(jnp.bfloat16)

    def vec(b):
        return jnp.asarray(b, jnp.float32).reshape(-1, 1)

    def pool_matrix(win, sin, sout):      # 0/1 compaction (exact in bf16)
        wout = win // 2
        m = np.zeros((sin, sout), np.float32)
        for yo in range(wout):
            for xo in range(wout):
                m[2 * yo * win + 2 * xo, yo * wout + xo] = 1.0
        return jnp.asarray(m, jnp.bfloat16)

    # PyTorch flattens the pooled (hidden,4,4) map as c*16 + y*4 + x; fold that
    # into the classifier weight: col = (y*4+x)*hidden + c.
    wl = params["wl"].reshape(out_dim, hidden, 4, 4)
    wl = jnp.transpose(wl, (0, 2, 3, 1)).reshape(out_dim, 16 * hidden)

    return {
        "w1": conv_w(params["w1"], cin_p), "b1": vec(params["b1"]),
        "w2": conv_w(params["w2"], hidden), "b2": vec(params["b2"]),
        "w3": conv_w(params["w3"], hidden), "b3": vec(params["b3"]),
        "w4": conv_w(params["w4"], hidden), "b4": vec(params["b4"]),
        "pm1": pool_matrix(hw, s1, s2),
        "pm2": pool_matrix(hw2, s2, s3),
        "wl": wl.astype(jnp.bfloat16), "bl": vec(params["bl"]),
    }


# ----------------------------------------------------------------------------
# Host-side wrapper
# ----------------------------------------------------------------------------
def cnn_forward(packed, x_nchw, *, nb=2):
    N, cin, H, W = x_nchw.shape
    assert H == W and ((H - 4) // 2 - 4) // 2 == 4, "classifier expects 28x28 input"
    assert N % nb == 0, "batch must be divisible by the batch-tile size"
    T = N // nb
    hidden = packed["b1"].shape[0]
    out_dim = packed["bl"].shape[0]
    cin_p = packed["w1"].shape[1] // 9

    hw, hw2, hw3 = H, H // 2, H // 4
    s1 = _round_up(hw * hw, 128)
    s2 = _round_up(hw2 * hw2, 128)
    s3 = _round_up(hw3 * hw3, 128)
    L1 = nb * s1 + 128                     # per-tile input width (+ tap slack)

    # Channel-major bf16 input: per-image slabs padded to s1 lanes, per-tile
    # slabs of L1 lanes (zero padding keeps garbage conv-tap reads finite).
    xr = x_nchw.astype(jnp.float32).reshape(T, nb, cin, hw * hw)
    xr = jnp.transpose(xr, (0, 2, 1, 3))                          # (T, cin, nb, H*W)
    xr = jnp.pad(xr, ((0, 0), (0, cin_p - cin), (0, 0), (0, s1 - hw * hw)))
    xr = xr.reshape(T, cin_p, nb * s1)
    xr = jnp.pad(xr, ((0, 0), (0, 0), (0, L1 - nb * s1)))
    xr = jnp.transpose(xr, (1, 0, 2)).reshape(cin_p, T * L1).astype(jnp.bfloat16)

    weights = [packed[k] for k in
               ("w1", "b1", "w2", "b2", "w3", "b3", "w4", "b4",
                "pm1", "pm2", "wl", "bl")]

    kernel = functools.partial(_cnn_kernel, nb=nb, cin_p=cin_p,
                               hidden=hidden, hw=hw)
    out = pl.pallas_call(
        kernel,
        grid=(T,),
        out_shape=jax.ShapeDtypeStruct((T, out_dim, nb), jnp.float32),
        in_specs=[pl.BlockSpec((cin_p, L1), lambda b: (0, b))]
                 + [pl.BlockSpec(a.shape, lambda b: (0, 0)) for a in weights],
        out_specs=pl.BlockSpec((1, out_dim, nb), lambda b: (b, 0, 0)),
        scratch_shapes=[
            pltpu.VMEM((9 * max(cin_p, hidden), nb * s1), jnp.bfloat16),  # taps
            pltpu.VMEM((hidden, nb * s1 + 128), jnp.bfloat16),            # conv1
            pltpu.VMEM((hidden, nb * s1 + 128), jnp.bfloat16),            # conv2
            pltpu.VMEM((hidden, nb * s2 + 128), jnp.bfloat16),            # pool1
            pltpu.VMEM((hidden, nb * s2 + 128), jnp.bfloat16),            # conv3
            pltpu.VMEM((hidden, nb * s2 + 128), jnp.bfloat16),            # conv4
            pltpu.VMEM((hidden, nb * s3), jnp.bfloat16),                  # pool2
            pltpu.VMEM((16 * hidden, nb), jnp.bfloat16),                  # cls RHS
        ],
        compiler_params=pltpu.CompilerParams(
            dimension_semantics=("parallel",),
            vmem_limit_bytes=32 * 1024 * 1024),
    )(xr, *weights)

    return jnp.transpose(out, (0, 2, 1)).reshape(N, out_dim)


# ----------------------------------------------------------------------------
# Parameters + pure-JAX reference (mirrors the PyTorch module exactly)
# ----------------------------------------------------------------------------
def init_params(key, in_ch, hidden, out_dim):
    ks = jax.random.split(key, 10)
    s = 0.1
    return {
        "w1": jax.random.normal(ks[0], (hidden, in_ch, 3, 3), jnp.float32) * s,
        "b1": jax.random.normal(ks[1], (hidden,), jnp.float32) * s,
        "w2": jax.random.normal(ks[2], (hidden, hidden, 3, 3), jnp.float32) * s,
        "b2": jax.random.normal(ks[3], (hidden,), jnp.float32) * s,
        "w3": jax.random.normal(ks[4], (hidden, hidden, 3, 3), jnp.float32) * s,
        "b3": jax.random.normal(ks[5], (hidden,), jnp.float32) * s,
        "w4": jax.random.normal(ks[6], (hidden, hidden, 3, 3), jnp.float32) * s,
        "b4": jax.random.normal(ks[7], (hidden,), jnp.float32) * s,
        "wl": jax.random.normal(ks[8], (out_dim, hidden * 4 * 4), jnp.float32) * s,
        "bl": jax.random.normal(ks[9], (out_dim,), jnp.float32) * s,
    }


def reference_forward(params, x):
    def conv(x, w, b):
        y = jax.lax.conv_general_dilated(
            x, w, window_strides=(1, 1), padding="VALID",
            dimension_numbers=("NCHW", "OIHW", "NCHW"))
        return jax.nn.relu(y + b[None, :, None, None])

    def pool(x):
        return jax.lax.reduce_window(x, -jnp.inf, jax.lax.max,
                                     (1, 1, 2, 2), (1, 1, 2, 2), "VALID")

    x = pool(conv(conv(x, params["w1"], params["b1"]), params["w2"], params["b2"]))
    x = pool(conv(conv(x, params["w3"], params["b3"]), params["w4"], params["b4"]))
    x = x.reshape(x.shape[0], -1)
    return x @ params["wl"].T + params["bl"]


if __name__ == "__main__":
    batch, in_ch, H, W = 4, 3, 28, 28      # 28x28 -> 4x4 after the two blocks
    hidden, out_dim = 8, 10
    nb = 2                                 # images per grid step -> grid=(2,)

    key = jax.random.PRNGKey(0)
    kp, kx = jax.random.split(key)
    params = init_params(kp, in_ch, hidden, out_dim)
    x = jax.random.normal(kx, (batch, in_ch, H, W), jnp.float32)   # NCHW

    packed = pack_params(params, input_hw=H)          # layout folding, once
    fwd = jax.jit(functools.partial(cnn_forward, nb=nb))
    logits = fwd(packed, x)
    jax.block_until_ready(logits)
    assert logits.shape == (batch, out_dim), logits.shape

    ref = reference_forward(params, x)
    err = float(jnp.max(jnp.abs(logits - ref)))
    assert err < 5e-2, f"kernel/reference mismatch: max|diff|={err}"
    print("KERNEL_OK")
</pallas_src>

<mosaic_0001>
module attributes {stable_mosaic.version = 11 : i64} {
  func.func @_cnn_kernel(%arg0: i32, %arg1: memref<8x1920xbf16, #tpu.memory_space<vmem>>, %arg2: memref<8x72xbf16, #tpu.memory_space<vmem>>, %arg3: memref<8x1xf32, #tpu.memory_space<vmem>>, %arg4: memref<8x72xbf16, #tpu.memory_space<vmem>>, %arg5: memref<8x1xf32, #tpu.memory_space<vmem>>, %arg6: memref<8x72xbf16, #tpu.memory_space<vmem>>, %arg7: memref<8x1xf32, #tpu.memory_space<vmem>>, %arg8: memref<8x72xbf16, #tpu.memory_space<vmem>>, %arg9: memref<8x1xf32, #tpu.memory_space<vmem>>, %arg10: memref<896x256xbf16, #tpu.memory_space<vmem>>, %arg11: memref<256x128xbf16, #tpu.memory_space<vmem>>, %arg12: memref<10x128xbf16, #tpu.memory_space<vmem>>, %arg13: memref<10x1xf32, #tpu.memory_space<vmem>>, %arg14: memref<1x10x2xf32, #tpu.memory_space<vmem>>, %arg15: memref<72x1792xbf16, #tpu.memory_space<vmem>>, %arg16: memref<8x1920xbf16, #tpu.memory_space<vmem>>, %arg17: memref<8x1920xbf16, #tpu.memory_space<vmem>>, %arg18: memref<8x640xbf16, #tpu.memory_space<vmem>>, %arg19: memref<8x640xbf16, #tpu.memory_space<vmem>>, %arg20: memref<8x640xbf16, #tpu.memory_space<vmem>>, %arg21: memref<8x256xbf16, #tpu.memory_space<vmem>>, %arg22: memref<128x2xbf16, #tpu.memory_space<vmem>>) attributes {dimension_semantics = [#tpu.dimension_semantics<parallel>], iteration_bounds = array<i64: 2>, scalar_prefetch = 0 : i64, scratch_operands = 8 : i64, tpu.core_type = #tpu.core_type<tc>, window_params = [{transform_indices = @transform_0, window_bounds = array<i64: 8, 1920>}, {pipeline_mode = #tpu.pipeline_mode<synchronous>, transform_indices = @transform_1, window_bounds = array<i64: 8, 72>}, {pipeline_mode = #tpu.pipeline_mode<synchronous>, transform_indices = @transform_2, window_bounds = array<i64: 8, 1>}, {pipeline_mode = #tpu.pipeline_mode<synchronous>, transform_indices = @transform_3, window_bounds = array<i64: 8, 72>}, {pipeline_mode = #tpu.pipeline_mode<synchronous>, transform_indices = @transform_4, window_bounds = array<i64: 8, 1>}, {pipeline_mode = #tpu.pipeline_mode<synchronous>, transform_indices = @transform_5, window_bounds = array<i64: 8, 72>}, {pipeline_mode = #tpu.pipeline_mode<synchronous>, transform_indices = @transform_6, window_bounds = array<i64: 8, 1>}, {pipeline_mode = #tpu.pipeline_mode<synchronous>, transform_indices = @transform_7, window_bounds = array<i64: 8, 72>}, {pipeline_mode = #tpu.pipeline_mode<synchronous>, transform_indices = @transform_8, window_bounds = array<i64: 8, 1>}, {pipeline_mode = #tpu.pipeline_mode<synchronous>, transform_indices = @transform_9, window_bounds = array<i64: 896, 256>}, {pipeline_mode = #tpu.pipeline_mode<synchronous>, transform_indices = @transform_10, window_bounds = array<i64: 256, 128>}, {pipeline_mode = #tpu.pipeline_mode<synchronous>, transform_indices = @transform_11, window_bounds = array<i64: 10, 128>}, {pipeline_mode = #tpu.pipeline_mode<synchronous>, transform_indices = @transform_12, window_bounds = array<i64: 10, 1>}, {transform_indices = @transform_13, window_bounds = array<i64: 1, 10, 2>}]} {
    %cst = arith.constant 0.000000e+00 : bf16
    %0 = vector.broadcast %cst : bf16 to vector<8x128xbf16>
    %c0 = arith.constant 0 : index
    %c1792 = arith.constant 1792 : index
    %1 = vector.load %arg16[%c0, %c1792] : memref<8x1920xbf16, #tpu.memory_space<vmem>>, vector<8x128xbf16>
    tpu.vector_store %arg16[%c0, %c1792], %0 {strides = array<i32>} : memref<8x1920xbf16, #tpu.memory_space<vmem>>, vector<8x128xbf16>,
    %cst_0 = arith.constant 0.000000e+00 : bf16
    %2 = vector.broadcast %cst_0 : bf16 to vector<8x128xbf16>
    %c0_1 = arith.constant 0 : index
    %c1792_2 = arith.constant 1792 : index
    %3 = vector.load %arg17[%c0_1, %c1792_2] : memref<8x1920xbf16, #tpu.memory_space<vmem>>, vector<8x128xbf16>
    tpu.vector_store %arg17[%c0_1, %c1792_2], %2 {strides = array<i32>} : memref<8x1920xbf16, #tpu.memory_space<vmem>>, vector<8x128xbf16>,
    %cst_3 = arith.constant 0.000000e+00 : bf16
    %4 = vector.broadcast %cst_3 : bf16 to vector<8x128xbf16>
    %c0_4 = arith.constant 0 : index
    %c512 = arith.constant 512 : index
    %5 = vector.load %arg18[%c0_4, %c512] : memref<8x640xbf16, #tpu.memory_space<vmem>>, vector<8x128xbf16>
    tpu.vector_store %arg18[%c0_4, %c512], %4 {strides = array<i32>} : memref<8x640xbf16, #tpu.memory_space<vmem>>, vector<8x128xbf16>,
    %cst_5 = arith.constant 0.000000e+00 : bf16
    %6 = vector.broadcast %cst_5 : bf16 to vector<8x128xbf16>
    %c0_6 = arith.constant 0 : index
    %c512_7 = arith.constant 512 : index
    %7 = vector.load %arg19[%c0_6, %c512_7] : memref<8x640xbf16, #tpu.memory_space<vmem>>, vector<8x128xbf16>
    tpu.vector_store %arg19[%c0_6, %c512_7], %6 {strides = array<i32>} : memref<8x640xbf16, #tpu.memory_space<vmem>>, vector<8x128xbf16>,
    %cst_8 = arith.constant 0.000000e+00 : bf16
    %8 = vector.broadcast %cst_8 : bf16 to vector<8x128xbf16>
    %c0_9 = arith.constant 0 : index
    %c512_10 = arith.constant 512 : index
    %9 = vector.load %arg20[%c0_9, %c512_10] : memref<8x640xbf16, #tpu.memory_space<vmem>>, vector<8x128xbf16>
    tpu.vector_store %arg20[%c0_9, %c512_10], %8 {strides = array<i32>} : memref<8x640xbf16, #tpu.memory_space<vmem>>, vector<8x128xbf16>,
    %c0_11 = arith.constant 0 : index
    %c0_12 = arith.constant 0 : index
    %10 = vector.load %arg1[%c0_11, %c0_12] : memref<8x1920xbf16, #tpu.memory_space<vmem>>, vector<8x1792xbf16>
    %c0_13 = arith.constant 0 : index
    %c0_14 = arith.constant 0 : index
    %11 = vector.load %arg15[%c0_13, %c0_14] : memref<72x1792xbf16, #tpu.memory_space<vmem>>, vector<8x1792xbf16>
    tpu.vector_store %arg15[%c0_13, %c0_14], %10 {strides = array<i32>} : memref<72x1792xbf16, #tpu.memory_space<vmem>>, vector<8x1792xbf16>,
    %c0_15 = arith.constant 0 : index
    %c1 = arith.constant 1 : index
    %12 = vector.load %arg1[%c0_15, %c1] : memref<8x1920xbf16, #tpu.memory_space<vmem>>, vector<8x1792xbf16>
    %c8 = arith.constant 8 : index
    %c0_16 = arith.constant 0 : index
    %13 = vector.load %arg15[%c8, %c0_16] : memref<72x1792xbf16, #tpu.memory_space<vmem>>, vector<8x1792xbf16>
    tpu.vector_store %arg15[%c8, %c0_16], %12 {strides = array<i32>} : memref<72x1792xbf16, #tpu.memory_space<vmem>>, vector<8x1792xbf16>,
    %c0_17 = arith.constant 0 : index
    %c2 = arith.constant 2 : index
    %14 = vector.load %arg1[%c0_17, %c2] : memref<8x1920xbf16, #tpu.memory_space<vmem>>, vector<8x1792xbf16>
    %c16 = arith.constant 16 : index
    %c0_18 = arith.constant 0 : index
    %15 = vector.load %arg15[%c16, %c0_18] : memref<72x1792xbf16, #tpu.memory_space<vmem>>, vector<8x1792xbf16>
    tpu.vector_store %arg15[%c16, %c0_18], %14 {strides = array<i32>} : memref<72x1792xbf16, #tpu.memory_space<vmem>>, vector<8x1792xbf16>,
    %c0_19 = arith.constant 0 : index
    %c28 = arith.constant 28 : index
    %16 = vector.load %arg1[%c0_19, %c28] : memref<8x1920xbf16, #tpu.memory_space<vmem>>, vector<8x1792xbf16>
    %c24 = arith.constant 24 : index
    %c0_20 = arith.constant 0 : index
    %17 = vector.load %arg15[%c24, %c0_20] : memref<72x1792xbf16, #tpu.memory_space<vmem>>, vector<8x1792xbf16>
    tpu.vector_store %arg15[%c24, %c0_20], %16 {strides = array<i32>} : memref<72x1792xbf16, #tpu.memory_space<vmem>>, vector<8x1792xbf16>,
    %c0_21 = arith.constant 0 : index
    %c29 = arith.constant 29 : index
    %18 = vector.load %arg1[%c0_21, %c29] : memref<8x1920xbf16, #tpu.memory_space<vmem>>, vector<8x1792xbf16>
    %c32 = arith.constant 32 : index
    %c0_22 = arith.constant 0 : index
    %19 = vector.load %arg15[%c32, %c0_22] : memref<72x1792xbf16, #tpu.memory_space<vmem>>, vector<8x1792xbf16>
    tpu.vector_store %arg15[%c32, %c0_22], %18 {strides = array<i32>} : memref<72x1792xbf16, #tpu.memory_space<vmem>>, vector<8x1792xbf16>,
    %c0_23 = arith.constant 0 : index
    %c30 = arith.constant 30 : index
    %20 = vector.load %arg1[%c0_23, %c30] : memref<8x1920xbf16, #tpu.memory_space<vmem>>, vector<8x1792xbf16>
    %c40 = arith.constant 40 : index
    %c0_24 = arith.constant 0 : index
    %21 = vector.load %arg15[%c40, %c0_24] : memref<72x1792xbf16, #tpu.memory_space<vmem>>, vector<8x1792xbf16>
    tpu.vector_store %arg15[%c40, %c0_24], %20 {strides = array<i32>} : memref<72x1792xbf16, #tpu.memory_space<vmem>>, vector<8x1792xbf16>,
    %c0_25 = arith.constant 0 : index
    %c56 = arith.constant 56 : index
    %22 = vector.load %arg1[%c0_25, %c56] : memref<8x1920xbf16, #tpu.memory_space<vmem>>, vector<8x1792xbf16>
    %c48 = arith.constant 48 : index
    %c0_26 = arith.constant 0 : index
    %23 = vector.load %arg15[%c48, %c0_26] : memref<72x1792xbf16, #tpu.memory_space<vmem>>, vector<8x1792xbf16>
    tpu.vector_store %arg15[%c48, %c0_26], %22 {strides = array<i32>} : memref<72x1792xbf16, #tpu.memory_space<vmem>>, vector<8x1792xbf16>,
    %c0_27 = arith.constant 0 : index
    %c57 = arith.constant 57 : index
    %24 = vector.load %arg1[%c0_27, %c57] : memref<8x1920xbf16, #tpu.memory_space<vmem>>, vector<8x1792xbf16>
    %c56_28 = arith.constant 56 : index
    %c0_29 = arith.constant 0 : index
    %25 = vector.load %arg15[%c56_28, %c0_29] : memref<72x1792xbf16, #tpu.memory_space<vmem>>, vector<8x1792xbf16>
    tpu.vector_store %arg15[%c56_28, %c0_29], %24 {strides = array<i32>} : memref<72x1792xbf16, #tpu.memory_space<vmem>>, vector<8x1792xbf16>,
    %c0_30 = arith.constant 0 : index
    %c58 = arith.constant 58 : index
    %26 = vector.load %arg1[%c0_30, %c58] : memref<8x1920xbf16, #tpu.memory_space<vmem>>, vector<8x1792xbf16>
    %c64 = arith.constant 64 : index
    %c0_31 = arith.constant 0 : index
    %27 = vector.load %arg15[%c64, %c0_31] : memref<72x1792xbf16, #tpu.memory_space<vmem>>, vector<8x1792xbf16>
    tpu.vector_store %arg15[%c64, %c0_31], %26 {strides = array<i32>} : memref<72x1792xbf16, #tpu.memory_space<vmem>>, vector<8x1792xbf16>,
    %c0_32 = arith.constant 0 : index
    %c0_33 = arith.constant 0 : index
    %28 = vector.load %arg2[%c0_32, %c0_33] : memref<8x72xbf16, #tpu.memory_space<vmem>>, vector<8x72xbf16>
    %c0_34 = arith.constant 0 : index
    %c0_35 = arith.constant 0 : index
    %29 = vector.load %arg15[%c0_34, %c0_35] : memref<72x1792xbf16, #tpu.memory_space<vmem>>, vector<72x1792xbf16>
    %cst_36 = arith.constant dense<0.000000e+00> : vector<8x1792xf32>
    %30 = tpu.matmul %28, %29, %cst_36 {dimension_numbers = #tpu.dot_dimension_numbers<[1], [0], [0], [1], [0, 0, 1, 1], [], []>} : vector<8x72xbf16>, vector<72x1792xbf16>, vector<8x1792xf32> -> vector<8x1792xf32>
    %c0_37 = arith.constant 0 : index
    %c0_38 = arith.constant 0 : index
    %31 = vector.load %arg3[%c0_37, %c0_38] : memref<8x1xf32, #tpu.memory_space<vmem>>, vector<8x1xf32>
    %32 = vector.broadcast %31 : vector<8x1xf32> to vector<8x1792xf32>
    %33 = arith.addf %30, %32 : vector<8x1792xf32>
    %cst_39 = arith.constant 0.000000e+00 : f32
    %34 = vector.broadcast %cst_39 : f32 to vector<8x1792xf32>
    %35 = arith.maximumf %33, %34 : vector<8x1792xf32>
    %36 = arith.truncf %35 : vector<8x1792xf32> to vector<8x1792xbf16>
    %c0_40 = arith.constant 0 : index
    %c0_41 = arith.constant 0 : index
    %37 = vector.load %arg16[%c0_40, %c0_41] : memref<8x1920xbf16, #tpu.memory_space<vmem>>, vector<8x1792xbf16>
    tpu.vector_store %arg16[%c0_40, %c0_41], %36 {strides = array<i32>} : memref<8x1920xbf16, #tpu.memory_space<vmem>>, vector<8x1792xbf16>,
    %c0_42 = arith.constant 0 : index
    %c0_43 = arith.constant 0 : index
    %38 = vector.load %arg16[%c0_42, %c0_43] : memref<8x1920xbf16, #tpu.memory_space<vmem>>, vector<8x1792xbf16>
    %c0_44 = arith.constant 0 : index
    %c0_45 = arith.constant 0 : index
    %39 = vector.load %arg15[%c0_44, %c0_45] : memref<72x1792xbf16, #tpu.memory_space<vmem>>, vector<8x1792xbf16>
    tpu.vector_store %arg15[%c0_44, %c0_45], %38 {strides = array<i32>} : memref<72x1792xbf16, #tpu.memory_space<vmem>>, vector<8x1792xbf16>,
    %c0_46 = arith.constant 0 : index
    %c1_47 = arith.constant 1 : index
    %40 = vector.load %arg16[%c0_46, %c1_47] : memref<8x1920xbf16, #tpu.memory_space<vmem>>, vector<8x1792xbf16>
    %c8_48 = arith.constant 8 : index
    %c0_49 = arith.constant 0 : index
    %41 = vector.load %arg15[%c8_48, %c0_49] : memref<72x1792xbf16, #tpu.memory_space<vmem>>, vector<8x1792xbf16>
    tpu.vector_store %arg15[%c8_48, %c0_49], %40 {strides = array<i32>} : memref<72x1792xbf16, #tpu.memory_space<vmem>>, vector<8x1792xbf16>,
    %c0_50 = arith.constant 0 : index
    %c2_51 = arith.constant 2 : index
    %42 = vector.load %arg16[%c0_50, %c2_51] : memref<8x1920xbf16, #tpu.memory_space<vmem>>, vector<8x1792xbf16>
    %c16_52 = arith.constant 16 : index
    %c0_53 = arith.constant 0 : index
    %43 = vector.load %arg15[%c16_52, %c0_53] : memref<72x1792xbf16, #tpu.memory_space<vmem>>, vector<8x1792xbf16>
    tpu.vector_store %arg15[%c16_52, %c0_53], %42 {strides = array<i32>} : memref<72x1792xbf16, #tpu.memory_space<vmem>>, vector<8x1792xbf16>,
    %c0_54 = arith.constant 0 : index
    %c28_55 = arith.constant 28 : index
    %44 = vector.load %arg16[%c0_54, %c28_55] : memref<8x1920xbf16, #tpu.memory_space<vmem>>, vector<8x1792xbf16>
    %c24_56 = arith.constant 24 : index
    %c0_57 = arith.constant 0 : index
    %45 = vector.load %arg15[%c24_56, %c0_57] : memref<72x1792xbf16, #tpu.memory_space<vmem>>, vector<8x1792xbf16>
    tpu.vector_store %arg15[%c24_56, %c0_57], %44 {strides = array<i32>} : memref<72x1792xbf16, #tpu.memory_space<vmem>>, vector<8x1792xbf16>,
    %c0_58 = arith.constant 0 : index
    %c29_59 = arith.constant 29 : index
    %46 = vector.load %arg16[%c0_58, %c29_59] : memref<8x1920xbf16, #tpu.memory_space<vmem>>, vector<8x1792xbf16>
    %c32_60 = arith.constant 32 : index
    %c0_61 = arith.constant 0 : index
    %47 = vector.load %arg15[%c32_60, %c0_61] : memref<72x1792xbf16, #tpu.memory_space<vmem>>, vector<8x1792xbf16>
    tpu.vector_store %arg15[%c32_60, %c0_61], %46 {strides = array<i32>} : memref<72x1792xbf16, #tpu.memory_space<vmem>>, vector<8x1792xbf16>,
    %c0_62 = arith.constant 0 : index
    %c30_63 = arith.constant 30 : index
    %48 = vector.load %arg16[%c0_62, %c30_63] : memref<8x1920xbf16, #tpu.memory_space<vmem>>, vector<8x1792xbf16>
    %c40_64 = arith.constant 40 : index
    %c0_65 = arith.constant 0 : index
    %49 = vector.load %arg15[%c40_64, %c0_65] : memref<72x1792xbf16, #tpu.memory_space<vmem>>, vector<8x1792xbf16>
    tpu.vector_store %arg15[%c40_64, %c0_65], %48 {strides = array<i32>} : memref<72x1792xbf16, #tpu.memory_space<vmem>>, vector<8x1792xbf16>,
    %c0_66 = arith.constant 0 : index
    %c56_67 = arith.constant 56 : index
    %50 = vector.load %arg16[%c0_66, %c56_67] : memref<8x1920xbf16, #tpu.memory_space<vmem>>, vector<8x1792xbf16>
    %c48_68 = arith.constant 48 : index
    %c0_69 = arith.constant 0 : index
    %51 = vector.load %arg15[%c48_68, %c0_69] : memref<72x1792xbf16, #tpu.memory_space<vmem>>, vector<8x1792xbf16>
    tpu.vector_store %arg15[%c48_68, %c0_69], %50 {strides = array<i32>} : memref<72x1792xbf16, #tpu.memory_space<vmem>>, vector<8x1792xbf16>,
    %c0_70 = arith.constant 0 : index
    %c57_71 = arith.constant 57 : index
    %52 = vector.load %arg16[%c0_70, %c57_71] : memref<8x1920xbf16, #tpu.memory_space<vmem>>, vector<8x1792xbf16>
    %c56_72 = arith.constant 56 : index
    %c0_73 = arith.constant 0 : index
    %53 = vector.load %arg15[%c56_72, %c0_73] : memref<72x1792xbf16, #tpu.memory_space<vmem>>, vector<8x1792xbf16>
    tpu.vector_store %arg15[%c56_72, %c0_73], %52 {strides = array<i32>} : memref<72x1792xbf16, #tpu.memory_space<vmem>>, vector<8x1792xbf16>,
    %c0_74 = arith.constant 0 : index
    %c58_75 = arith.constant 58 : index
    %54 = vector.load %arg16[%c0_74, %c58_75] : memref<8x1920xbf16, #tpu.memory_space<vmem>>, vector<8x1792xbf16>
    %c64_76 = arith.constant 64 : index
    %c0_77 = arith.constant 0 : index
    %55 = vector.load %arg15[%c64_76, %c0_77] : memref<72x1792xbf16, #tpu.memory_space<vmem>>, vector<8x1792xbf16>
    tpu.vector_store %arg15[%c64_76, %c0_77], %54 {strides = array<i32>} : memref<72x1792xbf16, #tpu.memory_space<vmem>>, vector<8x1792xbf16>,
    %c0_78 = arith.constant 0 : index
    %c0_79 = arith.constant 0 : index
    %56 = vector.load %arg4[%c0_78, %c0_79] : memref<8x72xbf16, #tpu.memory_space<vmem>>, vector<8x72xbf16>
    %c0_80 = arith.constant 0 : index
    %c0_81 = arith.constant 0 : index
    %57 = vector.load %arg15[%c0_80, %c0_81] : memref<72x1792xbf16, #tpu.memory_space<vmem>>, vector<72x1792xbf16>
    %cst_82 = arith.constant dense<0.000000e+00> : vector<8x1792xf32>
    %58 = tpu.matmul %56, %57, %cst_82 {dimension_numbers = #tpu.dot_dimension_numbers<[1], [0], [0], [1], [0, 0, 1, 1], [], []>} : vector<8x72xbf16>, vector<72x1792xbf16>, vector<8x1792xf32> -> vector<8x1792xf32>
    %c0_83 = arith.constant 0 : index
    %c0_84 = arith.constant 0 : index
    %59 = vector.load %arg5[%c0_83, %c0_84] : memref<8x1xf32, #tpu.memory_space<vmem>>, vector<8x1xf32>
    %60 = vector.broadcast %59 : vector<8x1xf32> to vector<8x1792xf32>
    %61 = arith.addf %58, %60 : vector<8x1792xf32>
    %cst_85 = arith.constant 0.000000e+00 : f32
    %62 = vector.broadcast %cst_85 : f32 to vector<8x1792xf32>
    %63 = arith.maximumf %61, %62 : vector<8x1792xf32>
    %64 = arith.truncf %63 : vector<8x1792xf32> to vector<8x1792xbf16>
    %c0_86 = arith.constant 0 : index
    %c0_87 = arith.constant 0 : index
    %65 = vector.load %arg17[%c0_86, %c0_87] : memref<8x1920xbf16, #tpu.memory_space<vmem>>, vector<8x1792xbf16>
    tpu.vector_store %arg17[%c0_86, %c0_87], %64 {strides = array<i32>} : memref<8x1920xbf16, #tpu.memory_space<vmem>>, vector<8x1792xbf16>,
    %c0_88 = arith.constant 0 : index
    %c0_89 = arith.constant 0 : index
    %66 = vector.load %arg17[%c0_88, %c0_89] : memref<8x1920xbf16, #tpu.memory_space<vmem>>, vector<8x896xbf16>
    %c0_90 = arith.constant 0 : index
    %c1_91 = arith.constant 1 : index
    %67 = vector.load %arg17[%c0_90, %c1_91] : memref<8x1920xbf16, #tpu.memory_space<vmem>>, vector<8x896xbf16>
    %68 = arith.maximumf %66, %67 : vector<8x896xbf16>
    %c0_92 = arith.constant 0 : index
    %c28_93 = arith.constant 28 : index
    %69 = vector.load %arg17[%c0_92, %c28_93] : memref<8x1920xbf16, #tpu.memory_space<vmem>>, vector<8x896xbf16>
    %c0_94 = arith.constant 0 : index
    %c29_95 = arith.constant 29 : index
    %70 = vector.load %arg17[%c0_94, %c29_95] : memref<8x1920xbf16, #tpu.memory_space<vmem>>, vector<8x896xbf16>
    %71 = arith.maximumf %69, %70 : vector<8x896xbf16>
    %72 = arith.maximumf %68, %71 : vector<8x896xbf16>
    %c0_96 = arith.constant 0 : index
    %c0_97 = arith.constant 0 : index
    %73 = vector.load %arg10[%c0_96, %c0_97] : memref<896x256xbf16, #tpu.memory_space<vmem>>, vector<896x256xbf16>
    %cst_98 = arith.constant dense<0.000000e+00> : vector<8x256xf32>
    %74 = tpu.matmul %72, %73, %cst_98 {dimension_numbers = #tpu.dot_dimension_numbers<[1], [0], [0], [1], [0, 0, 1, 1], [], []>} : vector<8x896xbf16>, vector<896x256xbf16>, vector<8x256xf32> -> vector<8x256xf32>
    %75 = arith.truncf %74 : vector<8x256xf32> to vector<8x256xbf16>
    %c0_99 = arith.constant 0 : index
    %c0_100 = arith.constant 0 : index
    %76 = vector.load %arg18[%c0_99, %c0_100] : memref<8x640xbf16, #tpu.memory_space<vmem>>, vector<8x256xbf16>
    tpu.vector_store %arg18[%c0_99, %c0_100], %75 {strides = array<i32>} : memref<8x640xbf16, #tpu.memory_space<vmem>>, vector<8x256xbf16>,
    %c0_101 = arith.constant 0 : index
    %c896 = arith.constant 896 : index
    %77 = vector.load %arg17[%c0_101, %c896] : memref<8x1920xbf16, #tpu.memory_space<vmem>>, vector<8x896xbf16>
    %c0_102 = arith.constant 0 : index
    %c897 = arith.constant 897 : index
    %78 = vector.load %arg17[%c0_102, %c897] : memref<8x1920xbf16, #tpu.memory_space<vmem>>, vector<8x896xbf16>
    %79 = arith.maximumf %77, %78 : vector<8x896xbf16>
    %c0_103 = arith.constant 0 : index
    %c924 = arith.constant 924 : index
    %80 = vector.load %arg17[%c0_103, %c924] : memref<8x1920xbf16, #tpu.memory_space<vmem>>, vector<8x896xbf16>
    %c0_104 = arith.constant 0 : index
    %c925 = arith.constant 925 : index
    %81 = vector.load %arg17[%c0_104, %c925] : memref<8x1920xbf16, #tpu.memory_space<vmem>>, vector<8x896xbf16>
    %82 = arith.maximumf %80, %81 : vector<8x896xbf16>
    %83 = arith.maximumf %79, %82 : vector<8x896xbf16>
    %c0_105 = arith.constant 0 : index
    %c0_106 = arith.constant 0 : index
    %84 = vector.load %arg10[%c0_105, %c0_106] : memref<896x256xbf16, #tpu.memory_space<vmem>>, vector<896x256xbf16>
    %cst_107 = arith.constant dense<0.000000e+00> : vector<8x256xf32>
    %85 = tpu.matmul %83, %84, %cst_107 {dimension_numbers = #tpu.dot_dimension_numbers<[1], [0], [0], [1], [0, 0, 1, 1], [], []>} : vector<8x896xbf16>, vector<896x256xbf16>, vector<8x256xf32> -> vector<8x256xf32>
    %86 = arith.truncf %85 : vector<8x256xf32> to vector<8x256xbf16>
    %c0_108 = arith.constant 0 : index
    %c256 = arith.constant 256 : index
    %87 = vector.load %arg18[%c0_108, %c256] : memref<8x640xbf16, #tpu.memory_space<vmem>>, vector<8x256xbf16>
    tpu.vector_store %arg18[%c0_108, %c256], %86 {strides = array<i32>} : memref<8x640xbf16, #tpu.memory_space<vmem>>, vector<8x256xbf16>,
    %c0_109 = arith.constant 0 : index
    %c0_110 = arith.constant 0 : index
    %88 = vector.load %arg18[%c0_109, %c0_110] : memref<8x640xbf16, #tpu.memory_space<vmem>>, vector<8x512xbf16>
    %c0_111 = arith.constant 0 : index
    %c0_112 = arith.constant 0 : index
    %89 = vector.load %arg15[%c0_111, %c0_112] : memref<72x1792xbf16, #tpu.memory_space<vmem>>, vector<8x512xbf16>
    tpu.vector_store %arg15[%c0_111, %c0_112], %88 {strides = array<i32>} : memref<72x1792xbf16, #tpu.memory_space<vmem>>, vector<8x512xbf16>,
    %c0_113 = arith.constant 0 : index
    %c1_114 = arith.constant 1 : index
    %90 = vector.load %arg18[%c0_113, %c1_114] : memref<8x640xbf16, #tpu.memory_space<vmem>>, vector<8x512xbf16>
    %c8_115 = arith.constant 8 : index
    %c0_116 = arith.constant 0 : index
    %91 = vector.load %arg15[%c8_115, %c0_116] : memref<72x1792xbf16, #tpu.memory_space<vmem>>, vector<8x512xbf16>
    tpu.vector_store %arg15[%c8_115, %c0_116], %90 {strides = array<i32>} : memref<72x1792xbf16, #tpu.memory_space<vmem>>, vector<8x512xbf16>,
    %c0_117 = arith.constant 0 : index
    %c2_118 = arith.constant 2 : index
    %92 = vector.load %arg18[%c0_117, %c2_118] : memref<8x640xbf16, #tpu.memory_space<vmem>>, vector<8x512xbf16>
    %c16_119 = arith.constant 16 : index
    %c0_120 = arith.constant 0 : index
    %93 = vector.load %arg15[%c16_119, %c0_120] : memref<72x1792xbf16, #tpu.memory_space<vmem>>, vector<8x512xbf16>
    tpu.vector_store %arg15[%c16_119, %c0_120], %92 {strides = array<i32>} : memref<72x1792xbf16, #tpu.memory_space<vmem>>, vector<8x512xbf16>,
    %c0_121 = arith.constant 0 : index
    %c14 = arith.constant 14 : index
    %94 = vector.load %arg18[%c0_121, %c14] : memref<8x640xbf16, #tpu.memory_space<vmem>>, vector<8x512xbf16>
    %c24_122 = arith.constant 24 : index
    %c0_123 = arith.constant 0 : index
    %95 = vector.load %arg15[%c24_122, %c0_123] : memref<72x1792xbf16, #tpu.memory_space<vmem>>, vector<8x512xbf16>
    tpu.vector_store %arg15[%c24_122, %c0_123], %94 {strides = array<i32>} : memref<72x1792xbf16, #tpu.memory_space<vmem>>, vector<8x512xbf16>,
    %c0_124 = arith.constant 0 : index
    %c15 = arith.constant 15 : index
    %96 = vector.load %arg18[%c0_124, %c15] : memref<8x640xbf16, #tpu.memory_space<vmem>>, vector<8x512xbf16>
    %c32_125 = arith.constant 32 : index
    %c0_126 = arith.constant 0 : index
    %97 = vector.load %arg15[%c32_125, %c0_126] : memref<72x1792xbf16, #tpu.memory_space<vmem>>, vector<8x512xbf16>
    tpu.vector_store %arg15[%c32_125, %c0_126], %96 {strides = array<i32>} : memref<72x1792xbf16, #tpu.memory_space<vmem>>, vector<8x512xbf16>,
    %c0_127 = arith.constant 0 : index
    %c16_128 = arith.constant 16 : index
    %98 = vector.load %arg18[%c0_127, %c16_128] : memref<8x640xbf16, #tpu.memory_space<vmem>>, vector<8x512xbf16>
    %c40_129 = arith.constant 40 : index
    %c0_130 = arith.constant 0 : index
    %99 = vector.load %arg15[%c40_129, %c0_130] : memref<72x1792xbf16, #tpu.memory_space<vmem>>, vector<8x512xbf16>
    tpu.vector_store %arg15[%c40_129, %c0_130], %98 {strides = array<i32>} : memref<72x1792xbf16, #tpu.memory_space<vmem>>, vector<8x512xbf16>,
    %c0_131 = arith.constant 0 : index
    %c28_132 = arith.constant 28 : index
    %100 = vector.load %arg18[%c0_131, %c28_132] : memref<8x640xbf16, #tpu.memory_space<vmem>>, vector<8x512xbf16>
    %c48_133 = arith.constant 48 : index
    %c0_134 = arith.constant 0 : index
    %101 = vector.load %arg15[%c48_133, %c0_134] : memref<72x1792xbf16, #tpu.memory_space<vmem>>, vector<8x512xbf16>
    tpu.vector_store %arg15[%c48_133, %c0_134], %100 {strides = array<i32>} : memref<72x1792xbf16, #tpu.memory_space<vmem>>, vector<8x512xbf16>,
    %c0_135 = arith.constant 0 : index
    %c29_136 = arith.constant 29 : index
    %102 = vector.load %arg18[%c0_135, %c29_136] : memref<8x640xbf16, #tpu.memory_space<vmem>>, vector<8x512xbf16>
    %c56_137 = arith.constant 56 : index
    %c0_138 = arith.constant 0 : index
    %103 = vector.load %arg15[%c56_137, %c0_138] : memref<72x1792xbf16, #tpu.memory_space<vmem>>, vector<8x512xbf16>
    tpu.vector_store %arg15[%c56_137, %c0_138], %102 {strides = array<i32>} : memref<72x1792xbf16, #tpu.memory_space<vmem>>, vector<8x512xbf16>,
    %c0_139 = arith.constant 0 : index
    %c30_140 = arith.constant 30 : index
    %104 = vector.load %arg18[%c0_139, %c30_140] : memref<8x640xbf16, #tpu.memory_space<vmem>>, vector<8x512xbf16>
    %c64_141 = arith.constant 64 : index
    %c0_142 = arith.constant 0 : index
    %105 = vector.load %arg15[%c64_141, %c0_142] : memref<72x1792xbf16, #tpu.memory_space<vmem>>, vector<8x512xbf16>
    tpu.vector_store %arg15[%c64_141, %c0_142], %104 {strides = array<i32>} : memref<72x1792xbf16, #tpu.memory_space<vmem>>, vector<8x512xbf16>,
    %c0_143 = arith.constant 0 : index
    %c0_144 = arith.constant 0 : index
    %106 = vector.load %arg6[%c0_143, %c0_144] : memref<8x72xbf16, #tpu.memory_space<vmem>>, vector<8x72xbf16>
    %c0_145 = arith.constant 0 : index
    %c0_146 = arith.constant 0 : index
    %107 = vector.load %arg15[%c0_145, %c0_146] : memref<72x1792xbf16, #tpu.memory_space<vmem>>, vector<72x512xbf16>
    %cst_147 = arith.constant dense<0.000000e+00> : vector<8x512xf32>
    %108 = tpu.matmul %106, %107, %cst_147 {dimension_numbers = #tpu.dot_dimension_numbers<[1], [0], [0], [1], [0, 0, 1, 1], [], []>} : vector<8x72xbf16>, vector<72x512xbf16>, vector<8x512xf32> -> vector<8x512xf32>
    %c0_148 = arith.constant 0 : index
    %c0_149 = arith.constant 0 : index
    %109 = vector.load %arg7[%c0_148, %c0_149] : memref<8x1xf32, #tpu.memory_space<vmem>>, vector<8x1xf32>
    %110 = vector.broadcast %109 : vector<8x1xf32> to vector<8x512xf32>
    %111 = arith.addf %108, %110 : vector<8x512xf32>
    %cst_150 = arith.constant 0.000000e+00 : f32
    %112 = vector.broadcast %cst_150 : f32 to vector<8x512xf32>
    %113 = arith.maximumf %111, %112 : vector<8x512xf32>
    %114 = arith.truncf %113 : vector<8x512xf32> to vector<8x512xbf16>
    %c0_151 = arith.constant 0 : index
    %c0_152 = arith.constant 0 : index
    %115 = vector.load %arg19[%c0_151, %c0_152] : memref<8x640xbf16, #tpu.memory_space<vmem>>, vector<8x512xbf16>
    tpu.vector_store %arg19[%c0_151, %c0_152], %114 {strides = array<i32>} : memref<8x640xbf16, #tpu.memory_space<vmem>>, vector<8x512xbf16>,
    %c0_153 = arith.constant 0 : index
    %c0_154 = arith.constant 0 : index
    %116 = vector.load %arg19[%c0_153, %c0_154] : memref<8x640xbf16, #tpu.memory_space<vmem>>, vector<8x512xbf16>
    %c0_155 = arith.constant 0 : index
    %c0_156 = arith.constant 0 : index
    %117 = vector.load %arg15[%c0_155, %c0_156] : memref<72x1792xbf16, #tpu.memory_space<vmem>>, vector<8x512xbf16>
    tpu.vector_store %arg15[%c0_155, %c0_156], %116 {strides = array<i32>} : memref<72x1792xbf16, #tpu.memory_space<vmem>>, vector<8x512xbf16>,
    %c0_157 = arith.constant 0 : index
    %c1_158 = arith.constant 1 : index
    %118 = vector.load %arg19[%c0_157, %c1_158] : memref<8x640xbf16, #tpu.memory_space<vmem>>, vector<8x512xbf16>
    %c8_159 = arith.constant 8 : index
    %c0_160 = arith.constant 0 : index
    %119 = vector.load %arg15[%c8_159, %c0_160] : memref<72x1792xbf16, #tpu.memory_space<vmem>>, vector<8x512xbf16>
    tpu.vector_store %arg15[%c8_159, %c0_160], %118 {strides = array<i32>} : memref<72x1792xbf16, #tpu.memory_space<vmem>>, vector<8x512xbf16>,
    %c0_161 = arith.constant 0 : index
    %c2_162 = arith.constant 2 : index
    %120 = vector.load %arg19[%c0_161, %c2_162] : memref<8x640xbf16, #tpu.memory_space<vmem>>, vector<8x512xbf16>
    %c16_163 = arith.constant 16 : index
    %c0_164 = arith.constant 0 : index
    %121 = vector.load %arg15[%c16_163, %c0_164] : memref<72x1792xbf16, #tpu.memory_space<vmem>>, vector<8x512xbf16>
    tpu.vector_store %arg15[%c16_163, %c0_164], %120 {strides = array<i32>} : memref<72x1792xbf16, #tpu.memory_space<vmem>>, vector<8x512xbf16>,
    %c0_165 = arith.constant 0 : index
    %c14_166 = arith.constant 14 : index
    %122 = vector.load %arg19[%c0_165, %c14_166] : memref<8x640xbf16, #tpu.memory_space<vmem>>, vector<8x512xbf16>
    %c24_167 = arith.constant 24 : index
    %c0_168 = arith.constant 0 : index
    %123 = vector.load %arg15[%c24_167, %c0_168] : memref<72x1792xbf16, #tpu.memory_space<vmem>>, vector<8x512xbf16>
    tpu.vector_store %arg15[%c24_167, %c0_168], %122 {strides = array<i32>} : memref<72x1792xbf16, #tpu.memory_space<vmem>>, vector<8x512xbf16>,
    %c0_169 = arith.constant 0 : index
    %c15_170 = arith.constant 15 : index
    %124 = vector.load %arg19[%c0_169, %c15_170] : memref<8x640xbf16, #tpu.memory_space<vmem>>, vector<8x512xbf16>
    %c32_171 = arith.constant 32 : index
    %c0_172 = arith.constant 0 : index
    %125 = vector.load %arg15[%c32_171, %c0_172] : memref<72x1792xbf16, #tpu.memory_space<vmem>>, vector<8x512xbf16>
    tpu.vector_store %arg15[%c32_171, %c0_172], %124 {strides = array<i32>} : memref<72x1792xbf16, #tpu.memory_space<vmem>>, vector<8x512xbf16>,
    %c0_173 = arith.constant 0 : index
    %c16_174 = arith.constant 16 : index
    %126 = vector.load %arg19[%c0_173, %c16_174] : memref<8x640xbf16, #tpu.memory_space<vmem>>, vector<8x512xbf16>
    %c40_175 = arith.constant 40 : index
    %c0_176 = arith.constant 0 : index
    %127 = vector.load %arg15[%c40_175, %c0_176] : memref<72x1792xbf16, #tpu.memory_space<vmem>>, vector<8x512xbf16>
    tpu.vector_store %arg15[%c40_175, %c0_176], %126 {strides = array<i32>} : memref<72x1792xbf16, #tpu.memory_space<vmem>>, vector<8x512xbf16>,
    %c0_177 = arith.constant 0 : index
    %c28_178 = arith.constant 28 : index
    %128 = vector.load %arg19[%c0_177, %c28_178] : memref<8x640xbf16, #tpu.memory_space<vmem>>, vector<8x512xbf16>
    %c48_179 = arith.constant 48 : index
    %c0_180 = arith.constant 0 : index
    %129 = vector.load %arg15[%c48_179, %c0_180] : memref<72x1792xbf16, #tpu.memory_space<vmem>>, vector<8x512xbf16>
    tpu.vector_store %arg15[%c48_179, %c0_180], %128 {strides = array<i32>} : memref<72x1792xbf16, #tpu.memory_space<vmem>>, vector<8x512xbf16>,
    %c0_181 = arith.constant 0 : index
    %c29_182 = arith.constant 29 : index
    %130 = vector.load %arg19[%c0_181, %c29_182] : memref<8x640xbf16, #tpu.memory_space<vmem>>, vector<8x512xbf16>
    %c56_183 = arith.constant 56 : index
    %c0_184 = arith.constant 0 : index
    %131 = vector.load %arg15[%c56_183, %c0_184] : memref<72x1792xbf16, #tpu.memory_space<vmem>>, vector<8x512xbf16>
    tpu.vector_store %arg15[%c56_183, %c0_184], %130 {strides = array<i32>} : memref<72x1792xbf16, #tpu.memory_space<vmem>>, vector<8x512xbf16>,
    %c0_185 = arith.constant 0 : index
    %c30_186 = arith.constant 30 : index
    %132 = vector.load %arg19[%c0_185, %c30_186] : memref<8x640xbf16, #tpu.memory_space<vmem>>, vector<8x512xbf16>
    %c64_187 = arith.constant 64 : index
    %c0_188 = arith.constant 0 : index
    %133 = vector.load %arg15[%c64_187, %c0_188] : memref<72x1792xbf16, #tpu.memory_space<vmem>>, vector<8x512xbf16>
    tpu.vector_store %arg15[%c64_187, %c0_188], %132 {strides = array<i32>} : memref<72x1792xbf16, #tpu.memory_space<vmem>>, vector<8x512xbf16>,
    %c0_189 = arith.constant 0 : index
    %c0_190 = arith.constant 0 : index
    %134 = vector.load %arg8[%c0_189, %c0_190] : memref<8x72xbf16, #tpu.memory_space<vmem>>, vector<8x72xbf16>
    %c0_191 = arith.constant 0 : index
    %c0_192 = arith.constant 0 : index
    %135 = vector.load %arg15[%c0_191, %c0_192] : memref<72x1792xbf16, #tpu.memory_space<vmem>>, vector<72x512xbf16>
    %cst_193 = arith.constant dense<0.000000e+00> : vector<8x512xf32>
    %136 = tpu.matmul %134, %135, %cst_193 {dimension_numbers = #tpu.dot_dimension_numbers<[1], [0], [0], [1], [0, 0, 1, 1], [], []>} : vector<8x72xbf16>, vector<72x512xbf16>, vector<8x512xf32> -> vector<8x512xf32>
    %c0_194 = arith.constant 0 : index
    %c0_195 = arith.constant 0 : index
    %137 = vector.load %arg9[%c0_194, %c0_195] : memref<8x1xf32, #tpu.memory_space<vmem>>, vector<8x1xf32>
    %138 = vector.broadcast %137 : vector<8x1xf32> to vector<8x512xf32>
    %139 = arith.addf %136, %138 : vector<8x512xf32>
    %cst_196 = arith.constant 0.000000e+00 : f32
    %140 = vector.broadcast %cst_196 : f32 to vector<8x512xf32>
    %141 = arith.maximumf %139, %140 : vector<8x512xf32>
    %142 = arith.truncf %141 : vector<8x512xf32> to vector<8x512xbf16>
    %c0_197 = arith.constant 0 : index
    %c0_198 = arith.constant 0 : index
    %143 = vector.load %arg20[%c0_197, %c0_198] : memref<8x640xbf16, #tpu.memory_space<vmem>>, vector<8x512xbf16>
    tpu.vector_store %arg20[%c0_197, %c0_198], %142 {strides = array<i32>} : memref<8x640xbf16, #tpu.memory_space<vmem>>, vector<8x512xbf16>,
    %c0_199 = arith.constant 0 : index
    %c0_200 = arith.constant 0 : index
    %144 = vector.load %arg20[%c0_199, %c0_200] : memref<8x640xbf16, #tpu.memory_space<vmem>>, vector<8x256xbf16>
    %c0_201 = arith.constant 0 : index
    %c1_202 = arith.constant 1 : index
    %145 = vector.load %arg20[%c0_201, %c1_202] : memref<8x640xbf16, #tpu.memory_space<vmem>>, vector<8x256xbf16>
    %146 = arith.maximumf %144, %145 : vector<8x256xbf16>
    %c0_203 = arith.constant 0 : index
    %c14_204 = arith.constant 14 : index
    %147 = vector.load %arg20[%c0_203, %c14_204] : memref<8x640xbf16, #tpu.memory_space<vmem>>, vector<8x256xbf16>
    %c0_205 = arith.constant 0 : index
    %c15_206 = arith.constant 15 : index
    %148 = vector.load %arg20[%c0_205, %c15_206] : memref<8x640xbf16, #tpu.memory_space<vmem>>, vector<8x256xbf16>
    %149 = arith.maximumf %147, %148 : vector<8x256xbf16>
    %150 = arith.maximumf %146, %149 : vector<8x256xbf16>
    %c0_207 = arith.constant 0 : index
    %c0_208 = arith.constant 0 : index
    %151 = vector.load %arg11[%c0_207, %c0_208] : memref<256x128xbf16, #tpu.memory_space<vmem>>, vector<256x128xbf16>
    %cst_209 = arith.constant dense<0.000000e+00> : vector<8x128xf32>
    %152 = tpu.matmul %150, %151, %cst_209 {dimension_numbers = #tpu.dot_dimension_numbers<[1], [0], [0], [1], [0, 0, 1, 1], [], []>} : vector<8x256xbf16>, vector<256x128xbf16>, vector<8x128xf32> -> vector<8x128xf32>
    %153 = arith.truncf %152 : vector<8x128xf32> to vector<8x128xbf16>
    %c0_210 = arith.constant 0 : index
    %c0_211 = arith.constant 0 : index
    %154 = vector.load %arg21[%c0_210, %c0_211] : memref<8x256xbf16, #tpu.memory_space<vmem>>, vector<8x128xbf16>
    tpu.vector_store %arg21[%c0_210, %c0_211], %153 {strides = array<i32>} : memref<8x256xbf16, #tpu.memory_space<vmem>>, vector<8x128xbf16>,
    %c0_212 = arith.constant 0 : index
    %c256_213 = arith.constant 256 : index
    %155 = vector.load %arg20[%c0_212, %c256_213] : memref<8x640xbf16, #tpu.memory_space<vmem>>, vector<8x256xbf16>
    %c0_214 = arith.constant 0 : index
    %c257 = arith.constant 257 : index
    %156 = vector.load %arg20[%c0_214, %c257] : memref<8x640xbf16, #tpu.memory_space<vmem>>, vector<8x256xbf16>
    %157 = arith.maximumf %155, %156 : vector<8x256xbf16>
    %c0_215 = arith.constant 0 : index
    %c270 = arith.constant 270 : index
    %158 = vector.load %arg20[%c0_215, %c270] : memref<8x640xbf16, #tpu.memory_space<vmem>>, vector<8x256xbf16>
    %c0_216 = arith.constant 0 : index
    %c271 = arith.constant 271 : index
    %159 = vector.load %arg20[%c0_216, %c271] : memref<8x640xbf16, #tpu.memory_space<vmem>>, vector<8x256xbf16>
    %160 = arith.maximumf %158, %159 : vector<8x256xbf16>
    %161 = arith.maximumf %157, %160 : vector<8x256xbf16>
    %c0_217 = arith.constant 0 : index
    %c0_218 = arith.constant 0 : index
    %162 = vector.load %arg11[%c0_217, %c0_218] : memref<256x128xbf16, #tpu.memory_space<vmem>>, vector<256x128xbf16>
    %cst_219 = arith.constant dense<0.000000e+00> : vector<8x128xf32>
    %163 = tpu.matmul %161, %162, %cst_219 {dimension_numbers = #tpu.dot_dimension_numbers<[1], [0], [0], [1], [0, 0, 1, 1], [], []>} : vector<8x256xbf16>, vector<256x128xbf16>, vector<8x128xf32> -> vector<8x128xf32>
    %164 = arith.truncf %163 : vector<8x128xf32> to vector<8x128xbf16>
    %c0_220 = arith.constant 0 : index
    %c128 = arith.constant 128 : index
    %165 = vector.load %arg21[%c0_220, %c128] : memref<8x256xbf16, #tpu.memory_space<vmem>>, vector<8x128xbf16>
    tpu.vector_store %arg21[%c0_220, %c128], %164 {strides = array<i32>} : memref<8x256xbf16, #tpu.memory_space<vmem>>, vector<8x128xbf16>,
    %c0_221 = arith.constant 0 : index
    %c0_222 = arith.constant 0 : index
    %166 = vector.load %arg21[%c0_221, %c0_222] : memref<8x256xbf16, #tpu.memory_space<vmem>>, vector<8x1xbf16>
    %c0_223 = arith.constant 0 : index
    %c0_224 = arith.constant 0 : index
    %167 = vector.load %arg22[%c0_223, %c0_224] : memref<128x2xbf16, #tpu.memory_space<vmem>>, vector<8x1xbf16>
    tpu.vector_store %arg22[%c0_223, %c0_224], %166 {strides = array<i32>} : memref<128x2xbf16, #tpu.memory_space<vmem>>, vector<8x1xbf16>,
    %c0_225 = arith.constant 0 : index
    %c128_226 = arith.constant 128 : index
    %168 = vector.load %arg21[%c0_225, %c128_226] : memref<8x256xbf16, #tpu.memory_space<vmem>>, vector<8x1xbf16>
    %c0_227 = arith.constant 0 : index
    %c1_228 = arith.constant 1 : index
    %169 = vector.load %arg22[%c0_227, %c1_228] : memref<128x2xbf16, #tpu.memory_space<vmem>>, vector<8x1xbf16>
    tpu.vector_store %arg22[%c0_227, %c1_228], %168 {strides = array<i32>} : memref<128x2xbf16, #tpu.memory_space<vmem>>, vector<8x1xbf16>,
    %c0_229 = arith.constant 0 : index
    %c1_230 = arith.constant 1 : index
    %170 = vector.load %arg21[%c0_229, %c1_230] : memref<8x256xbf16, #tpu.memory_space<vmem>>, vector<8x1xbf16>
    %c8_231 = arith.constant 8 : index
    %c0_232 = arith.constant 0 : index
    %171 = vector.load %arg22[%c8_231, %c0_232] : memref<128x2xbf16, #tpu.memory_space<vmem>>, vector<8x1xbf16>
    tpu.vector_store %arg22[%c8_231, %c0_232], %170 {strides = array<i32>} : memref<128x2xbf16, #tpu.memory_space<vmem>>, vector<8x1xbf16>,
    %c0_233 = arith.constant 0 : index
    %c129 = arith.constant 129 : index
    %172 = vector.load %arg21[%c0_233, %c129] : memref<8x256xbf16, #tpu.memory_space<vmem>>, vector<8x1xbf16>
    %c8_234 = arith.constant 8 : index
    %c1_235 = arith.constant 1 : index
    %173 = vector.load %arg22[%c8_234, %c1_235] : memref<128x2xbf16, #tpu.memory_space<vmem>>, vector<8x1xbf16>
    tpu.vector_store %arg22[%c8_234, %c1_235], %172 {strides = array<i32>} : memref<128x2xbf16, #tpu.memory_space<vmem>>, vector<8x1xbf16>,
    %c0_236 = arith.constant 0 : index
    %c2_237 = arith.constant 2 : index
    %174 = vector.load %arg21[%c0_236, %c2_237] : memref<8x256xbf16, #tpu.memory_space<vmem>>, vector<8x1xbf16>
    %c16_238 = arith.constant 16 : index
    %c0_239 = arith.constant 0 : index
    %175 = vector.load %arg22[%c16_238, %c0_239] : memref<128x2xbf16, #tpu.memory_space<vmem>>, vector<8x1xbf16>
    tpu.vector_store %arg22[%c16_238, %c0_239], %174 {strides = array<i32>} : memref<128x2xbf16, #tpu.memory_space<vmem>>, vector<8x1xbf16>,
    %c0_240 = arith.constant 0 : index
    %c130 = arith.constant 130 : index
    %176 = vector.load %arg21[%c0_240, %c130] : memref<8x256xbf16, #tpu.memory_space<vmem>>, vector<8x1xbf16>
    %c16_241 = arith.constant 16 : index
    %c1_242 = arith.constant 1 : index
    %177 = vector.load %arg22[%c16_241, %c1_242] : memref<128x2xbf16, #tpu.memory_space<vmem>>, vector<8x1xbf16>
    tpu.vector_store %arg22[%c16_241, %c1_242], %176 {strides = array<i32>} : memref<128x2xbf16, #tpu.memory_space<vmem>>, vector<8x1xbf16>,
    %c0_243 = arith.constant 0 : index
    %c3 = arith.constant 3 : index
    %178 = vector.load %arg21[%c0_243, %c3] : memref<8x256xbf16, #tpu.memory_space<vmem>>, vector<8x1xbf16>
    %c24_244 = arith.constant 24 : index
    %c0_245 = arith.constant 0 : index
    %179 = vector.load %arg22[%c24_244, %c0_245] : memref<128x2xbf16, #tpu.memory_space<vmem>>, vector<8x1xbf16>
    tpu.vector_store %arg22[%c24_244, %c0_245], %178 {strides = array<i32>} : memref<128x2xbf16, #tpu.memory_space<vmem>>, vector<8x1xbf16>,
    %c0_246 = arith.constant 0 : index
    %c131 = arith.constant 131 : index
    %180 = vector.load %arg21[%c0_246, %c131] : memref<8x256xbf16, #tpu.memory_space<vmem>>, vector<8x1xbf16>
    %c24_247 = arith.constant 24 : index
    %c1_248 = arith.constant 1 : index
    %181 = vector.load %arg22[%c24_247, %c1_248] : memref<128x2xbf16, #tpu.memory_space<vmem>>, vector<8x1xbf16>
    tpu.vector_store %arg22[%c24_247, %c1_248], %180 {strides = array<i32>} : memref<128x2xbf16, #tpu.memory_space<vmem>>, vector<8x1xbf16>,
    %c0_249 = arith.constant 0 : index
    %c7 = arith.constant 7 : index
    %182 = vector.load %arg21[%c0_249, %c7] : memref<8x256xbf16, #tpu.memory_space<vmem>>, vector<8x1xbf16>
    %c32_250 = arith.constant 32 : index
    %c0_251 = arith.constant 0 : index
    %183 = vector.load %arg22[%c32_250, %c0_251] : memref<128x2xbf16, #tpu.memory_space<vmem>>, vector<8x1xbf16>
    tpu.vector_store %arg22[%c32_250, %c0_251], %182 {strides = array<i32>} : memref<128x2xbf16, #tpu.memory_space<vmem>>, vector<8x1xbf16>,
    %c0_252 = arith.constant 0 : index
    %c135 = arith.constant 135 : index
    %184 = vector.load %arg21[%c0_252, %c135] : memref<8x256xbf16, #tpu.memory_space<vmem>>, vector<8x1xbf16>
    %c32_253 = arith.constant 32 : index
    %c1_254 = arith.constant 1 : index
    %185 = vector.load %arg22[%c32_253, %c1_254] : memref<128x2xbf16, #tpu.memory_space<vmem>>, vector<8x1xbf16>
    tpu.vector_store %arg22[%c32_253, %c1_254], %184 {strides = array<i32>} : memref<128x2xbf16, #tpu.memory_space<vmem>>, vector<8x1xbf16>,
    %c0_255 = arith.constant 0 : index
    %c8_256 = arith.constant 8 : index
    %186 = vector.load %arg21[%c0_255, %c8_256] : memref<8x256xbf16, #tpu.memory_space<vmem>>, vector<8x1xbf16>
    %c40_257 = arith.constant 40 : index
    %c0_258 = arith.constant 0 : index
    %187 = vector.load %arg22[%c40_257, %c0_258] : memref<128x2xbf16, #tpu.memory_space<vmem>>, vector<8x1xbf16>
    tpu.vector_store %arg22[%c40_257, %c0_258], %186 {strides = array<i32>} : memref<128x2xbf16, #tpu.memory_space<vmem>>, vector<8x1xbf16>,
    %c0_259 = arith.constant 0 : index
    %c136 = arith.constant 136 : index
    %188 = vector.load %arg21[%c0_259, %c136] : memref<8x256xbf16, #tpu.memory_space<vmem>>, vector<8x1xbf16>
    %c40_260 = arith.constant 40 : index
    %c1_261 = arith.constant 1 : index
    %189 = vector.load %arg22[%c40_260, %c1_261] : memref<128x2xbf16, #tpu.memory_space<vmem>>, vector<8x1xbf16>
    tpu.vector_store %arg22[%c40_260, %c1_261], %188 {strides = array<i32>} : memref<128x2xbf16, #tpu.memory_space<vmem>>, vector<8x1xbf16>,
    %c0_262 = arith.constant 0 : index
    %c9 = arith.constant 9 : index
    %190 = vector.load %arg21[%c0_262, %c9] : memref<8x256xbf16, #tpu.memory_space<vmem>>, vector<8x1xbf16>
    %c48_263 = arith.constant 48 : index
    %c0_264 = arith.constant 0 : index
    %191 = vector.load %arg22[%c48_263, %c0_264] : memref<128x2xbf16, #tpu.memory_space<vmem>>, vector<8x1xbf16>
    tpu.vector_store %arg22[%c48_263, %c0_264], %190 {strides = array<i32>} : memref<128x2xbf16, #tpu.memory_space<vmem>>, vector<8x1xbf16>,
    %c0_265 = arith.constant 0 : index
    %c137 = arith.constant 137 : index
    %192 = vector.load %arg21[%c0_265, %c137] : memref<8x256xbf16, #tpu.memory_space<vmem>>, vector<8x1xbf16>
    %c48_266 = arith.constant 48 : index
    %c1_267 = arith.constant 1 : index
    %193 = vector.load %arg22[%c48_266, %c1_267] : memref<128x2xbf16, #tpu.memory_space<vmem>>, vector<8x1xbf16>
    tpu.vector_store %arg22[%c48_266, %c1_267], %192 {strides = array<i32>} : memref<128x2xbf16, #tpu.memory_space<vmem>>, vector<8x1xbf16>,
    %c0_268 = arith.constant 0 : index
    %c10 = arith.constant 10 : index
    %194 = vector.load %arg21[%c0_268, %c10] : memref<8x256xbf16, #tpu.memory_space<vmem>>, vector<8x1xbf16>
    %c56_269 = arith.constant 56 : index
    %c0_270 = arith.constant 0 : index
    %195 = vector.load %arg22[%c56_269, %c0_270] : memref<128x2xbf16, #tpu.memory_space<vmem>>, vector<8x1xbf16>
    tpu.vector_store %arg22[%c56_269, %c0_270], %194 {strides = array<i32>} : memref<128x2xbf16, #tpu.memory_space<vmem>>, vector<8x1xbf16>,
    %c0_271 = arith.constant 0 : index
    %c138 = arith.constant 138 : index
    %196 = vector.load %arg21[%c0_271, %c138] : memref<8x256xbf16, #tpu.memory_space<vmem>>, vector<8x1xbf16>
    %c56_272 = arith.constant 56 : index
    %c1_273 = arith.constant 1 : index
    %197 = vector.load %arg22[%c56_272, %c1_273] : memref<128x2xbf16, #tpu.memory_space<vmem>>, vector<8x1xbf16>
    tpu.vector_store %arg22[%c56_272, %c1_273], %196 {strides = array<i32>} : memref<128x2xbf16, #tpu.memory_space<vmem>>, vector<8x1xbf16>,
    %c0_274 = arith.constant 0 : index
    %c14_275 = arith.constant 14 : index
    %198 = vector.load %arg21[%c0_274, %c14_275] : memref<8x256xbf16, #tpu.memory_space<vmem>>, vector<8x1xbf16>
    %c64_276 = arith.constant 64 : index
    %c0_277 = arith.constant 0 : index
    %199 = vector.load %arg22[%c64_276, %c0_277] : memref<128x2xbf16, #tpu.memory_space<vmem>>, vector<8x1xbf16>
    tpu.vector_store %arg22[%c64_276, %c0_277], %198 {strides = array<i32>} : memref<128x2xbf16, #tpu.memory_space<vmem>>, vector<8x1xbf16>,
    %c0_278 = arith.constant 0 : index
    %c142 = arith.constant 142 : index
    %200 = vector.load %arg21[%c0_278, %c142] : memref<8x256xbf16, #tpu.memory_space<vmem>>, vector<8x1xbf16>
    %c64_279 = arith.constant 64 : index
    %c1_280 = arith.constant 1 : index
    %201 = vector.load %arg22[%c64_279, %c1_280] : memref<128x2xbf16, #tpu.memory_space<vmem>>, vector<8x1xbf16>
    tpu.vector_store %arg22[%c64_279, %c1_280], %200 {strides = array<i32>} : memref<128x2xbf16, #tpu.memory_space<vmem>>, vector<8x1xbf16>,
    %c0_281 = arith.constant 0 : index
    %c15_282 = arith.constant 15 : index
    %202 = vector.load %arg21[%c0_281, %c15_282] : memref<8x256xbf16, #tpu.memory_space<vmem>>, vector<8x1xbf16>
    %c72 = arith.constant 72 : index
    %c0_283 = arith.constant 0 : index
    %203 = vector.load %arg22[%c72, %c0_283] : memref<128x2xbf16, #tpu.memory_space<vmem>>, vector<8x1xbf16>
    tpu.vector_store %arg22[%c72, %c0_283], %202 {strides = array<i32>} : memref<128x2xbf16, #tpu.memory_space<vmem>>, vector<8x1xbf16>,
    %c0_284 = arith.constant 0 : index
    %c143 = arith.constant 143 : index
    %204 = vector.load %arg21[%c0_284, %c143] : memref<8x256xbf16, #tpu.memory_space<vmem>>, vector<8x1xbf16>
    %c72_285 = arith.constant 72 : index
    %c1_286 = arith.constant 1 : index
    %205 = vector.load %arg22[%c72_285, %c1_286] : memref<128x2xbf16, #tpu.memory_space<vmem>>, vector<8x1xbf16>
    tpu.vector_store %arg22[%c72_285, %c1_286], %204 {strides = array<i32>} : memref<128x2xbf16, #tpu.memory_space<vmem>>, vector<8x1xbf16>,
    %c0_287 = arith.constant 0 : index
    %c16_288 = arith.constant 16 : index
    %206 = vector.load %arg21[%c0_287, %c16_288] : memref<8x256xbf16, #tpu.memory_space<vmem>>, vector<8x1xbf16>
    %c80 = arith.constant 80 : index
    %c0_289 = arith.constant 0 : index
    %207 = vector.load %arg22[%c80, %c0_289] : memref<128x2xbf16, #tpu.memory_space<vmem>>, vector<8x1xbf16>
    tpu.vector_store %arg22[%c80, %c0_289], %206 {strides = array<i32>} : memref<128x2xbf16, #tpu.memory_space<vmem>>, vector<8x1xbf16>,
    %c0_290 = arith.constant 0 : index
    %c144 = arith.constant 144 : index
    %208 = vector.load %arg21[%c0_290, %c144] : memref<8x256xbf16, #tpu.memory_space<vmem>>, vector<8x1xbf16>
    %c80_291 = arith.constant 80 : index
    %c1_292 = arith.constant 1 : index
    %209 = vector.load %arg22[%c80_291, %c1_292] : memref<128x2xbf16, #tpu.memory_space<vmem>>, vector<8x1xbf16>
    tpu.vector_store %arg22[%c80_291, %c1_292], %208 {strides = array<i32>} : memref<128x2xbf16, #tpu.memory_space<vmem>>, vector<8x1xbf16>,
    %c0_293 = arith.constant 0 : index
    %c17 = arith.constant 17 : index
    %210 = vector.load %arg21[%c0_293, %c17] : memref<8x256xbf16, #tpu.memory_space<vmem>>, vector<8x1xbf16>
    %c88 = arith.constant 88 : index
    %c0_294 = arith.constant 0 : index
    %211 = vector.load %arg22[%c88, %c0_294] : memref<128x2xbf16, #tpu.memory_space<vmem>>, vector<8x1xbf16>
    tpu.vector_store %arg22[%c88, %c0_294], %210 {strides = array<i32>} : memref<128x2xbf16, #tpu.memory_space<vmem>>, vector<8x1xbf16>,
    %c0_295 = arith.constant 0 : index
    %c145 = arith.constant 145 : index
    %212 = vector.load %arg21[%c0_295, %c145] : memref<8x256xbf16, #tpu.memory_space<vmem>>, vector<8x1xbf16>
    %c88_296 = arith.constant 88 : index
    %c1_297 = arith.constant 1 : index
    %213 = vector.load %arg22[%c88_296, %c1_297] : memref<128x2xbf16, #tpu.memory_space<vmem>>, vector<8x1xbf16>
    tpu.vector_store %arg22[%c88_296, %c1_297], %212 {strides = array<i32>} : memref<128x2xbf16, #tpu.memory_space<vmem>>, vector<8x1xbf16>,
    %c0_298 = arith.constant 0 : index
    %c21 = arith.constant 21 : index
    %214 = vector.load %arg21[%c0_298, %c21] : memref<8x256xbf16, #tpu.memory_space<vmem>>, vector<8x1xbf16>
    %c96 = arith.constant 96 : index
    %c0_299 = arith.constant 0 : index
    %215 = vector.load %arg22[%c96, %c0_299] : memref<128x2xbf16, #tpu.memory_space<vmem>>, vector<8x1xbf16>
    tpu.vector_store %arg22[%c96, %c0_299], %214 {strides = array<i32>} : memref<128x2xbf16, #tpu.memory_space<vmem>>, vector<8x1xbf16>,
    %c0_300 = arith.constant 0 : index
    %c149 = arith.constant 149 : index
    %216 = vector.load %arg21[%c0_300, %c149] : memref<8x256xbf16, #tpu.memory_space<vmem>>, vector<8x1xbf16>
    %c96_301 = arith.constant 96 : index
    %c1_302 = arith.constant 1 : index
    %217 = vector.load %arg22[%c96_301, %c1_302] : memref<128x2xbf16, #tpu.memory_space<vmem>>, vector<8x1xbf16>
    tpu.vector_store %arg22[%c96_301, %c1_302], %216 {strides = array<i32>} : memref<128x2xbf16, #tpu.memory_space<vmem>>, vector<8x1xbf16>,
    %c0_303 = arith.constant 0 : index
    %c22 = arith.constant 22 : index
    %218 = vector.load %arg21[%c0_303, %c22] : memref<8x256xbf16, #tpu.memory_space<vmem>>, vector<8x1xbf16>
    %c104 = arith.constant 104 : index
    %c0_304 = arith.constant 0 : index
    %219 = vector.load %arg22[%c104, %c0_304] : memref<128x2xbf16, #tpu.memory_space<vmem>>, vector<8x1xbf16>
    tpu.vector_store %arg22[%c104, %c0_304], %218 {strides = array<i32>} : memref<128x2xbf16, #tpu.memory_space<vmem>>, vector<8x1xbf16>,
    %c0_305 = arith.constant 0 : index
    %c150 = arith.constant 150 : index
    %220 = vector.load %arg21[%c0_305, %c150] : memref<8x256xbf16, #tpu.memory_space<vmem>>, vector<8x1xbf16>
    %c104_306 = arith.constant 104 : index
    %c1_307 = arith.constant 1 : index
    %221 = vector.load %arg22[%c104_306, %c1_307] : memref<128x2xbf16, #tpu.memory_space<vmem>>, vector<8x1xbf16>
    tpu.vector_store %arg22[%c104_306, %c1_307], %220 {strides = array<i32>} : memref<128x2xbf16, #tpu.memory_space<vmem>>, vector<8x1xbf16>,
    %c0_308 = arith.constant 0 : index
    %c23 = arith.constant 23 : index
    %222 = vector.load %arg21[%c0_308, %c23] : memref<8x256xbf16, #tpu.memory_space<vmem>>, vector<8x1xbf16>
    %c112 = arith.constant 112 : index
    %c0_309 = arith.constant 0 : index
    %223 = vector.load %arg22[%c112, %c0_309] : memref<128x2xbf16, #tpu.memory_space<vmem>>, vector<8x1xbf16>
    tpu.vector_store %arg22[%c112, %c0_309], %222 {strides = array<i32>} : memref<128x2xbf16, #tpu.memory_space<vmem>>, vector<8x1xbf16>,
    %c0_310 = arith.constant 0 : index
    %c151 = arith.constant 151 : index
    %224 = vector.load %arg21[%c0_310, %c151] : memref<8x256xbf16, #tpu.memory_space<vmem>>, vector<8x1xbf16>
    %c112_311 = arith.constant 112 : index
    %c1_312 = arith.constant 1 : index
    %225 = vector.load %arg22[%c112_311, %c1_312] : memref<128x2xbf16, #tpu.memory_space<vmem>>, vector<8x1xbf16>
    tpu.vector_store %arg22[%c112_311, %c1_312], %224 {strides = array<i32>} : memref<128x2xbf16, #tpu.memory_space<vmem>>, vector<8x1xbf16>,
    %c0_313 = arith.constant 0 : index
    %c24_314 = arith.constant 24 : index
    %226 = vector.load %arg21[%c0_313, %c24_314] : memref<8x256xbf16, #tpu.memory_space<vmem>>, vector<8x1xbf16>
    %c120 = arith.constant 120 : index
    %c0_315 = arith.constant 0 : index
    %227 = vector.load %arg22[%c120, %c0_315] : memref<128x2xbf16, #tpu.memory_space<vmem>>, vector<8x1xbf16>
    tpu.vector_store %arg22[%c120, %c0_315], %226 {strides = array<i32>} : memref<128x2xbf16, #tpu.memory_space<vmem>>, vector<8x1xbf16>,
    %c0_316 = arith.constant 0 : index
    %c152 = arith.constant 152 : index
    %228 = vector.load %arg21[%c0_316, %c152] : memref<8x256xbf16, #tpu.memory_space<vmem>>, vector<8x1xbf16>
    %c120_317 = arith.constant 120 : index
    %c1_318 = arith.constant 1 : index
    %229 = vector.load %arg22[%c120_317, %c1_318] : memref<128x2xbf16, #tpu.memory_space<vmem>>, vector<8x1xbf16>
    tpu.vector_store %arg22[%c120_317, %c1_318], %228 {strides = array<i32>} : memref<128x2xbf16, #tpu.memory_space<vmem>>, vector<8x1xbf16>,
    %c0_319 = arith.constant 0 : index
    %c0_320 = arith.constant 0 : index
    %230 = vector.load %arg12[%c0_319, %c0_320] : memref<10x128xbf16, #tpu.memory_space<vmem>>, vector<10x128xbf16>
    %c0_321 = arith.constant 0 : index
    %c0_322 = arith.constant 0 : index
    %231 = vector.load %arg22[%c0_321, %c0_322] : memref<128x2xbf16, #tpu.memory_space<vmem>>, vector<128x2xbf16>
    %cst_323 = arith.constant dense<0.000000e+00> : vector<10x2xf32>
    %232 = tpu.matmul %230, %231, %cst_323 {dimension_numbers = #tpu.dot_dimension_numbers<[1], [0], [0], [1], [0, 0, 1, 1], [], []>} : vector<10x128xbf16>, vector<128x2xbf16>, vector<10x2xf32> -> vector<10x2xf32>
    %c0_324 = arith.constant 0 : index
    %c0_325 = arith.constant 0 : index
    %233 = vector.load %arg13[%c0_324, %c0_325] : memref<10x1xf32, #tpu.memory_space<vmem>>, vector<10x1xf32>
    %234 = vector.broadcast %233 : vector<10x1xf32> to vector<10x2xf32>
    %235 = arith.addf %232, %234 : vector<10x2xf32>
    %c0_326 = arith.constant 0 : index
    %c0_327 = arith.constant 0 : index
    %c0_328 = arith.constant 0 : index
    %236 = vector.load %arg14[%c0_326, %c0_327, %c0_328] : memref<1x10x2xf32, #tpu.memory_space<vmem>>, vector<1x10x2xf32>
    %237 = vector.shape_cast %236 : vector<1x10x2xf32> to vector<10x2xf32>
    %238 = vector.shape_cast %235 : vector<10x2xf32> to vector<1x10x2xf32>
    tpu.vector_store %arg14[%c0_326, %c0_327, %c0_328], %238 {strides = array<i32>} : memref<1x10x2xf32, #tpu.memory_space<vmem>>, vector<1x10x2xf32>,
    return
  }
  func.func @transform_0(%arg0: i32) -> (i32, i32) {
    %c0_i32 = arith.constant 0 : i32
    %c0_i32_0 = arith.constant 0 : i32
    return %c0_i32, %arg0 : i32, i32
  }
  func.func @transform_1(%arg0: i32) -> (i32, i32) {
    %c0_i32 = arith.constant 0 : i32
    %c0_i32_0 = arith.constant 0 : i32
    %c0_i32_1 = arith.constant 0 : i32
    return %c0_i32, %c0_i32_0 : i32, i32
  }
  func.func @transform_2(%arg0: i32) -> (i32, i32) {
    %c0_i32 = arith.constant 0 : i32
    %c0_i32_0 = arith.constant 0 : i32
    %c0_i32_1 = arith.constant 0 : i32
    return %c0_i32, %c0_i32_0 : i32, i32
  }
  func.func @transform_3(%arg0: i32) -> (i32, i32) {
    %c0_i32 = arith.constant 0 : i32
    %c0_i32_0 = arith.constant 0 : i32
    %c0_i32_1 = arith.constant 0 : i32
    return %c0_i32, %c0_i32_0 : i32, i32
  }
  func.func @transform_4(%arg0: i32) -> (i32, i32) {
    %c0_i32 = arith.constant 0 : i32
    %c0_i32_0 = arith.constant 0 : i32
    %c0_i32_1 = arith.constant 0 : i32
    return %c0_i32, %c0_i32_0 : i32, i32
  }
  func.func @transform_5(%arg0: i32) -> (i32, i32) {
    %c0_i32 = arith.constant 0 : i32
    %c0_i32_0 = arith.constant 0 : i32
    %c0_i32_1 = arith.constant 0 : i32
    return %c0_i32, %c0_i32_0 : i32, i32
  }
  func.func @transform_6(%arg0: i32) -> (i32, i32) {
    %c0_i32 = arith.constant 0 : i32
    %c0_i32_0 = arith.constant 0 : i32
    %c0_i32_1 = arith.constant 0 : i32
    return %c0_i32, %c0_i32_0 : i32, i32
  }
  func.func @transform_7(%arg0: i32) -> (i32, i32) {
    %c0_i32 = arith.constant 0 : i32
    %c0_i32_0 = arith.constant 0 : i32
    %c0_i32_1 = arith.constant 0 : i32
    return %c0_i32, %c0_i32_0 : i32, i32
  }
  func.func @transform_8(%arg0: i32) -> (i32, i32) {
    %c0_i32 = arith.constant 0 : i32
    %c0_i32_0 = arith.constant 0 : i32
    %c0_i32_1 = arith.constant 0 : i32
    return %c0_i32, %c0_i32_0 : i32, i32
  }
  func.func @transform_9(%arg0: i32) -> (i32, i32) {
    %c0_i32 = arith.constant 0 : i32
    %c0_i32_0 = arith.constant 0 : i32
    %c0_i32_1 = arith.constant 0 : i32
    return %c0_i32, %c0_i32_0 : i32, i32
  }
  func.func @transform_10(%arg0: i32) -> (i32, i32) {
    %c0_i32 = arith.constant 0 : i32
    %c0_i32_0 = arith.constant 0 : i32
    %c0_i32_1 = arith.constant 0 : i32
    return %c0_i32, %c0_i32_0 : i32, i32
  }
  func.func @transform_11(%arg0: i32) -> (i32, i32) {
    %c0_i32 = arith.constant 0 : i32
    %c0_i32_0 = arith.constant 0 : i32
    %c0_i32_1 = arith.constant 0 : i32
    return %c0_i32, %c0_i32_0 : i32, i32
  }
  func.func @transform_12(%arg0: i32) -> (i32, i32) {
    %c0_i32 = arith.constant 0 : i32
    %c0_i32_0 = arith.constant 0 : i32
    %c0_i32_1 = arith.constant 0 : i32
    return %c0_i32, %c0_i32_0 : i32, i32
  }
  func.func @transform_13(%arg0: i32) -> (i32, i32, i32) {
    %c0_i32 = arith.constant 0 : i32
    %c0_i32_0 = arith.constant 0 : i32
    %c0_i32_1 = arith.constant 0 : i32
    return %arg0, %c0_i32, %c0_i32_0 : i32, i32, i32
  }
}

</mosaic_0001>

<bundles_post_ra>
// kernel: cnn_forward.1
= control target key start
LH: loop header
LB: loop body
LE: loop exit
PB: predicated region body
PF: predicated region fallthrough
CT: control target
= control target key end

     0   :  { %s7731_s25 = smov 0   ;;  %s9999_s0 = inlined_call_operand.vmem [shape: bf16[8,3840], index: 0, kind: input, shape index: {}]   ;;  %s10000_s1 = inlined_call_operand.vmem [shape: bf16[8,72], index: 1, kind: input, shape index: {}]   ;;  %s10001_s2 = inlined_call_operand.vmem [shape: f32[8,1], index: 2, kind: input, shape index: {}]   ;;  %s10002_s3 = inlined_call_operand.vmem [shape: bf16[8,72], index: 3, kind: input, shape index: {}]   ;;  %s10003_s4 = inlined_call_operand.vmem [shape: f32[8,1], index: 4, kind: input, shape index: {}]   ;;  %s10004_s5 = inlined_call_operand.vmem [shape: bf16[8,72], index: 5, kind: input, shape index: {}]   ;;  %s10005_s6 = inlined_call_operand.vmem [shape: f32[8,1], index: 6, kind: input, shape index: {}]   ;;  %s10006_s7 = inlined_call_operand.vmem [shape: bf16[8,72], index: 7, kind: input, shape index: {}]   ;;  %s10007_s8 = inlined_call_operand.vmem [shape: f32[8,1], index: 8, kind: input, shape index: {}]   ;;  %s10008_s9 = inlined_call_operand.vmem [shape: bf16[896,256], index: 9, kind: input, shape index: {}]   ;;  %s10009_s10 = inlined_call_operand.vmem [shape: bf16[256,128], index: 10, kind: input, shape index: {}]   ;;  %s10010_s11 = inlined_call_operand.vmem [shape: bf16[10,128], index: 11, kind: input, shape index: {}]   ;;  %s10011_s12 = inlined_call_operand.vmem [shape: f32[10,1], index: 12, kind: input, shape index: {}]   ;;  %s10012_s13 = inlined_call_operand.vmem [shape: f32[2,10,2], index: 13, kind: output, shape index: {}]  }
   0x1 LB: > { %s7737_s26 = sadd.s32 4294967295, %s7631_s25   ;;  %p6689_p0 = scmp.ge.s32.totalorder %s7631_s25, 1  ;;  %s7631_s25 = sphi %s7731_s25, %s23_s25  }
   0x2   : > { %p388_p1 = scmp.lt.s32.totalorder %s7631_s25, 3 }
   0x4   : > { %p389_p2 = pnand %p6689_p0, %p388_p1 }
   0x5   : > { %s432_s27 = smul.u32 (!%p389_p2), 15, %s7737_s26  ;;  %s7633_s15 = smov (!%p389_p2), 126   ;;  %v7640_v2 = vmov (!%p389_p2), 0   ;;  %vm503_vm0 = vcmask (!%p389_p2), 1043456   ;;  %vm505_vm1 = vcmask (!%p389_p2), 1039360   ;;  %vm643_vm2 = vcmask (!%p389_p2), 818176  }
   0x6   : > { %392 = sbr.rel (%p389_p2) target bundleno = 3120 (0xc30), region = 72  ;;  %s7634_s16 = smov (!%p389_p2), 127   ;;  %444 = vst [vmem:[#allocation3 + $0x38] sm:$0xf] (!%p389_p2), %v7640_v2  ;;  %445 = vst [vmem:[#allocation4 + $0x38] sm:$0xf] (!%p389_p2), %v7640_v2  ;;  %1480 = vmatprep.mubr.bf16.mxu1 (!%p389_p2), %v7640_v2  ;;  %1562 = vmatprep.mubr.bf16.mxu0 (!%p389_p2), %v7640_v2 }
   0x7   : > { %p433_p3 = scmp.lt.s32.totalorder (!%p389_p2), %s432_s27, 29  ;;  %s7635_s17 = smov (!%p389_p2), 100   ;;  %446 = vst [vmem:[#allocation5 + $0x10] sm:$0xf] (!%p389_p2), %v7640_v2  ;;  %447 = vst [vmem:[#allocation6 + $0x10] sm:$0xf] (!%p389_p2), %v7640_v2  ;;  %7391 = vset.pattern.permute.xlu0 (!%p389_p2), %v7640_v2  ;;  %7392 = vset.pattern.permute.xlu1 (!%p389_p2), %v7640_v2 }
   0x8   : > { %s7636_s18 = smov (!%p389_p2), 99   ;;  %s7637_s19 = smov (!%p389_p2), 98   ;;  %448 = vst [vmem:[#allocation7 + $0x10] sm:$0xf] (!%p389_p2), %v7640_v2  ;;  %vm574_vm3 = vcmask (!%p389_p2), 1031168   ;;  %v1080_v34 = vld [vmem:[%s10001_s2] sm:$0xff] (!%p389_p2) }
   0x9   : > { %s7638_s20 = smov (!%p389_p2), 72   ;;  %s7639_s21 = smov (!%p389_p2), 71   ;;  %vm712_vm4 = vcmask (!%p389_p2), 809984   ;;  %vm781_vm5 = vcmask (!%p389_p2), 801792   ;;  %vm850_vm6 = vcmask (!%p389_p2), 588800   ;;  %vm919_vm7 = vcmask (!%p389_p2), 580608  }
   0xa   : > { %s7641_s22 = smov (!%p389_p2), 70   ;;  %vm988_vm8 = vcmask (!%p389_p2), 572416   ;;  %s7642_s29 = smov (!%p389_p2), 114   ;;  %vm5112_vm9 = vcmask (!%p389_p2), 932864   ;;  %vm5136_vm10 = vcmask (!%p389_p2), 924672   ;;  %vm5160_vm11 = vcmask (!%p389_p2), 916480  }
   0xb   : > { %s7644_s23 = smov (!%p389_p2), 112   ;;  %s7647_s30 = smov (!%p389_p2), 125   ;;  %vm6306_vm12 = vcmask (!%p389_p2), 3072   ;;  %vm7660_vm13 = vmmov (!%p389_p2), 0   ;;  %vm6324_vm14 = vcmask (!%p389_p2), 7172   ;;  %vm6331_vm15 = vcmask (!%p389_p2), 15372  }
   0xc   : > { %s7656_s24 = smov (!%p389_p2), 108   ;;  %p438_p4 = scmp.lt.s32.totalorder (!%p389_p2), %s7737_s26, 1 }
   0xd   : > { %s10014_s27 = smov (!%p433_p3, %s432_s27), 29 }
   0xe   : > { %s6690_s28 = sshll.u32 %s10014_s27, 2  ;;  %s7657_s27 = smov 106  }
   0xf   : > { %s7745_s14 = scalar_lea.vmem %s9999_s0, %s6690_s28  ;;  %s7646_s28 = smov 1  }
  0x10   : > { %v7748_v0 = vld [vmem:[%s7745_s14] sm:$0xff]  ;;  %v7755_v1 = vld [vmem:[%s7745_s14 + $0x8] sm:$0xff]  ;;  %v7791_v3 = vld [vmem:[%s7745_s14 + $0x10] sm:$0xff]  ;;  %s10016_s26 = smov (!%p438_p4, %s7737_s26), 1 }
  0x11   : > { %549 = vrot.lane.b32.xlu1 %v7748_v0, %s7633_s15  ;;  %479 = vrot.lane.b32.xlu0 %v7748_v0, %s7634_s16  ;;  %v7810_v4 = vld [vmem:[%s7745_s14 + $0x20] sm:$0xff]  ;;  %v7813_v5 = vld [vmem:[%s7745_s14 + $0x18] sm:$0xff] }
  0x12   : > { %v7852_v6 = vld [vmem:[%s7745_s14 + $0x30] sm:$0xff]  ;;  %v7855_v7 = vld [vmem:[%s7745_s14 + $0x28] sm:$0xff]  ;;  %v540_v8 = vld [vmem:[%s7745_s14 + $0x38] sm:$0xf] }
  0x13   : > { %v470_v9 = vld [vmem:[%s7745_s14 + $0x38] sm:$0xf] }
  0x14   : > { %v678_v10 = vld [vmem:[%s7745_s14 + $0x38] sm:$0xf] }
  0x15   : > { %551 = vrot.lane.b32.xlu1 %v7755_v1, %s7633_s15  ;;  %481 = vrot.lane.b32.xlu0 %v7755_v1, %s7634_s16  ;;  %v609_v11 = vld [vmem:[%s7745_s14 + $0x38] sm:$0xf] }
  0x16   : > { %v816_v14 = vld [vmem:[%s7745_s14 + $0x38] sm:$0xf] }
  0x17   : > { %v747_v15 = vld [vmem:[%s7745_s14 + $0x38] sm:$0xf] }
  0x18   : > { %v954_v22 = vld [vmem:[%s7745_s14 + $0x38] sm:$0xf] }
  0x19   : > { %620 = vrot.lane.b32.xlu1 %v7755_v1, %s7635_s17  ;;  %618 = vrot.lane.b32.xlu0 %v7748_v0, %s7635_s17  ;;  %v885_v23 = vld [vmem:[%s7745_s14 + $0x38] sm:$0xf]  ;;  %s7648_s14 = smov 121  }
  0x1d   : > { %689 = vrot.lane.b32.xlu1 %v7755_v1, %s7636_s18  ;;  %687 = vrot.lane.b32.xlu0 %v7748_v0, %s7636_s18 }
  0x21   : > { %758 = vrot.lane.b32.xlu1 %v7755_v1, %s7637_s19  ;;  %756 = vrot.lane.b32.xlu0 %v7748_v0, %s7637_s19 }
  0x25   : > { %827 = vrot.lane.b32.xlu1 %v7755_v1, %s7638_s20  ;;  %825 = vrot.lane.b32.xlu0 %v7748_v0, %s7638_s20 }
  0x29   : > { %896 = vrot.lane.b32.xlu1 %v7755_v1, %s7639_s21  ;;  %894 = vrot.lane.b32.xlu0 %v7748_v0, %s7639_s21 }
  0x2d   : > { %965 = vrot.lane.b32.xlu1 %v7755_v1, %s7641_s22  ;;  %963 = vrot.lane.b32.xlu0 %v7748_v0, %s7641_s22 }
  0x31   : > { %553 = vrot.lane.b32.xlu1 %v7791_v3, %s7633_s15  ;;  %483 = vrot.lane.b32.xlu0 %v7791_v3, %s7634_s16 }
  0x35   : > { %691 = vrot.lane.b32.xlu1 %v7791_v3, %s7636_s18  ;;  %622 = vrot.lane.b32.xlu0 %v7791_v3, %s7635_s17 }
  0x39   : > { %829 = vrot.lane.b32.xlu1 %v7791_v3, %s7638_s20  ;;  %760 = vrot.lane.b32.xlu0 %v7791_v3, %s7637_s19 }
  0x3d   : > { %967 = vrot.lane.b32.xlu1 %v7791_v3, %s7641_s22  ;;  %898 = vrot.lane.b32.xlu0 %v7791_v3, %s7639_s21 }
  0x41   : > { %487 = vrot.lane.b32.xlu1 %v7810_v4, %s7634_s16  ;;  %485 = vrot.lane.b32.xlu0 %v7813_v5, %s7634_s16 }
  0x45   : > { %557 = vrot.lane.b32.xlu1 %v7810_v4, %s7633_s15  ;;  %555 = vrot.lane.b32.xlu0 %v7813_v5, %s7633_s15 }
  0x49   : > { %626 = vrot.lane.b32.xlu1 %v7810_v4, %s7635_s17  ;;  %624 = vrot.lane.b32.xlu0 %v7813_v5, %s7635_s17 }
  0x4d   : > { %695 = vrot.lane.b32.xlu1 %v7810_v4, %s7636_s18  ;;  %693 = vrot.lane.b32.xlu0 %v7813_v5, %s7636_s18 }
  0x51   : > { %764 = vrot.lane.b32.xlu1 %v7810_v4, %s7637_s19  ;;  %762 = vrot.lane.b32.xlu0 %v7813_v5, %s7637_s19 }
  0x55   : > { %833 = vrot.lane.b32.xlu1 %v7810_v4, %s7638_s20  ;;  %831 = vrot.lane.b32.xlu0 %v7813_v5, %s7638_s20 }
  0x59   : > { %902 = vrot.lane.b32.xlu1 %v7810_v4, %s7639_s21  ;;  %900 = vrot.lane.b32.xlu0 %v7813_v5, %s7639_s21 }
  0x5d   : > { %971 = vrot.lane.b32.xlu1 %v7810_v4, %s7641_s22  ;;  %969 = vrot.lane.b32.xlu0 %v7813_v5, %s7641_s22 }
  0x61   : > { %491 = vrot.lane.b32.xlu1 %v7852_v6, %s7634_s16  ;;  %489 = vrot.lane.b32.xlu0 %v7855_v7, %s7634_s16 }
  0x65   : > { %561 = vrot.lane.b32.xlu1 %v7852_v6, %s7633_s15  ;;  %559 = vrot.lane.b32.xlu0 %v7855_v7, %s7633_s15 }
  0x69   : > { %630 = vrot.lane.b32.xlu1 %v7852_v6, %s7635_s17  ;;  %628 = vrot.lane.b32.xlu0 %v7855_v7, %s7635_s17 }
  0x6d   : > { %699 = vrot.lane.b32.xlu1 %v7852_v6, %s7636_s18  ;;  %697 = vrot.lane.b32.xlu0 %v7855_v7, %s7636_s18 }
  0x71   : > { %768 = vrot.lane.b32.xlu1 %v7852_v6, %s7637_s19  ;;  %766 = vrot.lane.b32.xlu0 %v7855_v7, %s7637_s19 }
  0x75   : > { %837 = vrot.lane.b32.xlu1 %v7852_v6, %s7638_s20  ;;  %835 = vrot.lane.b32.xlu0 %v7855_v7, %s7638_s20 }
  0x79   : > { %906 = vrot.lane.b32.xlu1 %v7852_v6, %s7639_s21  ;;  %904 = vrot.lane.b32.xlu0 %v7855_v7, %s7639_s21 }
  0x7d   : > { %975 = vrot.lane.b32.xlu1 %v7852_v6, %s7641_s22  ;;  %973 = vrot.lane.b32.xlu0 %v7855_v7, %s7641_s22 }
  0x81   : > { %563 = vrot.lane.b32.xlu1 %v540_v8, %s7633_s15  ;;  %493 = vrot.lane.b32.xlu0 %v470_v9, %s7634_s16 }
  0x83   : > { %v550_v12 = vpop.permute.xlu1 %549  ;;  %v480_v13 = vpop.permute.xlu0 %479 }
  0x84   : > { %v565_v16 = vrot.slane %v550_v12, 4  ;;  %v495_v19 = vrot.slane %v480_v13, 4 }
  0x85   : > { %701 = vrot.lane.b32.xlu1 %v678_v10, %s7636_s18  ;;  %632 = vrot.lane.b32.xlu0 %v609_v11, %s7635_s17 }
  0x87   : > { %v7899_v17 = vpop.permute.xlu1 %551  ;;  %v7901_v18 = vpop.permute.xlu0 %481 }
  0x88   : > { %v566_v20 = vrot.slane %v7899_v17, 4  ;;  %v496_v21 = vrot.slane %v7901_v18, 4 }
  0x89   : > { %839 = vrot.lane.b32.xlu1 %v816_v14, %s7638_s20  ;;  %770 = vrot.lane.b32.xlu0 %v747_v15, %s7637_s19 }
  0x8a   : > { %v504_v24 = vsel %vm503_vm0, %v495_v19, %v496_v21  ;;  %v573_v28 = vsel %vm503_vm0, %v565_v16, %v566_v20 }
  0x8b   : > { %v7912_v25 = vpop.permute.xlu1 %620  ;;  %v619_v26 = vpop.permute.xlu0 %618  ;;  %v506_v27 = vsel %vm505_vm1, %v480_v13, %v504_v24  ;;  %v575_v38 = vsel %vm574_vm3, %v550_v12, %v573_v28 }
  0x8c   : > { %v635_v29 = vrot.slane %v7912_v25, 4  ;;  %v634_v30 = vrot.slane %v619_v26, 4  ;;  %v6694_v31 = vcombine.high %v7748_v0, %v506_v27  ;;  %v6693_v32 = vcombine.low %v7748_v0, %v506_v27 }
  0x8d   : > { %977 = vrot.lane.b32.xlu1 %v954_v22, %s7641_s22  ;;  %908 = vrot.lane.b32.xlu0 %v885_v23, %s7639_s21 }
  0x8e   : > { %v642_v33 = vsel %vm503_vm0, %v634_v30, %v635_v29  ;;  %1448 = vmatprep.subr.bf16.mxu1 %v6694_v31 }
  0x8f   : > { %v644_v35 = vsel %vm643_vm2, %v619_v26, %v642_v33  ;;  %v7930_v36 = vpop.permute.xlu1 %689  ;;  %v688_v37 = vpop.permute.xlu0 %687  ;;  %1449 = vmatpush1.bf16.msra.mxu1 %v6693_v32  ;;  %v7982_v32 = vld [vmem:[%s10000_s1] sm:$0xf] }
  0x90   : > { %v704_v39 = vrot.slane %v7930_v36, 4  ;;  %v703_v40 = vrot.slane %v688_v37, 4  ;;  %v6708_v41 = vcombine.high %v575_v38, %v644_v35  ;;  %v6707_v42 = vcombine.low %v575_v38, %v644_v35 }
  0x91   : > { %1083 = vperm.xlu0 %7391, %v1080_v34  }
  0x92   : > { %1450 = vmatprep.subr.bf16.mxu1 %v6708_v41  ;;  %v711_v45 = vsel %vm503_vm0, %v703_v40, %v704_v39 }
  0x93   : > { %v7934_v43 = vpop.permute.xlu1 %758  ;;  %v757_v44 = vpop.permute.xlu0 %756  ;;  %1451 = vmatpush1.bf16.msra.mxu1 %v6707_v42  ;;  %v713_v49 = vsel %vm712_vm4, %v688_v37, %v711_v45 }
  0x94   : > { %v773_v46 = vrot.slane %v7934_v43, 4  ;;  %v772_v47 = vrot.slane %v757_v44, 4 }
  0x96   : > { %v780_v48 = vsel %vm503_vm0, %v772_v47, %v773_v46 }
  0x97   : > { %v782_v50 = vsel %vm781_vm5, %v757_v44, %v780_v48  ;;  %v7945_v51 = vpop.permute.xlu1 %827  ;;  %v826_v52 = vpop.permute.xlu0 %825 }
  0x98   : > { %v842_v53 = vrot.slane %v7945_v51, 4  ;;  %v841_v54 = vrot.slane %v826_v52, 4  ;;  %v6722_v55 = vcombine.high %v713_v49, %v782_v50  ;;  %v6721_v56 = vcombine.low %v713_v49, %v782_v50 }
  0x9a   : > { %1452 = vmatprep.subr.bf16.mxu1 %v6722_v55  ;;  %v849_v59 = vsel %vm503_vm0, %v841_v54, %v842_v53 }
  0x9b   : > { %v7948_v57 = vpop.permute.xlu1 %896  ;;  %v895_v58 = vpop.permute.xlu0 %894  ;;  %1453 = vmatpush1.bf16.msra.mxu1 %v6721_v56  ;;  %v851_v63 = vsel %vm850_vm6, %v826_v52, %v849_v59 }
  0x9c   : > { %v911_v60 = vrot.slane %v7948_v57, 4  ;;  %v910_v61 = vrot.slane %v895_v58, 4 }
  0x9e   : > { %v918_v62 = vsel %vm503_vm0, %v910_v61, %v911_v60 }
  0x9f   : > { %v920_v0 = vsel %vm919_vm7, %v895_v58, %v918_v62  ;;  %v7959_v8 = vpop.permute.xlu1 %965  ;;  %v964_v9 = vpop.permute.xlu0 %963 }
  0xa0   : > { %v980_v10 = vrot.slane %v7959_v8, 4  ;;  %v979_v11 = vrot.slane %v964_v9, 4  ;;  %v6736_v12 = vcombine.high %v851_v63, %v920_v0  ;;  %v6735_v13 = vcombine.low %v851_v63, %v920_v0 }
  0xa2   : > { %v987_v14 = vsel %vm503_vm0, %v979_v11, %v980_v10  ;;  %1454 = vmatprep.subr.bf16.mxu1 %v6736_v12 }
  0xa3   : > { %v989_v15 = vsel %vm988_vm8, %v964_v9, %v987_v14  ;;  %v7964_v16 = vpop.permute.xlu1 %553  ;;  %v7966_v19 = vpop.permute.xlu0 %483  ;;  %1455 = vmatpush1.bf16.msra.mxu1 %v6735_v13 }
  0xa4   : > { %v6750_v22 = vcombine.high %v989_v15, %v989_v15  ;;  %v567_v23 = vrot.slane %v7964_v16, 4  ;;  %v497_v24 = vrot.slane %v7966_v19, 4  ;;  %v6749_v26 = vcombine.low %v989_v15, %v989_v15 }
  0xa6   : > { %6763 = vmatprep.subr.msk.bf16.mxu1 %vm503_vm0, %v6750_v22  ;;  %v1407_v27 = vsel %vm503_vm0, %v6749_v26, 0  ;;  %v507_v28 = vsel %vm503_vm0, %v496_v21, %v497_v24  ;;  %v576_v34 = vsel %vm503_vm0, %v566_v20, %v567_v23 }
  0xa7   : > { %v7975_v30 = vpop.permute.xlu1 %691  ;;  %v7977_v31 = vpop.permute.xlu0 %622  ;;  %1457 = vmatpush1.bf16.msra.mxu1 %v1407_v27  ;;  %v508_v33 = vsel %vm505_vm1, %v7901_v18, %v507_v28  ;;  %v577_v41 = vsel %vm574_vm3, %v7899_v17, %v576_v34 }
  0xa8   : > { %v705_v21 = vrot.slane %v7975_v30, 4  ;;  %v636_v35 = vrot.slane %v7977_v31, 4  ;;  %v6695_v37 = vcombine.low %v7755_v1, %v508_v33  ;;  %v6696_v38 = vcombine.high %v7755_v1, %v508_v33 }
  0xaa   : > { %6764 = vmatmul.mubr.msk.bf16.vlgmr.msra.gmra.mrb[0].mxu1 %vm850_vm6, %v7982_v32  ;;  %1489 = vmatprep.subr.bf16.mxu1 %v6696_v38  ;;  %v645_v18 = vsel %vm503_vm0, %v635_v29, %v636_v35  ;;  %v714_v42 = vsel %vm503_vm0, %v704_v39, %v705_v21 }
  0xab   : > { %v8002_v40 = vpop.permute.xlu1 %829  ;;  %v8004_v20 = vpop.permute.xlu0 %760  ;;  %1490 = vmatpush1.bf16.msra.mxu1 %v6695_v37  ;;  %v646_v1 = vsel %vm643_vm2, %v7912_v25, %v645_v18  ;;  %1521 = vmatprep.mubr.bf16.mxu1 %v7640_v2  ;;  %v715_v39 = vsel %vm712_vm4, %v7930_v36, %v714_v42 }
  0xac   : > { %v843_v29 = vrot.slane %v8002_v40, 4  ;;  %v774_v44 = vrot.slane %v8004_v20, 4  ;;  %v6709_v45 = vcombine.low %v577_v41, %v646_v1  ;;  %v6710_v47 = vcombine.high %v577_v41, %v646_v1 }
  0xae   : > { %1491 = vmatprep.subr.bf16.mxu1 %v6710_v47  ;;  %v783_v17 = vsel %vm503_vm0, %v773_v46, %v774_v44  ;;  %v852_v50 = vsel %vm503_vm0, %v842_v53, %v843_v29 }
  0xaf   : > { %v8023_v25 = vpop.permute.xlu1 %967  ;;  %v8025_v48 = vpop.permute.xlu0 %898  ;;  %1492 = vmatpush1.bf16.msra.mxu1 %v6709_v45  ;;  %v784_v49 = vsel %vm781_vm5, %v7934_v43, %v783_v17  ;;  %v853_v58 = vsel %vm850_vm6, %v7945_v51, %v852_v50 }
  0xb0   : > { %v981_v52 = vrot.slane %v8023_v25, 4  ;;  %v912_v46 = vrot.slane %v8025_v48, 4  ;;  %v6723_v54 = vcombine.low %v715_v39, %v784_v49  ;;  %v6724_v55 = vcombine.high %v715_v39, %v784_v49 }
  0xb2   : > { %v990_v56 = vsel %vm503_vm0, %v980_v10, %v981_v52  ;;  %1493 = vmatprep.subr.bf16.mxu1 %v6724_v55  ;;  %v921_v36 = vsel %vm503_vm0, %v911_v60, %v912_v46 }
  0xb3   : > { %v8046_v43 = vpop.permute.xlu1 %487  ;;  %v486_v53 = vpop.permute.xlu0 %485  ;;  %1494 = vmatpush1.bf16.msra.mxu1 %v6723_v54  ;;  %v922_v59 = vsel %vm919_vm7, %v7948_v57, %v921_v36  ;;  %v991_v61 = vsel %vm988_vm8, %v7959_v8, %v990_v56 }
  0xb4   : > { %v499_v62 = vrot.slane %v8046_v43, 4  ;;  %v498_v63 = vrot.slane %v486_v53, 4  ;;  %v6737_v0 = vcombine.low %v853_v58, %v922_v59  ;;  %v6738_v9 = vcombine.high %v853_v58, %v922_v59 }
  0xb5   : > { %v6752_v10 = vcombine.high %v991_v61, %v991_v61  ;;  %v6751_v51 = vcombine.low %v991_v61, %v991_v61 }
  0xb6   : > { %v511_v60 = vsel %vm503_vm0, %v498_v63, %v499_v62  ;;  %1495 = vmatprep.subr.bf16.mxu1 %v6738_v9  ;;  %v509_v11 = vsel %vm503_vm0, %v497_v24, %v498_v63 }
  0xb7   : > { %v512_v12 = vsel %vm505_vm1, %v486_v53, %v511_v60  ;;  %v8060_v57 = vpop.permute.xlu1 %557  ;;  %v556_v13 = vpop.permute.xlu0 %555  ;;  %1496 = vmatpush1.bf16.msra.mxu1 %v6737_v0  ;;  %v510_v8 = vsel %vm505_vm1, %v7966_v19, %v509_v11  ;;  %v1413_v24 = vsel %vm503_vm0, %v6751_v51, 0 }
  0xb8   : > { %v569_v14 = vrot.slane %v8060_v57, 4  ;;  %v568_v15 = vrot.slane %v556_v13, 4  ;;  %6765 = vmatprep.subr.msk.bf16.mxu1 %vm503_vm0, %v6752_v10  ;;  %v6698_v22 = vcombine.high %v7791_v3, %v510_v8  ;;  %v6697_v26 = vcombine.low %v7791_v3, %v510_v8 }
  0xb9   : > { %v6700_v27 = vcombine.high %v7813_v5, %v512_v12  ;;  %v6699_v38 = vcombine.low %v7813_v5, %v512_v12 }
  0xba   : > { %1530 = vmatprep.subr.bf16.mxu0 %v6698_v22  ;;  %v580_v28 = vsel %vm503_vm0, %v568_v15, %v569_v14  ;;  %v578_v3 = vsel %vm503_vm0, %v567_v23, %v568_v15 }
  0xbb   : > { %v8073_v33 = vpop.permute.xlu1 %626  ;;  %v625_v19 = vpop.permute.xlu0 %624  ;;  %1498 = vmatpush1.bf16.msra.mxu1 %v1413_v24  ;;  %1531 = vmatpush1.bf16.msra.mxu0 %v6697_v26  ;;  %v581_v18 = vsel %vm574_vm3, %v556_v13, %v580_v28  ;;  %v579_v5 = vsel %vm574_vm3, %v7964_v16, %v578_v3 }
  0xbc   : > { %v638_v34 = vrot.slane %v8073_v33, 4  ;;  %v637_v37 = vrot.slane %v625_v19, 4  ;;  %1571 = vmatprep.subr.bf16.mxu1 %v6700_v27 }
  0xbe   : > { %v649_v41 = vsel %vm503_vm0, %v637_v37, %v638_v34  ;;  %6766 = vmatmul.mubr.msk.bf16.vlgmr.msra.gmra.mrb[4].mxu1 %vm850_vm6, %v7982_v32  ;;  %v647_v1 = vsel %vm503_vm0, %v636_v35, %v637_v37 }
  0xbf   : > { %v650_v42 = vsel %vm643_vm2, %v625_v19, %v649_v41  ;;  %v8090_v45 = vpop.permute.xlu1 %695  ;;  %v694_v23 = vpop.permute.xlu0 %693  ;;  %1572 = vmatpush1.bf16.msra.mxu1 %v6699_v38  ;;  %v648_v47 = vsel %vm643_vm2, %v7977_v31, %v647_v1  ;;  %1603 = vmatprep.mubr.bf16.mxu1 %v7640_v2 }
  0xc0   : > { %v6713_v17 = vcombine.low %v581_v18, %v650_v42  ;;  %v707_v39 = vrot.slane %v8090_v45, 4  ;;  %v706_v49 = vrot.slane %v694_v23, 4  ;;  %v6712_v50 = vcombine.high %v579_v5, %v648_v47 }
  0xc1   : > { %v6714_v35 = vcombine.high %v581_v18, %v650_v42  ;;  %v6711_v54 = vcombine.low %v579_v5, %v648_v47 }
  0xc2   : > { %1532 = vmatprep.subr.bf16.mxu0 %v6712_v50  ;;  %v718_v16 = vsel %vm503_vm0, %v706_v49, %v707_v39  ;;  %v716_v53 = vsel %vm503_vm0, %v705_v21, %v706_v49 }
  0xc3   : > { %1573 = vmatprep.subr.bf16.mxu1 %v6714_v35  ;;  %v8098_v55 = vpop.permute.xlu1 %764  ;;  %v763_v56 = vpop.permute.xlu0 %762  ;;  %1533 = vmatpush1.bf16.msra.mxu0 %v6711_v54  ;;  %v719_v61 = vsel %vm712_vm4, %v694_v23, %v718_v16  ;;  %v717_v60 = vsel %vm712_vm4, %v7975_v30, %v716_v53 }
  0xc4   : > { %v776_v31 = vrot.slane %v8098_v55, 4  ;;  %v775_v36 = vrot.slane %v763_v56, 4  ;;  %1574 = vmatpush1.bf16.msra.mxu1 %v6713_v17 }
  0xc6   : > { %v787_v58 = vsel %vm503_vm0, %v775_v36, %v776_v31  ;;  %v785_v59 = vsel %vm503_vm0, %v774_v44, %v775_v36 }
  0xc7   : > { %v788_v63 = vsel %vm781_vm5, %v763_v56, %v787_v58  ;;  %v8115_v0 = vpop.permute.xlu1 %833  ;;  %v832_v9 = vpop.permute.xlu0 %831  ;;  %v786_v21 = vsel %vm781_vm5, %v8004_v20, %v785_v59 }
  0xc8   : > { %v6727_v10 = vcombine.low %v719_v61, %v788_v63  ;;  %v845_v11 = vrot.slane %v8115_v0, 4  ;;  %v844_v51 = vrot.slane %v832_v9, 4  ;;  %v6726_v12 = vcombine.high %v717_v60, %v786_v21 }
  0xc9   : > { %v6728_v13 = vcombine.high %v719_v61, %v788_v63  ;;  %v6725_v44 = vcombine.low %v717_v60, %v786_v21 }
  0xca   : > { %1534 = vmatprep.subr.bf16.mxu0 %v6726_v12  ;;  %v856_v30 = vsel %vm503_vm0, %v844_v51, %v845_v11  ;;  %v854_v26 = vsel %vm503_vm0, %v843_v29, %v844_v51 }
  0xcb   : > { %1575 = vmatprep.subr.bf16.mxu1 %v6728_v13  ;;  %v8122_v8 = vpop.permute.xlu1 %902  ;;  %v901_v15 = vpop.permute.xlu0 %900  ;;  %1535 = vmatpush1.bf16.msra.mxu0 %v6725_v44  ;;  %v857_v28 = vsel %vm850_vm6, %v832_v9, %v856_v30  ;;  %v855_v38 = vsel %vm850_vm6, %v8002_v40, %v854_v26 }
  0xcc   : > { %v914_v22 = vrot.slane %v8122_v8, 4  ;;  %v913_v20 = vrot.slane %v901_v15, 4  ;;  %1576 = vmatpush1.bf16.msra.mxu1 %v6727_v10 }
  0xce   : > { %v925_v24 = vsel %vm503_vm0, %v913_v20, %v914_v22  ;;  %v923_v27 = vsel %vm503_vm0, %v912_v46, %v913_v20 }
  0xcf   : > { %v926_v19 = vsel %vm919_vm7, %v901_v15, %v925_v24  ;;  %v8139_v37 = vpop.permute.xlu1 %971  ;;  %v970_v3 = vpop.permute.xlu0 %969  ;;  %v924_v29 = vsel %vm919_vm7, %v8025_v48, %v923_v27 }
  0xd0   : > { %v6741_v18 = vcombine.low %v857_v28, %v926_v19  ;;  %v983_v41 = vrot.slane %v8139_v37, 4  ;;  %v982_v1 = vrot.slane %v970_v3, 4  ;;  %v6740_v42 = vcombine.high %v855_v38, %v924_v29 }
  0xd1   : > { %v6742_v23 = vcombine.high %v857_v28, %v926_v19  ;;  %v6739_v46 = vcombine.low %v855_v38, %v924_v29 }
  0xd2   : > { %v992_v5 = vsel %vm503_vm0, %v981_v52, %v982_v1  ;;  %v994_v47 = vsel %vm503_vm0, %v982_v1, %v983_v41  ;;  %1536 = vmatprep.subr.bf16.mxu0 %v6740_v42 }
  0xd3   : > { %v995_v40 = vsel %vm988_vm8, %v970_v3, %v994_v47  ;;  %1577 = vmatprep.subr.bf16.mxu1 %v6742_v23  ;;  %v8153_v48 = vpop.permute.xlu1 %491  ;;  %v490_v17 = vpop.permute.xlu0 %489  ;;  %1537 = vmatpush1.bf16.msra.mxu0 %v6739_v46  ;;  %v993_v49 = vsel %vm988_vm8, %v8023_v25, %v992_v5 }
  0xd4   : > { %v6755_v50 = vcombine.low %v995_v40, %v995_v40  ;;  %v6756_v35 = vcombine.high %v995_v40, %v995_v40  ;;  %v501_v54 = vrot.slane %v8153_v48, 4  ;;  %v500_v52 = vrot.slane %v490_v17, 4  ;;  %1578 = vmatpush1.bf16.msra.mxu1 %v6741_v18 }
  0xd5   : > { %v6754_v56 = vcombine.high %v993_v49, %v993_v49  ;;  %v6753_v16 = vcombine.low %v993_v49, %v993_v49 }
  0xd6   : > { %v515_v36 = vsel %vm503_vm0, %v500_v52, %v501_v54  ;;  %6769 = vmatprep.subr.msk.bf16.mxu1 %vm503_vm0, %v6756_v35  ;;  %v1425_v53 = vsel %vm503_vm0, %v6755_v50, 0  ;;  %v513_v25 = vsel %vm503_vm0, %v499_v62, %v500_v52 }
  0xd7   : > { %v516_v58 = vsel %vm505_vm1, %v490_v17, %v515_v36  ;;  %6767 = vmatprep.subr.msk.bf16.mxu0 %vm503_vm0, %v6754_v56  ;;  %v8168_v59 = vpop.permute.xlu1 %561  ;;  %v560_v61 = vpop.permute.xlu0 %559  ;;  %v1419_v63 = vsel %vm503_vm0, %v6753_v16, 0  ;;  %v514_v9 = vsel %vm505_vm1, %v8046_v43, %v513_v25 }
  0xd8   : > { %v571_v60 = vrot.slane %v8168_v59, 4  ;;  %v570_v21 = vrot.slane %v560_v61, 4  ;;  %1539 = vmatpush1.bf16.msra.mxu0 %v1419_v63  ;;  %1580 = vmatpush1.bf16.msra.mxu1 %v1425_v53  ;;  %v6703_v10 = vcombine.low %v7855_v7, %v516_v58  ;;  %v6701_v62 = vcombine.low %v7810_v4, %v514_v9 }
  0xd9   : > { %v6702_v51 = vcombine.high %v7810_v4, %v514_v9  ;;  %v6704_v12 = vcombine.high %v7855_v7, %v516_v58 }
  0xda   : > { %v584_v44 = vsel %vm503_vm0, %v570_v21, %v571_v60  ;;  %v582_v7 = vsel %vm503_vm0, %v569_v14, %v570_v21 }
  0xdb   : > { %6768 = vmatmul.mubr.msk.bf16.vlgmr.msra.gmra.mrb[0].mxu0 %vm850_vm6, %v7982_v32  ;;  %6770 = vmatmul.mubr.msk.bf16.vlgmr.msra.gmra.mrb[8].mxu1 %vm850_vm6, %v7982_v32  ;;  %v8182_v43 = vpop.permute.xlu1 %630  ;;  %v629_v13 = vpop.permute.xlu0 %628  ;;  %v585_v26 = vsel %vm574_vm3, %v560_v61, %v584_v44  ;;  %v583_v28 = vsel %vm574_vm3, %v8060_v57, %v582_v7 }
  0xdc   : > { %1612 = vmatprep.subr.bf16.mxu0 %v6702_v51  ;;  %1653 = vmatprep.subr.bf16.mxu1 %v6704_v12  ;;  %v640_v15 = vrot.slane %v8182_v43, 4  ;;  %v639_v4 = vrot.slane %v629_v13, 4 }
  0xdd   : > { %1613 = vmatpush1.bf16.msra.mxu0 %v6701_v62  ;;  %1654 = vmatpush1.bf16.msra.mxu1 %v6703_v10 }
  0xde   : > { %v653_v30 = vsel %vm503_vm0, %v639_v4, %v640_v15  ;;  %v651_v20 = vsel %vm503_vm0, %v638_v34, %v639_v4  ;;  %1644 = vmatprep.mubr.bf16.mxu0 %v7640_v2  ;;  %1685 = vmatprep.mubr.bf16.mxu1 %v7640_v2 }
  0xdf   : > { %v654_v24 = vsel %vm643_vm2, %v629_v13, %v653_v30  ;;  %v8201_v27 = vpop.permute.xlu1 %699  ;;  %v698_v14 = vpop.permute.xlu0 %697  ;;  %v652_v19 = vsel %vm643_vm2, %v8073_v33, %v651_v20 }
  0xe0   : > { %v6717_v3 = vcombine.low %v585_v26, %v654_v24  ;;  %v709_v34 = vrot.slane %v8201_v27, 4  ;;  %v708_v38 = vrot.slane %v698_v14, 4  ;;  %v6715_v29 = vcombine.low %v583_v28, %v652_v19 }
  0xe1   : > { %v6716_v18 = vcombine.high %v583_v28, %v652_v19  ;;  %v6718_v1 = vcombine.high %v585_v26, %v654_v24 }
  0xe2   : > { %v722_v46 = vsel %vm503_vm0, %v708_v38, %v709_v34  ;;  %v720_v33 = vsel %vm503_vm0, %v707_v39, %v708_v38 }
  0xe3   : > { %1614 = vmatprep.subr.bf16.mxu0 %v6716_v18  ;;  %1655 = vmatprep.subr.bf16.mxu1 %v6718_v1  ;;  %v8208_v42 = vpop.permute.xlu1 %768  ;;  %v767_v23 = vpop.permute.xlu0 %766  ;;  %v723_v17 = vsel %vm712_vm4, %v698_v14, %v722_v46  ;;  %v721_v52 = vsel %vm712_vm4, %v8090_v45, %v720_v33 }
  0xe4   : > { %v778_v57 = vrot.slane %v8208_v42, 4  ;;  %v777_v5 = vrot.slane %v767_v23, 4  ;;  %1615 = vmatpush1.bf16.msra.mxu0 %v6715_v29  ;;  %1656 = vmatpush1.bf16.msra.mxu1 %v6717_v3 }
  0xe6   : > { %v791_v47 = vsel %vm503_vm0, %v777_v5, %v778_v57  ;;  %v789_v40 = vsel %vm503_vm0, %v776_v31, %v777_v5 }
  0xe7   : > { %v792_v49 = vsel %vm781_vm5, %v767_v23, %v791_v47  ;;  %v8225_v50 = vpop.permute.xlu1 %837  ;;  %v836_v35 = vpop.permute.xlu0 %835  ;;  %v790_v39 = vsel %vm781_vm5, %v8098_v55, %v789_v40 }
  0xe8   : > { %v6731_v56 = vcombine.low %v723_v17, %v792_v49  ;;  %v847_v16 = vrot.slane %v8225_v50, 4  ;;  %v846_v36 = vrot.slane %v836_v35, 4  ;;  %v6729_v53 = vcombine.low %v721_v52, %v790_v39 }
  0xe9   : > { %v6730_v25 = vcombine.high %v721_v52, %v790_v39  ;;  %v6732_v31 = vcombine.high %v723_v17, %v792_v49 }
  0xea   : > { %v860_v63 = vsel %vm503_vm0, %v846_v36, %v847_v16  ;;  %v858_v55 = vsel %vm503_vm0, %v845_v11, %v846_v36 }
  0xeb   : > { %1616 = vmatprep.subr.bf16.mxu0 %v6730_v25  ;;  %1657 = vmatprep.subr.bf16.mxu1 %v6732_v31  ;;  %v8232_v58 = vpop.permute.xlu1 %906  ;;  %v905_v61 = vpop.permute.xlu0 %904  ;;  %v861_v62 = vsel %vm850_vm6, %v836_v35, %v860_v63  ;;  %v859_v44 = vsel %vm850_vm6, %v8115_v0, %v858_v55 }
  0xec   : > { %v916_v45 = vrot.slane %v8232_v58, 4  ;;  %v915_v9 = vrot.slane %v905_v61, 4  ;;  %1617 = vmatpush1.bf16.msra.mxu0 %v6729_v53  ;;  %1658 = vmatpush1.bf16.msra.mxu1 %v6731_v56 }
  0xee   : > { %v929_v21 = vsel %vm503_vm0, %v915_v9, %v916_v45  ;;  %v927_v10 = vsel %vm503_vm0, %v914_v22, %v915_v9 }
  0xef   : > { %v930_v51 = vsel %vm919_vm7, %v905_v61, %v929_v21  ;;  %v8249_v12 = vpop.permute.xlu1 %975  ;;  %v974_v13 = vpop.permute.xlu0 %973  ;;  %v928_v11 = vsel %vm919_vm7, %v8122_v8, %v927_v10 }
  0xf0   : > { %v6745_v4 = vcombine.low %v861_v62, %v930_v51  ;;  %v985_v7 = vrot.slane %v8249_v12, 4  ;;  %v984_v30 = vrot.slane %v974_v13, 4  ;;  %v6743_v20 = vcombine.low %v859_v44, %v928_v11 }
  0xf1   : > { %v6744_v26 = vcombine.high %v859_v44, %v928_v11  ;;  %v6746_v22 = vcombine.high %v861_v62, %v930_v51  ;;  %v1833_v62 = vld [vmem:[#allocation3 + $0x38] sm:$0xf] }
  0xf2   : > { %v996_v24 = vsel %vm503_vm0, %v983_v41, %v984_v30  ;;  %v998_v14 = vsel %vm503_vm0, %v984_v30, %v985_v7  ;;  %1856 = vrot.lane.b32.xlu1 %v1833_v62, %s7634_s16  ;;  %v1901_v11 = vld [vmem:[#allocation3 + $0x38] sm:$0xf] }
  0xf3   : > { %v999_v0 = vsel %vm988_vm8, %v974_v13, %v998_v14  ;;  %1618 = vmatprep.subr.bf16.mxu0 %v6744_v26  ;;  %1659 = vmatprep.subr.bf16.mxu1 %v6746_v22  ;;  %v564_v8 = vpop.permute.xlu1 %563  ;;  %v494_v28 = vpop.permute.xlu0 %493  ;;  %v997_v19 = vsel %vm988_vm8, %v8139_v37, %v996_v24 }
  0xf4   : > { %v6759_v3 = vcombine.low %v999_v0, %v999_v0  ;;  %v6760_v38 = vcombine.high %v999_v0, %v999_v0  ;;  %v572_v29 = vrot.slane %v564_v8, 4  ;;  %v502_v18 = vrot.slane %v494_v28, 4  ;;  %1619 = vmatpush1.bf16.msra.mxu0 %v6743_v20  ;;  %1660 = vmatpush1.bf16.msra.mxu1 %v6745_v4 }
  0xf5   : > { %v6758_v41 = vcombine.high %v997_v19, %v997_v19  ;;  %v6757_v1 = vcombine.low %v997_v19, %v997_v19 }
  0xf6   : > { %v517_v23 = vsel %vm503_vm0, %v501_v54, %v502_v18  ;;  %6773 = vmatprep.subr.msk.bf16.mxu1 %vm503_vm0, %v6760_v38  ;;  %v1437_v46 = vsel %vm503_vm0, %v6759_v3, 0  ;;  %v586_v37 = vsel %vm503_vm0, %v571_v60, %v572_v29  ;;  %1924 = vrot.lane.b32.xlu1 %v1901_v11, %s7633_s15 }
  0xf7   : > { %6771 = vmatprep.subr.msk.bf16.mxu0 %vm503_vm0, %v6758_v41  ;;  %v702_v5 = vpop.permute.xlu1 %701  ;;  %v633_v33 = vpop.permute.xlu0 %632  ;;  %v1431_v47 = vsel %vm503_vm0, %v6757_v1, 0  ;;  %v518_v40 = vsel %vm505_vm1, %v8153_v48, %v517_v23 }
  0xf8   : > { %v710_v17 = vrot.slane %v702_v5, 4  ;;  %v641_v49 = vrot.slane %v633_v33, 4  ;;  %1621 = vmatpush1.bf16.msra.mxu0 %v1431_v47  ;;  %1662 = vmatpush1.bf16.msra.mxu1 %v1437_v46  ;;  %v6705_v54 = vcombine.low %v7852_v6, %v518_v40  ;;  %v6706_v35 = vcombine.high %v7852_v6, %v518_v40 }
  0xf9   : > { %v587_v6 = vsel %vm574_vm3, %v8168_v59, %v586_v37 }
  0xfa   : > { %v655_v60 = vsel %vm503_vm0, %v640_v15, %v641_v49  ;;  %1694 = vmatprep.subr.bf16.mxu0 %v6706_v35  ;;  %v724_v52 = vsel %vm503_vm0, %v709_v34, %v710_v17 }
  0xfb   : > { %6772 = vmatmul.mubr.msk.bf16.vlgmr.msra.gmra.mrb[4].mxu0 %vm850_vm6, %v7982_v32  ;;  %6774 = vmatmul.mubr.msk.bf16.vlgmr.msra.gmra.mrb[12].mxu1 %vm850_vm6, %v7982_v32  ;;  %v840_v48 = vpop.permute.xlu1 %839  ;;  %v771_v39 = vpop.permute.xlu0 %770  ;;  %v656_v56 = vsel %vm643_vm2, %v8182_v43, %v655_v60  ;;  %v725_v61 = vsel %vm712_vm4, %v8201_v27, %v724_v52 }
  0xfc   : > { %v848_v15 = vrot.slane %v840_v48, 4  ;;  %v779_v36 = vrot.slane %v771_v39, 4  ;;  %1695 = vmatpush1.bf16.msra.mxu0 %v6705_v54  ;;  %v6719_v53 = vcombine.low %v587_v6, %v656_v56  ;;  %v6720_v25 = vcombine.high %v587_v6, %v656_v56  ;;  %1726 = vmatprep.mubr.bf16.mxu0 %v7640_v2 }
  0xfd   : > { %2832 = vmatprep.mubr.bf16.mxu1 %v7640_v2 }
  0xfe   : > { %v793_v34 = vsel %vm503_vm0, %v778_v57, %v779_v36  ;;  %1696 = vmatprep.subr.bf16.mxu0 %v6720_v25  ;;  %v862_v59 = vsel %vm503_vm0, %v847_v16, %v848_v15 }
  0xff   : > { %v978_v31 = vpop.permute.xlu1 %977  ;;  %v909_v43 = vpop.permute.xlu0 %908  ;;  %v794_v63 = vsel %vm781_vm5, %v8208_v42, %v793_v34  ;;  %v863_v27 = vsel %vm850_vm6, %v8225_v50, %v862_v59 }
 0x100   : > { %v986_v9 = vrot.slane %v978_v31, 4  ;;  %v917_v55 = vrot.slane %v909_v43, 4  ;;  %1697 = vmatpush1.bf16.msra.mxu0 %v6719_v53  ;;  %v6733_v21 = vcombine.low %v725_v61, %v794_v63  ;;  %v6734_v10 = vcombine.high %v725_v61, %v794_v63 }
 0x102   : > { %v1000_v57 = vsel %vm503_vm0, %v985_v7, %v986_v9  ;;  %v931_v16 = vsel %vm503_vm0, %v916_v45, %v917_v55  ;;  %1698 = vmatprep.subr.bf16.mxu0 %v6734_v10  ;;  %v1969_v7 = vld [vmem:[#allocation3 + $0x38] sm:$0xf] }
 0x103   : > { %v932_v42 = vsel %vm919_vm7, %v8232_v58, %v931_v16  ;;  %v1001_v44 = vsel %vm988_vm8, %v8249_v12, %v1000_v57  ;;  %1992 = vrot.lane.b32.xlu1 %v1969_v7, %s7635_s17 }
 0x104   : > { %1699 = vmatpush1.bf16.msra.mxu0 %v6733_v21  ;;  %v6747_v51 = vcombine.low %v863_v27, %v932_v42  ;;  %v6748_v13 = vcombine.high %v863_v27, %v932_v42  ;;  %v6762_v4 = vcombine.high %v1001_v44, %v1001_v44  ;;  %v6761_v45 = vcombine.low %v1001_v44, %v1001_v44 }
 0x106   : > { %1700 = vmatprep.subr.bf16.mxu0 %v6748_v13  ;;  %v1443_v50 = vsel %vm503_vm0, %v6761_v45, 0 }
 0x108   : > { %1701 = vmatpush1.bf16.msra.mxu0 %v6747_v51 }
 0x109   : > { %6775 = vmatprep.subr.msk.bf16.mxu0 %vm503_vm0, %v6762_v4 }
 0x10c   : > { %1703 = vmatpush1.bf16.msra.mxu0 %v1443_v50 }
 0x10f   : > { %6776 = vmatmul.mubr.msk.bf16.vlgmr.msra.gmra.mrb[8].mxu0 %vm850_vm6, %v7982_v32 }
 0x110   : > { %2873 = vmatprep.mubr.bf16.mxu0 %v7640_v2  ;;  %v8325_v58 = vpop.permute.xlu0 %1083 }
 0x17d   : > { %v1482_v12 = vpop.f32.mrb[0].mxu1 }
 0x17e   : > { %v1483_v30 = vadd.f32 %v1482_v12, %v8325_v58  ;;  %v1484_v20 = vpop.f32.mrb[1].mxu1 }
 0x17f   : > { %v1485_v26 = vadd.f32 %v1484_v20, %v8325_v58  ;;  %v1486_v22 = vpop.f32.mrb[2].mxu1  ;;  %v2105_v20 = vld [vmem:[#allocation3 + $0x38] sm:$0xf] }
 0x180   : > { %v1735_v24 = vmax.f32 %v1483_v30, 0.0  ;;  %v1487_v14 = vpop.f32.mrb[3].mxu1  ;;  %v2037_v30 = vld [vmem:[#allocation3 + $0x38] sm:$0xf] }
 0x181   : > { %v1736_v0 = vmax.f32 %v1485_v26, 0.0  ;;  %v2173_v22 = vld [vmem:[#allocation3 + $0x38] sm:$0xf] }
 0x183   : > { %v8329_v8 = vpack.c.bf16 %v1736_v0, %v1735_v24  ;;  %v2241_v0 = vld [vmem:[#allocation3 + $0x38] sm:$0xf] }
 0x185   : > { %1910 = vrot.lane.b32.xlu0 %v8329_v8, %s7633_s15  ;;  %1842 = vrot.lane.b32.xlu1 %v8329_v8, %s7634_s16 }
 0x189   : > { %1978 = vrot.lane.b32.xlu0 %v8329_v8, %s7635_s17 }
 0x18d   : > { %2046 = vrot.lane.b32.xlu0 %v8329_v8, %s7636_s18 }
 0x191   : > { %v1523_v32 = vpop.f32.mrb[4].mxu1  ;;  %2114 = vrot.lane.b32.xlu0 %v8329_v8, %s7637_s19 }
 0x192   : > { %v1524_v28 = vadd.f32 %v1523_v32, %v8325_v58  ;;  %v1525_v19 = vpop.f32.mrb[5].mxu1 }
 0x193   : > { %v1526_v3 = vadd.f32 %v1525_v19, %v8325_v58  ;;  %v1527_v38 = vpop.f32.mrb[6].mxu1 }
 0x194   : > { %v1737_v29 = vmax.f32 %v1524_v28, 0.0  ;;  %v1528_v18 = vpop.f32.mrb[7].mxu1  ;;  %v2309_v28 = vld [vmem:[#allocation3 + $0x38] sm:$0xf] }
 0x195   : > { %v1738_v41 = vmax.f32 %v1526_v3, 0.0  ;;  %2182 = vrot.lane.b32.xlu0 %v8329_v8, %s7638_s20 }
 0x197   : > { %v8345_v1 = vpack.c.bf16 %v1738_v41, %v1737_v29 }
 0x199   : > { %2250 = vrot.lane.b32.xlu0 %v8329_v8, %s7639_s21  ;;  %1844 = vrot.lane.b32.xlu1 %v8345_v1, %s7634_s16 }
 0x19d   : > { %2318 = vrot.lane.b32.xlu0 %v8329_v8, %s7641_s22  ;;  %1912 = vrot.lane.b32.xlu1 %v8345_v1, %s7633_s15 }
 0x1a1   : > { %1980 = vrot.lane.b32.xlu1 %v8345_v1, %s7635_s17 }
 0x1a5   : > { %2048 = vrot.lane.b32.xlu1 %v8345_v1, %s7636_s18 }
 0x1a9   : > { %2116 = vrot.lane.b32.xlu1 %v8345_v1, %s7637_s19 }
 0x1ad   : > { %2184 = vrot.lane.b32.xlu1 %v8345_v1, %s7638_s20 }
 0x1ae   : > { %v1564_v23 = vpop.f32.mrb[0].mxu0  ;;  %v1605_v46 = vpop.f32.mrb[8].mxu1 }
 0x1af   : > { %v1565_v37 = vadd.f32 %v1564_v23, %v8325_v58  ;;  %v1606_v5 = vadd.f32 %v1605_v46, %v8325_v58  ;;  %v1566_v33 = vpop.f32.mrb[1].mxu0  ;;  %v1607_v47 = vpop.f32.mrb[9].mxu1 }
 0x1b0   : > { %v1567_v40 = vadd.f32 %v1566_v33, %v8325_v58  ;;  %v1608_v17 = vadd.f32 %v1607_v47, %v8325_v58  ;;  %v1568_v49 = vpop.f32.mrb[2].mxu0  ;;  %v1609_v54 = vpop.f32.mrb[10].mxu1 }
 0x1b1   : > { %v1739_v35 = vmax.f32 %v1565_v37, 0.0  ;;  %v1741_v60 = vmax.f32 %v1606_v5, 0.0  ;;  %v1569_v52 = vpop.f32.mrb[3].mxu0  ;;  %v1610_v48 = vpop.f32.mrb[11].mxu1  ;;  %2252 = vrot.lane.b32.xlu1 %v8345_v1, %s7639_s21  ;;  %v2434_v49 = vld [vmem:[%s10003_s4] sm:$0xff] }
 0x1b2   : > { %v1740_v39 = vmax.f32 %v1567_v40, 0.0  ;;  %v1742_v6 = vmax.f32 %v1608_v17, 0.0 }
 0x1b4   : > { %v8369_v56 = vpack.c.bf16 %v1740_v39, %v1739_v35  ;;  %v8371_v15 = vpack.c.bf16 %v1742_v6, %v1741_v60 }
 0x1b5   : > { %2320 = vrot.lane.b32.xlu1 %v8345_v1, %s7641_s22 }
 0x1b6   : > { %1846 = vrot.lane.b32.xlu0 %v8369_v56, %s7634_s16 }
 0x1b9   : > { %1848 = vrot.lane.b32.xlu1 %v8371_v15, %s7634_s16 }
 0x1ba   : > { %1914 = vrot.lane.b32.xlu0 %v8369_v56, %s7633_s15 }
 0x1bd   : > { %1916 = vrot.lane.b32.xlu1 %v8371_v15, %s7633_s15 }
 0x1be   : > { %1982 = vrot.lane.b32.xlu0 %v8369_v56, %s7635_s17 }
 0x1c1   : > { %1984 = vrot.lane.b32.xlu1 %v8371_v15, %s7635_s17 }
 0x1c2   : > { %2050 = vrot.lane.b32.xlu0 %v8369_v56, %s7636_s18 }
 0x1c5   : > { %2052 = vrot.lane.b32.xlu1 %v8371_v15, %s7636_s18 }
 0x1c6   : > { %2118 = vrot.lane.b32.xlu0 %v8369_v56, %s7637_s19 }
 0x1c9   : > { %2120 = vrot.lane.b32.xlu1 %v8371_v15, %s7637_s19 }
 0x1ca   : > { %2186 = vrot.lane.b32.xlu0 %v8369_v56, %s7638_s20 }
 0x1cd   : > { %2188 = vrot.lane.b32.xlu1 %v8371_v15, %s7638_s20 }
 0x1ce   : > { %v1646_v36 = vpop.f32.mrb[4].mxu0  ;;  %v1687_v53 = vpop.f32.mrb[12].mxu1  ;;  %2254 = vrot.lane.b32.xlu0 %v8369_v56, %s7639_s21 }
 0x1cf   : > { %v1647_v25 = vadd.f32 %v1646_v36, %v8325_v58  ;;  %v1688_v34 = vadd.f32 %v1687_v53, %v8325_v58  ;;  %v1648_v59 = vpop.f32.mrb[5].mxu0  ;;  %v1689_v31 = vpop.f32.mrb[13].mxu1 }
 0x1d0   : > { %v1649_v43 = vadd.f32 %v1648_v59, %v8325_v58  ;;  %v1690_v61 = vadd.f32 %v1689_v31, %v8325_v58  ;;  %v1650_v63 = vpop.f32.mrb[6].mxu0  ;;  %v1691_v9 = vpop.f32.mrb[14].mxu1 }
 0x1d1   : > { %v1743_v55 = vmax.f32 %v1647_v25, 0.0  ;;  %v1745_v21 = vmax.f32 %v1688_v34, 0.0  ;;  %v1651_v10 = vpop.f32.mrb[7].mxu0  ;;  %v1692_v57 = vpop.f32.mrb[15].mxu1  ;;  %2256 = vrot.lane.b32.xlu1 %v8371_v15, %s7639_s21 }
 0x1d2   : > { %v1744_v16 = vmax.f32 %v1649_v43, 0.0  ;;  %v1746_v62 = vmax.f32 %v1690_v61, 0.0  ;;  %2322 = vrot.lane.b32.xlu0 %v8369_v56, %s7641_s22 }
 0x1d4   : > { %v8409_v27 = vpack.c.bf16 %v1744_v16, %v1743_v55  ;;  %v8411_v42 = vpack.c.bf16 %v1746_v62, %v1745_v21 }
 0x1d5   : > { %2324 = vrot.lane.b32.xlu1 %v8371_v15, %s7641_s22 }
 0x1d6   : > { %1850 = vrot.lane.b32.xlu0 %v8409_v27, %s7634_s16 }
 0x1d9   : > { %1852 = vrot.lane.b32.xlu1 %v8411_v42, %s7634_s16 }
 0x1da   : > { %1918 = vrot.lane.b32.xlu0 %v8409_v27, %s7633_s15 }
 0x1dd   : > { %1920 = vrot.lane.b32.xlu1 %v8411_v42, %s7633_s15 }
 0x1de   : > { %1986 = vrot.lane.b32.xlu0 %v8409_v27, %s7635_s17 }
 0x1e1   : > { %1988 = vrot.lane.b32.xlu1 %v8411_v42, %s7635_s17 }
 0x1e2   : > { %v1728_v51 = vpop.f32.mrb[8].mxu0  ;;  %2054 = vrot.lane.b32.xlu0 %v8409_v27, %s7636_s18 }
 0x1e3   : > { %v1729_v13 = vadd.f32 %v1728_v51, %v8325_v58  ;;  %v1730_v44 = vpop.f32.mrb[9].mxu0 }
 0x1e4   : > { %v1731_v11 = vadd.f32 %v1730_v44, %v8325_v58  ;;  %v1732_v4 = vpop.f32.mrb[10].mxu0  ;;  %v8449_v58 = vpop.permute.xlu1 %1856 }
 0x1e5   : > { %v1747_v45 = vmax.f32 %v1729_v13, 0.0  ;;  %v1733_v7 = vpop.f32.mrb[11].mxu0  ;;  %2056 = vrot.lane.b32.xlu1 %v8411_v42, %s7636_s18 }
 0x1e6   : > { %v1748_v50 = vmax.f32 %v1731_v11, 0.0  ;;  %2122 = vrot.lane.b32.xlu0 %v8409_v27, %s7637_s19 }
 0x1e8   : > { %v8435_v12 = vpack.c.bf16 %v1748_v50, %v1747_v45  ;;  %v8458_v26 = vpop.permute.xlu1 %1924 }
 0x1e9   : > { %2124 = vrot.lane.b32.xlu1 %v8411_v42, %s7637_s19 }
 0x1ea   : > { %2190 = vrot.lane.b32.xlu0 %v8409_v27, %s7638_s20 }
 0x1ec   : > { %v8463_v14 = vpop.permute.xlu1 %1992 }
 0x1ed   : > { %2192 = vrot.lane.b32.xlu1 %v8411_v42, %s7638_s20 }
 0x1ee   : > { %2258 = vrot.lane.b32.xlu0 %v8409_v27, %s7639_s21 }
 0x1f1   : > { %2260 = vrot.lane.b32.xlu1 %v8411_v42, %s7639_s21 }
 0x1f2   : > { %2326 = vrot.lane.b32.xlu0 %v8409_v27, %s7641_s22 }
 0x1f5   : > { %2328 = vrot.lane.b32.xlu1 %v8411_v42, %s7641_s22 }
 0x1f6   : > { %1854 = vrot.lane.b32.xlu0 %v8435_v12, %s7634_s16 }
 0x1f7   : > { %v1911_v24 = vpop.permute.xlu0 %1910  ;;  %v1843_v19 = vpop.permute.xlu1 %1842 }
 0x1f8   : > { %v1858_v29 = vrot.slane %v1843_v19, 4  ;;  %v1926_v47 = vrot.slane %v1911_v24, 4 }
 0x1f9   : > { %2060 = vrot.lane.b32.xlu1 %v2037_v30, %s7636_s18 }
 0x1fa   : > { %1922 = vrot.lane.b32.xlu0 %v8435_v12, %s7633_s15 }
 0x1fb   : > { %v1979_v32 = vpop.permute.xlu0 %1978 }
 0x1fc   : > { %v1994_v54 = vrot.slane %v1979_v32, 4 }
 0x1fd   : > { %2128 = vrot.lane.b32.xlu1 %v2105_v20, %s7637_s19 }
 0x1fe   : > { %1990 = vrot.lane.b32.xlu0 %v8435_v12, %s7635_s17 }
 0x1ff   : > { %v2047_v38 = vpop.permute.xlu0 %2046 }
 0x200   : > { %v2062_v34 = vrot.slane %v2047_v38, 4 }
 0x201   : > { %2196 = vrot.lane.b32.xlu1 %v2173_v22, %s7638_s20 }
 0x202   : > { %2058 = vrot.lane.b32.xlu0 %v8435_v12, %s7636_s18 }
 0x203   : > { %v2115_v40 = vpop.permute.xlu0 %2114 }
 0x204   : > { %v2130_v31 = vrot.slane %v2115_v40, 4 }
 0x205   : > { %2264 = vrot.lane.b32.xlu1 %v2241_v0, %s7639_s21 }
 0x206   : > { %2126 = vrot.lane.b32.xlu0 %v8435_v12, %s7637_s19 }
 0x207   : > { %v2183_v6 = vpop.permute.xlu0 %2182 }
 0x208   : > { %v2198_v51 = vrot.slane %v2183_v6, 4 }
 0x209   : > { %2332 = vrot.lane.b32.xlu1 %v2309_v28, %s7641_s22 }
 0x20a   : > { %2194 = vrot.lane.b32.xlu0 %v8435_v12, %s7638_s20  ;;  %s7649_s20 = smov 122  }
 0x20b   : > { %v8474_v3 = vpop.permute.xlu1 %1844  ;;  %v2251_v63 = vpop.permute.xlu0 %2250 }
 0x20c   : > { %v1859_v18 = vrot.slane %v8474_v3, 4  ;;  %v2266_v44 = vrot.slane %v2251_v63, 4 }
 0x20e   : > { %2262 = vrot.lane.b32.xlu0 %v8435_v12, %s7639_s21  ;;  %v1866_v41 = vsel %vm503_vm0, %v1858_v29, %v1859_v18  ;;  %s7655_s21 = smov 107  }
 0x20f   : > { %v8482_v23 = vpop.permute.xlu1 %1912  ;;  %v1867_v46 = vsel %vm505_vm1, %v1843_v19, %v1866_v41  ;;  %v2319_v11 = vpop.permute.xlu0 %2318 }
 0x210   : > { %v1927_v37 = vrot.slane %v8482_v23, 4  ;;  %v6784_v5 = vcombine.low %v8329_v8, %v1867_v46  ;;  %v6785_v33 = vcombine.high %v8329_v8, %v1867_v46  ;;  %v2334_v22 = vrot.slane %v2319_v11, 4 }
 0x212   : > { %2330 = vrot.lane.b32.xlu0 %v8435_v12, %s7641_s22  ;;  %2800 = vmatprep.subr.bf16.mxu1 %v6785_v33  ;;  %v1934_v8 = vsel %vm503_vm0, %v1926_v47, %v1927_v37  ;;  %s7643_s22 = smov 113  }
 0x213   : > { %v8490_v17 = vpop.permute.xlu1 %1980  ;;  %2801 = vmatpush1.bf16.msra.mxu1 %v6784_v5  ;;  %v1935_v48 = vsel %vm574_vm3, %v1911_v24, %v1934_v8 }
 0x214   : > { %v1995_v35 = vrot.slane %v8490_v17, 4 }
 0x216   : > { %2437 = vperm.xlu0 %7391, %v2434_v49   ;;  %v2002_v60 = vsel %vm503_vm0, %v1994_v54, %v1995_v35 }
 0x217   : > { %v8502_v52 = vpop.permute.xlu1 %2048  ;;  %v2003_v39 = vsel %vm643_vm2, %v1979_v32, %v2002_v60 }
 0x218   : > { %v2063_v36 = vrot.slane %v8502_v52, 4  ;;  %v6798_v53 = vcombine.low %v1935_v48, %v2003_v39  ;;  %v6799_v25 = vcombine.high %v1935_v48, %v2003_v39 }
 0x21a   : > { %2802 = vmatprep.subr.bf16.mxu1 %v6799_v25  ;;  %v2070_v61 = vsel %vm503_vm0, %v2062_v34, %v2063_v36 }
 0x21b   : > { %v8507_v59 = vpop.permute.xlu1 %2116  ;;  %2803 = vmatpush1.bf16.msra.mxu1 %v6798_v53  ;;  %v2071_v21 = vsel %vm712_vm4, %v2047_v38, %v2070_v61 }
 0x21c   : > { %v2131_v43 = vrot.slane %v8507_v59, 4 }
 0x21e   : > { %v2138_v9 = vsel %vm503_vm0, %v2130_v31, %v2131_v43 }
 0x21f   : > { %v8516_v55 = vpop.permute.xlu1 %2184  ;;  %v2139_v10 = vsel %vm781_vm5, %v2115_v40, %v2138_v9 }
 0x220   : > { %v2199_v57 = vrot.slane %v8516_v55, 4  ;;  %v6812_v16 = vcombine.low %v2071_v21, %v2139_v10  ;;  %v6813_v62 = vcombine.high %v2071_v21, %v2139_v10 }
 0x222   : > { %2804 = vmatprep.subr.bf16.mxu1 %v6813_v62  ;;  %v2206_v45 = vsel %vm503_vm0, %v2198_v51, %v2199_v57 }
 0x223   : > { %v8521_v13 = vpop.permute.xlu1 %2252  ;;  %2805 = vmatpush1.bf16.msra.mxu1 %v6812_v16  ;;  %v2207_v30 = vsel %vm850_vm6, %v2183_v6, %v2206_v45 }
 0x224   : > { %v2267_v4 = vrot.slane %v8521_v13, 4 }
 0x226   : > { %v2274_v7 = vsel %vm503_vm0, %v2266_v44, %v2267_v4 }
 0x227   : > { %v8530_v50 = vpop.permute.xlu1 %2320  ;;  %v2275_v20 = vsel %vm919_vm7, %v2251_v63, %v2274_v7 }
 0x228   : > { %v1847_v24 = vpop.permute.xlu0 %1846  ;;  %v2335_v0 = vrot.slane %v8530_v50, 4  ;;  %v6826_v32 = vcombine.low %v2207_v30, %v2275_v20  ;;  %v6827_v28 = vcombine.high %v2207_v30, %v2275_v20 }
 0x229   : > { %v1860_v19 = vrot.slane %v1847_v24, 4 }
 0x22a   : > { %v2342_v38 = vsel %vm503_vm0, %v2334_v22, %v2335_v0  ;;  %2806 = vmatprep.subr.bf16.mxu1 %v6827_v28 }
 0x22b   : > { %v8538_v29 = vpop.permute.xlu1 %1848  ;;  %2807 = vmatpush1.bf16.msra.mxu1 %v6826_v32  ;;  %v2343_v41 = vsel %vm988_vm8, %v2319_v11, %v2342_v38  ;;  %v1868_v46 = vsel %vm503_vm0, %v1859_v18, %v1860_v19 }
 0x22c   : > { %v1915_v5 = vpop.permute.xlu0 %1914  ;;  %v1861_v33 = vrot.slane %v8538_v29, 4  ;;  %v6841_v47 = vcombine.high %v2343_v41, %v2343_v41  ;;  %v1869_v40 = vsel %vm505_vm1, %v8474_v3, %v1868_v46  ;;  %v6840_v49 = vcombine.low %v2343_v41, %v2343_v41  ;;  %v8559_v3 = vld [vmem:[%s10002_s3] sm:$0xf] }
 0x22d   : > { %v1928_v54 = vrot.slane %v1915_v5, 4  ;;  %v6786_v8 = vcombine.low %v8345_v1, %v1869_v40  ;;  %v6787_v60 = vcombine.high %v8345_v1, %v1869_v40 }
 0x22e   : > { %6854 = vmatprep.subr.msk.bf16.mxu1 %vm503_vm0, %v6841_v47  ;;  %v2759_v48 = vsel %vm503_vm0, %v6840_v49, 0  ;;  %v1870_v18 = vsel %vm503_vm0, %v1860_v19, %v1861_v33 }
 0x22f   : > { %2841 = vmatprep.subr.bf16.mxu0 %v6787_v60  ;;  %v8554_v39 = vpop.permute.xlu1 %1916  ;;  %2809 = vmatpush1.bf16.msra.mxu1 %v2759_v48  ;;  %v1871_v6 = vsel %vm505_vm1, %v1847_v24, %v1870_v18  ;;  %v1936_v61 = vsel %vm503_vm0, %v1927_v37, %v1928_v54 }
 0x230   : > { %v1983_v1 = vpop.permute.xlu0 %1982  ;;  %2842 = vmatpush1.bf16.msra.mxu0 %v6786_v8  ;;  %v1929_v53 = vrot.slane %v8554_v39, 4  ;;  %v6788_v25 = vcombine.low %v8369_v56, %v1871_v6  ;;  %v6789_v34 = vcombine.high %v8369_v56, %v1871_v6  ;;  %v1937_v10 = vsel %vm574_vm3, %v8482_v23, %v1936_v61 }
 0x231   : > { %v1996_v31 = vrot.slane %v1983_v1, 4 }
 0x232   : > { %6855 = vmatmul.mubr.msk.bf16.vlgmr.msra.gmra.mrb[16].mxu1 %vm850_vm6, %v8559_v3  ;;  %2882 = vmatprep.subr.bf16.mxu1 %v6789_v34  ;;  %v1938_v16 = vsel %vm503_vm0, %v1928_v54, %v1929_v53 }
 0x233   : > { %v8570_v63 = vpop.permute.xlu1 %1984  ;;  %2883 = vmatpush1.bf16.msra.mxu1 %v6788_v25  ;;  %v2004_v9 = vsel %vm503_vm0, %v1995_v35, %v1996_v31  ;;  %2914 = vmatprep.mubr.bf16.mxu1 %v7640_v2  ;;  %v1939_v45 = vsel %vm574_vm3, %v1915_v5, %v1938_v16 }
 0x234   : > { %v2051_v21 = vpop.permute.xlu0 %2050  ;;  %v1997_v56 = vrot.slane %v8570_v63, 4  ;;  %v2005_v37 = vsel %vm643_vm2, %v8490_v17, %v2004_v9 }
 0x235   : > { %v2064_v62 = vrot.slane %v2051_v21, 4  ;;  %v6800_v51 = vcombine.low %v1937_v10, %v2005_v37  ;;  %v6801_v44 = vcombine.high %v1937_v10, %v2005_v37 }
 0x236   : > { %v2006_v35 = vsel %vm503_vm0, %v1996_v31, %v1997_v56 }
 0x237   : > { %2843 = vmatprep.subr.bf16.mxu0 %v6801_v44  ;;  %v8587_v11 = vpop.permute.xlu1 %2052  ;;  %v2007_v23 = vsel %vm643_vm2, %v1983_v1, %v2006_v35  ;;  %v2072_v24 = vsel %vm503_vm0, %v2063_v36, %v2064_v62 }
 0x238   : > { %v2119_v7 = vpop.permute.xlu0 %2118  ;;  %2844 = vmatpush1.bf16.msra.mxu0 %v6800_v51  ;;  %v2065_v17 = vrot.slane %v8587_v11, 4  ;;  %v6802_v30 = vcombine.low %v1939_v45, %v2007_v23  ;;  %v6803_v20 = vcombine.high %v1939_v45, %v2007_v23  ;;  %v2073_v41 = vsel %vm712_vm4, %v8502_v52, %v2072_v24 }
 0x239   : > { %v2132_v22 = vrot.slane %v2119_v7, 4 }
 0x23a   : > { %2884 = vmatprep.subr.bf16.mxu1 %v6803_v20  ;;  %v2074_v36 = vsel %vm503_vm0, %v2064_v62, %v2065_v17 }
 0x23b   : > { %v8595_v32 = vpop.permute.xlu1 %2120  ;;  %2885 = vmatpush1.bf16.msra.mxu1 %v6802_v30  ;;  %v2140_v28 = vsel %vm503_vm0, %v2131_v43, %v2132_v22  ;;  %v2075_v54 = vsel %vm712_vm4, %v2051_v21, %v2074_v36 }
 0x23c   : > { %v2187_v19 = vpop.permute.xlu0 %2186  ;;  %v2133_v38 = vrot.slane %v8595_v32, 4  ;;  %v2141_v46 = vsel %vm781_vm5, %v8507_v59, %v2140_v28 }
 0x23d   : > { %v2200_v5 = vrot.slane %v2187_v19, 4  ;;  %v6814_v47 = vcombine.low %v2073_v41, %v2141_v46  ;;  %v6815_v40 = vcombine.high %v2073_v41, %v2141_v46 }
 0x23e   : > { %v2142_v43 = vsel %vm503_vm0, %v2132_v22, %v2133_v38 }
 0x23f   : > { %2845 = vmatprep.subr.bf16.mxu0 %v6815_v40  ;;  %v8611_v49 = vpop.permute.xlu1 %2188  ;;  %v2143_v52 = vsel %vm781_vm5, %v2119_v7, %v2142_v43  ;;  %v2208_v6 = vsel %vm503_vm0, %v2199_v57, %v2200_v5 }
 0x240   : > { %v2255_v8 = vpop.permute.xlu0 %2254  ;;  %2846 = vmatpush1.bf16.msra.mxu0 %v6814_v47  ;;  %v2201_v59 = vrot.slane %v8611_v49, 4  ;;  %v6816_v60 = vcombine.low %v2075_v54, %v2143_v52  ;;  %v6817_v48 = vcombine.high %v2075_v54, %v2143_v52  ;;  %v2209_v61 = vsel %vm850_vm6, %v8516_v55, %v2208_v6 }
 0x241   : > { %v2268_v18 = vrot.slane %v2255_v8, 4 }
 0x242   : > { %2886 = vmatprep.subr.bf16.mxu1 %v6817_v48  ;;  %v2210_v57 = vsel %vm503_vm0, %v2200_v5, %v2201_v59 }
 0x243   : > { %v8619_v1 = vpop.permute.xlu1 %2256  ;;  %2887 = vmatpush1.bf16.msra.mxu1 %v6816_v60  ;;  %v2276_v25 = vsel %vm503_vm0, %v2267_v4, %v2268_v18 }
 0x244   : > { %v2323_v34 = vpop.permute.xlu0 %2322  ;;  %v2269_v31 = vrot.slane %v8619_v1, 4  ;;  %v2277_v9 = vsel %vm919_vm7, %v8521_v13, %v2276_v25  ;;  %v2211_v13 = vsel %vm850_vm6, %v2187_v19, %v2210_v57 }
 0x245   : > { %v2336_v21 = vrot.slane %v2323_v34, 4  ;;  %v6828_v10 = vcombine.low %v2209_v61, %v2277_v9  ;;  %v6829_v37 = vcombine.high %v2209_v61, %v2277_v9 }
 0x246   : > { %v2278_v4 = vsel %vm503_vm0, %v2268_v18, %v2269_v31 }
 0x247   : > { %v2344_v16 = vsel %vm503_vm0, %v2335_v0, %v2336_v21  ;;  %2847 = vmatprep.subr.bf16.mxu0 %v6829_v37  ;;  %v8638_v55 = vpop.permute.xlu1 %2324  ;;  %v2279_v62 = vsel %vm919_vm7, %v2255_v8, %v2278_v4 }
 0x248   : > { %v1851_v51 = vpop.permute.xlu0 %1850  ;;  %2848 = vmatpush1.bf16.msra.mxu0 %v6828_v10  ;;  %v2337_v44 = vrot.slane %v8638_v55, 4  ;;  %v2345_v35 = vsel %vm988_vm8, %v8530_v50, %v2344_v16  ;;  %v6830_v45 = vcombine.low %v2211_v13, %v2279_v62  ;;  %v6831_v23 = vcombine.high %v2211_v13, %v2279_v62 }
 0x249   : > { %v1862_v7 = vrot.slane %v1851_v51, 4  ;;  %v6843_v30 = vcombine.high %v2345_v35, %v2345_v35  ;;  %v6842_v20 = vcombine.low %v2345_v35, %v2345_v35 }
 0x24a   : > { %v2346_v0 = vsel %vm503_vm0, %v2336_v21, %v2337_v44  ;;  %2888 = vmatprep.subr.bf16.mxu1 %v6831_v23 }
 0x24b   : > { %6856 = vmatprep.subr.msk.bf16.mxu0 %vm503_vm0, %v6843_v30  ;;  %v2765_v22 = vsel %vm503_vm0, %v6842_v20, 0  ;;  %v8650_v24 = vpop.permute.xlu1 %1852  ;;  %2889 = vmatpush1.bf16.msra.mxu1 %v6830_v45  ;;  %v2347_v28 = vsel %vm988_vm8, %v2323_v34, %v2346_v0  ;;  %v1872_v50 = vsel %vm503_vm0, %v1861_v33, %v1862_v7 }
 0x24c   : > { %v1919_v19 = vpop.permute.xlu0 %1918  ;;  %2850 = vmatpush1.bf16.msra.mxu0 %v2765_v22  ;;  %v1863_v41 = vrot.slane %v8650_v24, 4  ;;  %v6845_v46 = vcombine.high %v2347_v28, %v2347_v28  ;;  %v1873_v36 = vsel %vm505_vm1, %v8538_v29, %v1872_v50  ;;  %v6844_v5 = vcombine.low %v2347_v28, %v2347_v28 }
 0x24d   : > { %v1930_v47 = vrot.slane %v1919_v19, 4  ;;  %v6790_v40 = vcombine.low %v8371_v15, %v1873_v36  ;;  %v6791_v43 = vcombine.high %v8371_v15, %v1873_v36 }
 0x24e   : > { %6858 = vmatprep.subr.msk.bf16.mxu1 %vm503_vm0, %v6845_v46  ;;  %v2771_v54 = vsel %vm503_vm0, %v6844_v5, 0  ;;  %v1874_v33 = vsel %vm503_vm0, %v1862_v7, %v1863_v41 }
 0x24f   : > { %6857 = vmatmul.mubr.msk.bf16.vlgmr.msra.gmra.mrb[12].mxu0 %vm850_vm6, %v8559_v3  ;;  %2923 = vmatprep.subr.bf16.mxu0 %v6791_v43  ;;  %v8668_v52 = vpop.permute.xlu1 %1920  ;;  %v1875_v29 = vsel %vm505_vm1, %v1851_v51, %v1874_v33  ;;  %v1940_v6 = vsel %vm503_vm0, %v1929_v53, %v1930_v47 }
 0x250   : > { %v1987_v8 = vpop.permute.xlu0 %1986  ;;  %2924 = vmatpush1.bf16.msra.mxu0 %v6790_v40  ;;  %v1931_v15 = vrot.slane %v8668_v52, 4  ;;  %2891 = vmatpush1.bf16.msra.mxu1 %v2771_v54  ;;  %v6792_v60 = vcombine.low %v8409_v27, %v1875_v29  ;;  %v6793_v48 = vcombine.high %v8409_v27, %v1875_v29  ;;  %v1941_v9 = vsel %vm574_vm3, %v8554_v39, %v1940_v6 }
 0x251   : > { %v1998_v18 = vrot.slane %v1987_v8, 4  ;;  %2955 = vmatprep.mubr.bf16.mxu0 %v7640_v2 }
 0x252   : > { %2964 = vmatprep.subr.bf16.mxu1 %v6793_v48  ;;  %v1942_v57 = vsel %vm503_vm0, %v1930_v47, %v1931_v15 }
 0x253   : > { %6859 = vmatmul.mubr.msk.bf16.vlgmr.msra.gmra.mrb[20].mxu1 %vm850_vm6, %v8559_v3  ;;  %v8680_v25 = vpop.permute.xlu1 %1988  ;;  %v2008_v34 = vsel %vm503_vm0, %v1997_v56, %v1998_v18  ;;  %v1943_v39 = vsel %vm574_vm3, %v1919_v19, %v1942_v57 }
 0x254   : > { %v2055_v61 = vpop.permute.xlu0 %2054  ;;  %v1999_v27 = vrot.slane %v8680_v25, 4  ;;  %2965 = vmatpush1.bf16.msra.mxu1 %v6792_v60  ;;  %v2009_v53 = vsel %vm643_vm2, %v8570_v63, %v2008_v34  ;;  %2996 = vmatprep.mubr.bf16.mxu1 %v7640_v2 }
 0x255   : > { %v2066_v21 = vrot.slane %v2055_v61, 4  ;;  %v6804_v10 = vcombine.low %v1941_v9, %v2009_v53  ;;  %v6805_v37 = vcombine.high %v1941_v9, %v2009_v53 }
 0x256   : > { %v2010_v56 = vsel %vm503_vm0, %v1998_v18, %v1999_v27 }
 0x257   : > { %2925 = vmatprep.subr.bf16.mxu0 %v6805_v37  ;;  %v8697_v4 = vpop.permute.xlu1 %2056  ;;  %v2011_v63 = vsel %vm643_vm2, %v1987_v8, %v2010_v56  ;;  %v2076_v45 = vsel %vm503_vm0, %v2065_v17, %v2066_v21 }
 0x258   : > { %v2123_v16 = vpop.permute.xlu0 %2122  ;;  %2926 = vmatpush1.bf16.msra.mxu0 %v6804_v10  ;;  %v2067_v13 = vrot.slane %v8697_v4, 4  ;;  %v6806_v62 = vcombine.low %v1943_v39, %v2011_v63  ;;  %v6807_v51 = vcombine.high %v1943_v39, %v2011_v63  ;;  %v2077_v0 = vsel %vm712_vm4, %v8587_v11, %v2076_v45 }
 0x259   : > { %v2134_v35 = vrot.slane %v2123_v16, 4  ;;  %v1865_v39 = vrot.slane %v8449_v58, 4 }
 0x25a   : > { %2966 = vmatprep.subr.bf16.mxu1 %v6807_v51  ;;  %v2078_v17 = vsel %vm503_vm0, %v2066_v21, %v2067_v13 }
 0x25b   : > { %v8705_v23 = vpop.permute.xlu1 %2124  ;;  %2967 = vmatpush1.bf16.msra.mxu1 %v6806_v62  ;;  %v2144_v7 = vsel %vm503_vm0, %v2133_v38, %v2134_v35  ;;  %v2079_v36 = vsel %vm712_vm4, %v2055_v61, %v2078_v17 }
 0x25c   : > { %v2191_v30 = vpop.permute.xlu0 %2190  ;;  %v2135_v20 = vrot.slane %v8705_v23, 4  ;;  %v2145_v22 = vsel %vm781_vm5, %v8595_v32, %v2144_v7 }
 0x25d   : > { %v2202_v28 = vrot.slane %v2191_v30, 4  ;;  %v6818_v50 = vcombine.low %v2077_v0, %v2145_v22  ;;  %v6819_v19 = vcombine.high %v2077_v0, %v2145_v22 }
 0x25e   : > { %v2146_v38 = vsel %vm503_vm0, %v2134_v35, %v2135_v20 }
 0x25f   : > { %2927 = vmatprep.subr.bf16.mxu0 %v6819_v19  ;;  %v8721_v46 = vpop.permute.xlu1 %2192  ;;  %v2147_v11 = vsel %vm781_vm5, %v2123_v16, %v2146_v38  ;;  %v2212_v54 = vsel %vm503_vm0, %v2201_v59, %v2202_v28  ;;  %v1933_v38 = vrot.slane %v8458_v26, 4 }
 0x260   : > { %v2259_v5 = vpop.permute.xlu0 %2258  ;;  %2928 = vmatpush1.bf16.msra.mxu0 %v6818_v50  ;;  %v2203_v32 = vrot.slane %v8721_v46, 4  ;;  %v6820_v47 = vcombine.low %v2079_v36, %v2147_v11  ;;  %v6821_v40 = vcombine.high %v2079_v36, %v2147_v11  ;;  %v2213_v48 = vsel %vm850_vm6, %v8611_v49, %v2212_v54 }
 0x261   : > { %v2270_v43 = vrot.slane %v2259_v5, 4 }
 0x262   : > { %2968 = vmatprep.subr.bf16.mxu1 %v6821_v40  ;;  %v2214_v59 = vsel %vm503_vm0, %v2202_v28, %v2203_v32 }
 0x263   : > { %v8729_v33 = vpop.permute.xlu1 %2260  ;;  %2969 = vmatpush1.bf16.msra.mxu1 %v6820_v47  ;;  %v2280_v29 = vsel %vm503_vm0, %v2269_v31, %v2270_v43 }
 0x264   : > { %v2327_v8 = vpop.permute.xlu0 %2326  ;;  %v2271_v60 = vrot.slane %v8729_v33, 4  ;;  %v2281_v18 = vsel %vm919_vm7, %v8619_v1, %v2280_v29  ;;  %v2215_v1 = vsel %vm850_vm6, %v2191_v30, %v2214_v59 }
 0x265   : > { %v2338_v6 = vrot.slane %v2327_v8, 4  ;;  %v6832_v34 = vcombine.low %v2213_v48, %v2281_v18  ;;  %v6833_v61 = vcombine.high %v2213_v48, %v2281_v18 }
 0x266   : > { %v2282_v31 = vsel %vm503_vm0, %v2270_v43, %v2271_v60 }
 0x267   : > { %v2348_v9 = vsel %vm503_vm0, %v2337_v44, %v2338_v6  ;;  %2929 = vmatprep.subr.bf16.mxu0 %v6833_v61  ;;  %v8748_v49 = vpop.permute.xlu1 %2328  ;;  %v2283_v53 = vsel %vm919_vm7, %v2259_v5, %v2282_v31 }
 0x268   : > { %v1855_v57 = vpop.permute.xlu0 %1854  ;;  %2930 = vmatpush1.bf16.msra.mxu0 %v6832_v34  ;;  %v2339_v21 = vrot.slane %v8748_v49, 4  ;;  %v2349_v10 = vsel %vm988_vm8, %v8638_v55, %v2348_v9  ;;  %v6834_v37 = vcombine.low %v2215_v1, %v2283_v53  ;;  %v6835_v56 = vcombine.high %v2215_v1, %v2283_v53 }
 0x269   : > { %v1864_v63 = vrot.slane %v1855_v57, 4  ;;  %v6847_v44 = vcombine.high %v2349_v10, %v2349_v10  ;;  %v6846_v16 = vcombine.low %v2349_v10, %v2349_v10 }
 0x26a   : > { %v2350_v62 = vsel %vm503_vm0, %v2338_v6, %v2339_v21  ;;  %2970 = vmatprep.subr.bf16.mxu1 %v6835_v56 }
 0x26b   : > { %v1878_v51 = vsel %vm503_vm0, %v1864_v63, %v1865_v39  ;;  %6860 = vmatprep.subr.msk.bf16.mxu0 %vm503_vm0, %v6847_v44  ;;  %v2777_v35 = vsel %vm503_vm0, %v6846_v16, 0  ;;  %2971 = vmatpush1.bf16.msra.mxu1 %v6834_v37  ;;  %v2351_v55 = vsel %vm988_vm8, %v2327_v8, %v2350_v62  ;;  %v1876_v58 = vsel %vm503_vm0, %v1863_v41, %v1864_v63  ;;  %v2061_v45 = vpop.permute.xlu1 %2060 }
 0x26c   : > { %v1879_v7 = vsel %vm505_vm1, %v1855_v57, %v1878_v51  ;;  %v1923_v30 = vpop.permute.xlu0 %1922  ;;  %2932 = vmatpush1.bf16.msra.mxu0 %v2777_v35  ;;  %v6849_v0 = vcombine.high %v2351_v55, %v2351_v55  ;;  %v1877_v22 = vsel %vm505_vm1, %v8650_v24, %v1876_v58  ;;  %v6848_v17 = vcombine.low %v2351_v55, %v2351_v55 }
 0x26d   : > { %v1932_v28 = vrot.slane %v1923_v30, 4  ;;  %v6794_v50 = vcombine.low %v8411_v42, %v1877_v22  ;;  %v6795_v19 = vcombine.high %v8411_v42, %v1877_v22  ;;  %v6797_v36 = vcombine.high %v8435_v12, %v1879_v7 }
 0x26e   : > { %6862 = vmatprep.subr.msk.bf16.mxu1 %vm503_vm0, %v6849_v0  ;;  %v2783_v41 = vsel %vm503_vm0, %v6848_v17, 0  ;;  %v2001_v42 = vrot.slane %v8463_v14, 4  ;;  %v6796_v40 = vcombine.low %v8435_v12, %v1879_v7  ;;  %v2069_v48 = vrot.slane %v2061_v45, 4 }
 0x26f   : > { %6861 = vmatmul.mubr.msk.bf16.vlgmr.msra.gmra.mrb[16].mxu0 %vm850_vm6, %v8559_v3  ;;  %3005 = vmatprep.subr.bf16.mxu0 %v6795_v19  ;;  %v2129_v11 = vpop.permute.xlu1 %2128  ;;  %v1946_v24 = vsel %vm503_vm0, %v1932_v28, %v1933_v38  ;;  %v1944_v26 = vsel %vm503_vm0, %v1931_v15, %v1932_v28 }
 0x270   : > { %v1991_v5 = vpop.permute.xlu0 %1990  ;;  %2973 = vmatpush1.bf16.msra.mxu1 %v2783_v41  ;;  %3006 = vmatpush1.bf16.msra.mxu0 %v6794_v50  ;;  %v1947_v43 = vsel %vm574_vm3, %v1923_v30, %v1946_v24  ;;  %v1945_v15 = vsel %vm574_vm3, %v8668_v52, %v1944_v26 }
 0x271   : > { %v2000_v47 = vrot.slane %v1991_v5, 4  ;;  %3046 = vmatprep.subr.bf16.mxu1 %v6797_v36  ;;  %3037 = vmatprep.mubr.bf16.mxu0 %v7640_v2 }
 0x273   : > { %v2014_v54 = vsel %vm503_vm0, %v2000_v47, %v2001_v42  ;;  %6863 = vmatmul.mubr.msk.bf16.vlgmr.msra.gmra.mrb[24].mxu1 %vm850_vm6, %v8559_v3  ;;  %v2012_v14 = vsel %vm503_vm0, %v1999_v27, %v2000_v47  ;;  %v2197_v18 = vpop.permute.xlu1 %2196  ;;  %v2137_v27 = vrot.slane %v2129_v11, 4 }
 0x274   : > { %v2015_v29 = vsel %vm643_vm2, %v1991_v5, %v2014_v54  ;;  %v2059_v8 = vpop.permute.xlu0 %2058  ;;  %3047 = vmatpush1.bf16.msra.mxu1 %v6796_v40  ;;  %v2013_v12 = vsel %vm643_vm2, %v8680_v25, %v2012_v14  ;;  %3078 = vmatprep.mubr.bf16.mxu1 %v7640_v2  ;;  %v2205_v10 = vrot.slane %v2197_v18, 4 }
 0x275   : > { %v6810_v59 = vcombine.low %v1947_v43, %v2015_v29  ;;  %v2068_v6 = vrot.slane %v2059_v8, 4  ;;  %v6808_v34 = vcombine.low %v1945_v15, %v2013_v12  ;;  %v6809_v61 = vcombine.high %v1945_v15, %v2013_v12 }
 0x276   : > { %v6811_v31 = vcombine.high %v1947_v43, %v2015_v29 }
 0x277   : > { %3007 = vmatprep.subr.bf16.mxu0 %v6809_v61  ;;  %v2082_v1 = vsel %vm503_vm0, %v2068_v6, %v2069_v48  ;;  %v2080_v52 = vsel %vm503_vm0, %v2067_v13, %v2068_v6  ;;  %v2265_v25 = vpop.permute.xlu1 %2264 }
 0x278   : > { %3048 = vmatprep.subr.bf16.mxu1 %v6811_v31  ;;  %v2127_v9 = vpop.permute.xlu0 %2126  ;;  %3008 = vmatpush1.bf16.msra.mxu0 %v6808_v34  ;;  %v2081_v39 = vsel %vm712_vm4, %v8697_v4, %v2080_v52  ;;  %v2083_v44 = vsel %vm712_vm4, %v2059_v8, %v2082_v1  ;;  %v2273_v58 = vrot.slane %v2265_v25, 4 }
 0x279   : > { %v2136_v53 = vrot.slane %v2127_v9, 4  ;;  %3049 = vmatpush1.bf16.msra.mxu1 %v6810_v59 }
 0x27b   : > { %v2150_v57 = vsel %vm503_vm0, %v2136_v53, %v2137_v27  ;;  %v2148_v37 = vsel %vm503_vm0, %v2135_v20, %v2136_v53  ;;  %v2333_v45 = vpop.permute.xlu1 %2332 }
 0x27c   : > { %v2195_v56 = vpop.permute.xlu0 %2194  ;;  %v2149_v63 = vsel %vm781_vm5, %v8705_v23, %v2148_v37  ;;  %v2151_v16 = vsel %vm781_vm5, %v2127_v9, %v2150_v57  ;;  %v2341_v0 = vrot.slane %v2333_v45, 4 }
 0x27d   : > { %v2204_v13 = vrot.slane %v2195_v56, 4  ;;  %v6822_v62 = vcombine.low %v2081_v39, %v2149_v63  ;;  %v6823_v51 = vcombine.high %v2081_v39, %v2149_v63  ;;  %v6824_v35 = vcombine.low %v2083_v44, %v2151_v16 }
 0x27e   : > { %v6825_v55 = vcombine.high %v2083_v44, %v2151_v16 }
 0x27f   : > { %3009 = vmatprep.subr.bf16.mxu0 %v6823_v51  ;;  %v2218_v4 = vsel %vm503_vm0, %v2204_v13, %v2205_v10  ;;  %v2216_v23 = vsel %vm503_vm0, %v2203_v32, %v2204_v13 }
 0x280   : > { %3050 = vmatprep.subr.bf16.mxu1 %v6825_v55  ;;  %v2263_v20 = vpop.permute.xlu0 %2262  ;;  %3010 = vmatpush1.bf16.msra.mxu0 %v6822_v62  ;;  %v2217_v28 = vsel %vm850_vm6, %v8721_v46, %v2216_v23  ;;  %v2219_v19 = vsel %vm850_vm6, %v2195_v56, %v2218_v4 }
 0x281   : > { %v2272_v7 = vrot.slane %v2263_v20, 4  ;;  %3051 = vmatpush1.bf16.msra.mxu1 %v6824_v35 }
 0x283   : > { %v2286_v30 = vsel %vm503_vm0, %v2272_v7, %v2273_v58  ;;  %v2284_v22 = vsel %vm503_vm0, %v2271_v60, %v2272_v7 }
 0x284   : > { %v2331_v17 = vpop.permute.xlu0 %2330  ;;  %v2285_v50 = vsel %vm919_vm7, %v8729_v33, %v2284_v22  ;;  %v2287_v38 = vsel %vm919_vm7, %v2263_v20, %v2286_v30 }
 0x285   : > { %v2340_v41 = vrot.slane %v2331_v17, 4  ;;  %v6836_v32 = vcombine.low %v2217_v28, %v2285_v50  ;;  %v6837_v36 = vcombine.high %v2217_v28, %v2285_v50  ;;  %v6838_v11 = vcombine.low %v2219_v19, %v2287_v38 }
 0x286   : > { %v6839_v24 = vcombine.high %v2219_v19, %v2287_v38 }
 0x287   : > { %v2352_v60 = vsel %vm503_vm0, %v2339_v21, %v2340_v41  ;;  %v2354_v5 = vsel %vm503_vm0, %v2340_v41, %v2341_v0  ;;  %3011 = vmatprep.subr.bf16.mxu0 %v6837_v36  ;;  %v7395_v41 = vld [vmem:[%s10008_s9 + $0x4] ss:$8 sps:$4 sm:$0xff]  }
 0x288   : > { %3052 = vmatprep.subr.bf16.mxu1 %v6839_v24  ;;  %3012 = vmatpush1.bf16.msra.mxu0 %v6836_v32  ;;  %v2353_v46 = vsel %vm988_vm8, %v8748_v49, %v2352_v60  ;;  %v2355_v33 = vsel %vm988_vm8, %v2331_v17, %v2354_v5  ;;  %v7393_v24 = vld [vmem:[%s10008_s9] ss:$8 sps:$4 sm:$0xff]  }
 0x289   : > { %3053 = vmatpush1.bf16.msra.mxu1 %v6838_v11  ;;  %v6851_v42 = vcombine.high %v2353_v46, %v2353_v46  ;;  %v6853_v47 = vcombine.high %v2355_v33, %v2355_v33  ;;  %v6850_v26 = vcombine.low %v2353_v46, %v2353_v46  ;;  %v6852_v40 = vcombine.low %v2355_v33, %v2355_v33 }
 0x28b   : > { %6864 = vmatprep.subr.msk.bf16.mxu0 %vm503_vm0, %v6851_v42  ;;  %6866 = vmatprep.subr.msk.bf16.mxu1 %vm503_vm0, %v6853_v47  ;;  %v2789_v21 = vsel %vm503_vm0, %v6850_v26, 0  ;;  %v2795_v43 = vsel %vm503_vm0, %v6852_v40, 0 }
 0x28c   : > { %3014 = vmatpush1.bf16.msra.mxu0 %v2789_v21 }
 0x28d   : > { %3055 = vmatpush1.bf16.msra.mxu1 %v2795_v43  ;;  %3929 = vmatprep.subr.bf16.mxu0 %v7395_v41 }
 0x28e   : > { %4873 = vmatprep.subr.bf16.mxu1 %v7395_v41 }
 0x28f   : > { %6865 = vmatmul.mubr.msk.bf16.vlgmr.msra.gmra.mrb[20].mxu0 %vm850_vm6, %v8559_v3 }
 0x290   : > { %6867 = vmatmul.mubr.msk.bf16.vlgmr.msra.gmra.mrb[28].mxu1 %vm850_vm6, %v8559_v3  ;;  %3930 = vmatpush1.bf16.msra.mxu0 %v7393_v24 }
 0x291   : > { %4874 = vmatpush1.bf16.msra.mxu1 %v7393_v24 }
 0x295   : > { %v8840_v49 = vpop.permute.xlu0 %2437 }
 0x305   : > { %v2834_v54 = vpop.f32.mrb[16].mxu1 }
 0x306   : > { %v2835_v14 = vadd.f32 %v2834_v54, %v8840_v49  ;;  %v2836_v29 = vpop.f32.mrb[17].mxu1 }
 0x307   : > { %v2837_v8 = vadd.f32 %v2836_v29, %v8840_v49  ;;  %v2838_v48 = vpop.f32.mrb[18].mxu1 }
 0x308   : > { %v3087_v15 = vmax.f32 %v2835_v14, 0.0  ;;  %v2839_v12 = vpop.f32.mrb[19].mxu1  ;;  %v7398_v14 = vld [vmem:[%s10008_s9 + $0x14] ss:$8 sps:$4 sm:$0xff]  }
 0x309   : > { %v3088_v18 = vmax.f32 %v2837_v8, 0.0  ;;  %v7396_v8 = vld [vmem:[%s10008_s9 + $0x10] ss:$8 sps:$4 sm:$0xff]   ;;  %3931 = vmatprep.subr.bf16.mxu0 %v7398_v14  ;;  %4875 = vmatprep.subr.bf16.mxu1 %v7398_v14  ;;  %v7399_v12 = vld [vmem:[%s10008_s9 + $0x20] ss:$8 sps:$4 sm:$0xff]  }
 0x30a   : > { %3932 = vmatpush1.bf16.msra.mxu0 %v7396_v8  ;;  %4876 = vmatpush1.bf16.msra.mxu1 %v7396_v8 }
 0x30b   : > { %v8844_v59 = vpack.c.bf16 %v3088_v18, %v3087_v15  ;;  %v7401_v15 = vld [vmem:[%s10008_s9 + $0x24] ss:$8 sps:$4 sm:$0xff]   ;;  %v7404_v18 = vld [vmem:[%s10008_s9 + $0x34] ss:$8 sps:$4 sm:$0xff]  }
 0x30c   : > { %3933 = vmatprep.subr.bf16.mxu0 %v7401_v15  ;;  %4877 = vmatprep.subr.bf16.mxu1 %v7401_v15 }
 0x30d   : > { %3173 = vrot.lane.b32.xlu1 %v8844_v59, %s7634_s16 }
 0x30e   : > { %3934 = vmatpush1.bf16.msra.mxu0 %v7399_v12  ;;  %4878 = vmatpush1.bf16.msra.mxu1 %v7399_v12 }
 0x30f   : > { %3935 = vmatprep.subr.bf16.mxu0 %v7404_v18  ;;  %4879 = vmatprep.subr.bf16.mxu1 %v7404_v18 }
 0x322   : > { %v2875_v6 = vpop.f32.mrb[12].mxu0 }
 0x323   : > { %v2876_v3 = vadd.f32 %v2875_v6, %v8840_v49  ;;  %v2877_v34 = vpop.f32.mrb[13].mxu0  ;;  %v7402_v6 = vld [vmem:[%s10008_s9 + $0x30] ss:$8 sps:$4 sm:$0xff]  }
 0x324   : > { %v2878_v61 = vadd.f32 %v2877_v34, %v8840_v49  ;;  %v2879_v31 = vpop.f32.mrb[14].mxu0  ;;  %3936 = vmatpush1.bf16.msra.mxu0 %v7402_v6  ;;  %4880 = vmatpush1.bf16.msra.mxu1 %v7402_v6 }
 0x325   : > { %v3089_v27 = vmax.f32 %v2876_v3, 0.0  ;;  %v2880_v9 = vpop.f32.mrb[15].mxu0  ;;  %v7407_v31 = vld [vmem:[%s10008_s9 + $0x44] ss:$8 sps:$4 sm:$0xff]  }
 0x326   : > { %v3090_v1 = vmax.f32 %v2878_v61, 0.0  ;;  %v2916_v53 = vpop.f32.mrb[20].mxu1  ;;  %v7405_v61 = vld [vmem:[%s10008_s9 + $0x40] ss:$8 sps:$4 sm:$0xff]   ;;  %3937 = vmatprep.subr.bf16.mxu0 %v7407_v31  ;;  %4881 = vmatprep.subr.bf16.mxu1 %v7407_v31 }
 0x327   : > { %v2917_v52 = vadd.f32 %v2916_v53, %v8840_v49  ;;  %v2918_v25 = vpop.f32.mrb[21].mxu1  ;;  %v7413_v53 = vld [vmem:[%s10008_s9 + $0x64] ss:$8 sps:$4 sm:$0xff]  }
 0x328   : > { %v8851_v57 = vpack.c.bf16 %v3090_v1, %v3089_v27  ;;  %v2919_v10 = vadd.f32 %v2918_v25, %v8840_v49  ;;  %v2920_v37 = vpop.f32.mrb[22].mxu1  ;;  %v7410_v27 = vld [vmem:[%s10008_s9 + $0x54] ss:$8 sps:$4 sm:$0xff]   ;;  %3938 = vmatpush1.bf16.msra.mxu0 %v7405_v61  ;;  %v7408_v1 = vld [vmem:[%s10008_s9 + $0x50] ss:$8 sps:$4 sm:$0xff]   ;;  %4882 = vmatpush1.bf16.msra.mxu1 %v7405_v61 }
 0x329   : > { %v3091_v56 = vmax.f32 %v2917_v52, 0.0  ;;  %v2921_v39 = vpop.f32.mrb[23].mxu1  ;;  %3939 = vmatprep.subr.bf16.mxu0 %v7410_v27  ;;  %4883 = vmatprep.subr.bf16.mxu1 %v7410_v27  ;;  %v7411_v52 = vld [vmem:[%s10008_s9 + $0x60] ss:$8 sps:$4 sm:$0xff]   ;;  %v7416_v25 = vld [vmem:[%s10008_s9 + $0x74] ss:$8 sps:$4 sm:$0xff]  }
 0x32a   : > { %v3092_v63 = vmax.f32 %v2919_v10, 0.0  ;;  %3175 = vrot.lane.b32.xlu0 %v8851_v57, %s7634_s16  ;;  %v7414_v10 = vld [vmem:[%s10008_s9 + $0x70] ss:$8 sps:$4 sm:$0xff]   ;;  %v7419_v37 = vld [vmem:[%s10008_s9 + $0x84] ss:$8 sps:$4 sm:$0xff]  }
 0x32b   : > { %v7422_v39 = vld [vmem:[%s10008_s9 + $0x94] ss:$8 sps:$4 sm:$0xff]  }
 0x32c   : > { %v8856_v44 = vpack.c.bf16 %v3092_v63, %v3091_v56  ;;  %3940 = vmatpush1.bf16.msra.mxu0 %v7408_v1  ;;  %4884 = vmatpush1.bf16.msra.mxu1 %v7408_v1  ;;  %v7417_v56 = vld [vmem:[%s10008_s9 + $0x80] ss:$8 sps:$4 sm:$0xff]   ;;  %v7420_v63 = vld [vmem:[%s10008_s9 + $0x90] ss:$8 sps:$4 sm:$0xff]  }
 0x32d   : > { %3941 = vmatprep.subr.bf16.mxu0 %v7413_v53  ;;  %4885 = vmatprep.subr.bf16.mxu1 %v7413_v53 }
 0x32e   : > { %3177 = vrot.lane.b32.xlu1 %v8856_v44, %s7634_s16 }
 0x330   : > { %3942 = vmatpush1.bf16.msra.mxu0 %v7411_v52  ;;  %4886 = vmatpush1.bf16.msra.mxu1 %v7411_v52 }
 0x331   : > { %3943 = vmatprep.subr.bf16.mxu0 %v7416_v25  ;;  %4887 = vmatprep.subr.bf16.mxu1 %v7416_v25 }
 0x334   : > { %3944 = vmatpush1.bf16.msra.mxu0 %v7414_v10  ;;  %4888 = vmatpush1.bf16.msra.mxu1 %v7414_v10 }
 0x335   : > { %3945 = vmatprep.subr.bf16.mxu0 %v7419_v37  ;;  %4889 = vmatprep.subr.bf16.mxu1 %v7419_v37 }
 0x338   : > { %3946 = vmatpush1.bf16.msra.mxu0 %v7417_v56  ;;  %4890 = vmatpush1.bf16.msra.mxu1 %v7417_v56 }
 0x339   : > { %3947 = vmatprep.subr.bf16.mxu0 %v7422_v39  ;;  %4891 = vmatprep.subr.bf16.mxu1 %v7422_v39  ;;  %v9054_v39 = vld [vmem:[%s10008_s9 + $0x114] ss:$8 sps:$4 sm:$0xff]  }
 0x33c   : > { %3948 = vmatpush1.bf16.msra.mxu0 %v7420_v63  ;;  %4892 = vmatpush1.bf16.msra.mxu1 %v7420_v63  ;;  %v9060_v63 = vld [vmem:[%s10008_s9 + $0x110] ss:$8 sps:$4 sm:$0xff]  }
 0x342   : > { %v2957_v16 = vpop.f32.mrb[16].mxu0 }
 0x343   : > { %v2958_v13 = vadd.f32 %v2957_v16, %v8840_v49  ;;  %v2959_v62 = vpop.f32.mrb[17].mxu0  ;;  %v7425_v16 = vld [vmem:[%s10008_s9 + $0xa4] ss:$8 sps:$4 sm:$0xff]  }
 0x344   : > { %v2960_v51 = vadd.f32 %v2959_v62, %v8840_v49  ;;  %v2961_v35 = vpop.f32.mrb[18].mxu0  ;;  %3949 = vmatprep.subr.bf16.mxu0 %v7425_v16  ;;  %v7428_v62 = vld [vmem:[%s10008_s9 + $0xb4] ss:$8 sps:$4 sm:$0xff]   ;;  %4893 = vmatprep.subr.bf16.mxu1 %v7425_v16  ;;  %v9066_v16 = vld [vmem:[%s10008_s9 + $0x124] ss:$8 sps:$4 sm:$0xff]  }
 0x345   : > { %v3093_v55 = vmax.f32 %v2958_v13, 0.0  ;;  %v2962_v58 = vpop.f32.mrb[19].mxu0  ;;  %v7423_v13 = vld [vmem:[%s10008_s9 + $0xa0] ss:$8 sps:$4 sm:$0xff]   ;;  %v7431_v35 = vld [vmem:[%s10008_s9 + $0xc4] ss:$8 sps:$4 sm:$0xff]  }
 0x346   : > { %v3094_v20 = vmax.f32 %v2960_v51, 0.0  ;;  %v2998_v45 = vpop.f32.mrb[24].mxu1  ;;  %3950 = vmatpush1.bf16.msra.mxu0 %v7423_v13  ;;  %v7426_v51 = vld [vmem:[%s10008_s9 + $0xb0] ss:$8 sps:$4 sm:$0xff]   ;;  %4894 = vmatpush1.bf16.msra.mxu1 %v7423_v13  ;;  %v9072_v13 = vld [vmem:[%s10008_s9 + $0x120] ss:$8 sps:$4 sm:$0xff]  }
 0x347   : > { %v2999_v4 = vadd.f32 %v2998_v45, %v8840_v49  ;;  %v3000_v7 = vpop.f32.mrb[25].mxu1  ;;  %3951 = vmatprep.subr.bf16.mxu0 %v7428_v62  ;;  %4895 = vmatprep.subr.bf16.mxu1 %v7428_v62  ;;  %v7432_v58 = vld [vmem:[%s10008_s9 + $0xd0] ss:$8 sps:$4 sm:$0xff]   ;;  %v9078_v62 = vld [vmem:[%s10008_s9 + $0x134] ss:$8 sps:$4 sm:$0xff]  }
 0x348   : > { %v8863_v23 = vpack.c.bf16 %v3094_v20, %v3093_v55  ;;  %v3001_v30 = vadd.f32 %v3000_v7, %v8840_v49  ;;  %v3002_v0 = vpop.f32.mrb[26].mxu1  ;;  %v7429_v55 = vld [vmem:[%s10008_s9 + $0xc0] ss:$8 sps:$4 sm:$0xff]   ;;  %v7434_v20 = vld [vmem:[%s10008_s9 + $0xd4] ss:$8 sps:$4 sm:$0xff]  }
 0x349   : > { %v3095_v22 = vmax.f32 %v2999_v4, 0.0  ;;  %v3003_v17 = vpop.f32.mrb[27].mxu1  ;;  %v7437_v4 = vld [vmem:[%s10008_s9 + $0xe4] ss:$8 sps:$4 sm:$0xff]   ;;  %v7435_v7 = vld [vmem:[%s10008_s9 + $0xe0] ss:$8 sps:$4 sm:$0xff]  }
 0x34a   : > { %3160 = vst [vmem:[#allocation4 + $0x18] sm:$0xff] %v8863_v23  ;;  %v3096_v28 = vmax.f32 %v3001_v30, 0.0  ;;  %3952 = vmatpush1.bf16.msra.mxu0 %v7426_v51  ;;  %4896 = vmatpush1.bf16.msra.mxu1 %v7426_v51  ;;  %v7440_v0 = vld [vmem:[%s10008_s9 + $0xf4] ss:$8 sps:$4 sm:$0xff]   ;;  %v9084_v51 = vld [vmem:[%s10008_s9 + $0x130] ss:$8 sps:$4 sm:$0xff]  }
 0x34b   : > { %3953 = vmatprep.subr.bf16.mxu0 %v7431_v35  ;;  %4897 = vmatprep.subr.bf16.mxu1 %v7431_v35  ;;  %v9090_v35 = vld [vmem:[%s10008_s9 + $0x144] ss:$8 sps:$4 sm:$0xff]  }
 0x34c   : > { %v7249_v50 = vpack.c.bf16 %v3096_v28, %v3095_v22  ;;  %v7438_v28 = vld [vmem:[%s10008_s9 + $0xf0] ss:$8 sps:$4 sm:$0xff]  }
 0x34e   : > { %3161 = vst [vmem:[#allocation4 + $0x20] sm:$0xff] %v7249_v50  ;;  %3954 = vmatpush1.bf16.msra.mxu0 %v7429_v55  ;;  %4898 = vmatpush1.bf16.msra.mxu1 %v7429_v55  ;;  %v9096_v55 = vld [vmem:[%s10008_s9 + $0x140] ss:$8 sps:$4 sm:$0xff]  }
 0x34f   : > { %3955 = vmatprep.subr.bf16.mxu0 %v7434_v20  ;;  %4899 = vmatprep.subr.bf16.mxu1 %v7434_v20  ;;  %v9108_v20 = vld [vmem:[%s10008_s9 + $0x150] ss:$8 sps:$4 sm:$0xff]  }
 0x352   : > { %3956 = vmatpush1.bf16.msra.mxu0 %v7432_v58  ;;  %4900 = vmatpush1.bf16.msra.mxu1 %v7432_v58  ;;  %v9102_v58 = vld [vmem:[%s10008_s9 + $0x154] ss:$8 sps:$4 sm:$0xff]  }
 0x353   : > { %3957 = vmatprep.subr.bf16.mxu0 %v7437_v4  ;;  %4901 = vmatprep.subr.bf16.mxu1 %v7437_v4  ;;  %v9120_v4 = vld [vmem:[%s10008_s9 + $0x160] ss:$8 sps:$4 sm:$0xff]  }
 0x355   : > { %v8867_v19 = vld [vmem:[#allocation4 + $0x1c] sm:$0xff] }
 0x356   : > { %4114 = vrot.lane.b32.xlu0 %v8867_v19, %s7634_s16  ;;  %3958 = vmatpush1.bf16.msra.mxu0 %v7435_v7 }
 0x357   : > { %3959 = vmatprep.subr.bf16.mxu0 %v7440_v0  ;;  %4902 = vmatpush1.bf16.msra.mxu1 %v7435_v7  ;;  %v9126_v7 = vld [vmem:[%s10008_s9 + $0x174] ss:$8 sps:$4 sm:$0xff]  }
 0x358   : > { %4903 = vmatprep.subr.bf16.mxu1 %v7440_v0  ;;  %v9138_v0 = vld [vmem:[%s10008_s9 + $0x184] ss:$8 sps:$4 sm:$0xff]  }
 0x35a   : > { %3960 = vmatpush1.bf16.msra.mxu0 %v7438_v28 }
 0x35b   : > { %4904 = vmatpush1.bf16.msra.mxu1 %v7438_v28  ;;  %v9156_v28 = vld [vmem:[%s10008_s9 + $0x190] ss:$8 sps:$4 sm:$0xff]  }
 0x362   : > { %v3039_v38 = vpop.f32.mrb[20].mxu0 }
 0x363   : > { %v3040_v32 = vadd.f32 %v3039_v38, %v8840_v49  ;;  %v3080_v36 = vpop.f32.mrb[28].mxu1  ;;  %v3041_v11 = vpop.f32.mrb[21].mxu0 }
 0x364   : > { %v3081_v60 = vadd.f32 %v3080_v36, %v8840_v49  ;;  %v3042_v5 = vadd.f32 %v3041_v11, %v8840_v49  ;;  %v3082_v46 = vpop.f32.mrb[29].mxu1  ;;  %v3043_v33 = vpop.f32.mrb[22].mxu0  ;;  %v7443_v11 = vld [vmem:[%s10008_s9 + $0x104] ss:$8 sps:$4 sm:$0xff]  }
 0x365   : > { %v3097_v42 = vmax.f32 %v3040_v32, 0.0  ;;  %v3083_v47 = vadd.f32 %v3082_v46, %v8840_v49  ;;  %v3084_v26 = vpop.f32.mrb[30].mxu1  ;;  %v3044_v40 = vpop.f32.mrb[23].mxu0  ;;  %3970 = vmatprep.subr.bf16.mxu0 %v7443_v11  ;;  %4914 = vmatprep.subr.bf16.mxu1 %v7443_v11  ;;  %v9192_v11 = vld [vmem:[%s10008_s9 + $0x1c0] ss:$8 sps:$4 sm:$0xff]  }
 0x366   : > { %v3099_v21 = vmax.f32 %v3081_v60, 0.0  ;;  %v3098_v43 = vmax.f32 %v3042_v5, 0.0  ;;  %v3085_v54 = vpop.f32.mrb[31].mxu1 }
 0x367   : > { %v3100_v29 = vmax.f32 %v3083_v47, 0.0 }
 0x368   : > { %v7250_v48 = vpack.c.bf16 %v3098_v43, %v3097_v42 }
 0x369   : > { %v7251_v49 = vpack.c.bf16 %v3100_v29, %v3099_v21 }
 0x36a   : > { %3162 = vst [vmem:[#allocation4 + $0x28] sm:$0xff] %v7250_v48 }
 0x36b   : > { %3163 = vst [vmem:[#allocation4 + $0x30] sm:$0xff] %v7251_v49 }
 0x371   : > { %v8899_v3 = vld [vmem:[#allocation4 + $0x24] sm:$0xff] }
 0x372   : > { %v8901_v34 = vld [vmem:[#allocation4 + $0x2c] sm:$0xff]  ;;  %4116 = vrot.lane.b32.xlu1 %v8899_v3, %s7634_s16  ;;  %v8916_v9 = vld [vmem:[#allocation4 + $0x34] sm:$0xff] }
 0x373   : > { %4118 = vrot.lane.b32.xlu0 %v8901_v34, %s7634_s16 }
 0x376   : > { %3179 = vrot.lane.b32.xlu1 %v8863_v23, %s7634_s16 }
 0x377   : > { %4120 = vrot.lane.b32.xlu0 %v8916_v9, %s7634_s16 }
 0x37f   : > { %v3174_v45 = vpop.permute.xlu1 %3173 }
 0x380   : > { %v3181_v22 = vrot.slane %v3174_v45, 4 }
 0x39c   : > { %v3176_v30 = vpop.permute.xlu0 %3175 }
 0x39d   : > { %v3182_v17 = vrot.slane %v3176_v30, 4 }
 0x39f   : > { %v3185_v50 = vsel %vm503_vm0, %v3181_v22, %v3182_v17  ;;  %v9144_v22 = vld [vmem:[%s10008_s9 + $0x180] ss:$8 sps:$4 sm:$0xff]  }
 0x3a0   : > { %v3178_v38 = vpop.permute.xlu1 %3177  ;;  %v3186_v41 = vsel %vm505_vm1, %v3174_v45, %v3185_v50  ;;  %v9114_v45 = vld [vmem:[%s10008_s9 + $0x164] ss:$8 sps:$4 sm:$0xff]  }
 0x3a1   : > { %v3183_v32 = vrot.slane %v3178_v38, 4  ;;  %v3196_v36 = vmax.bf16 %v8844_v59, %v3186_v41  ;;  %v9162_v50 = vld [vmem:[%s10008_s9 + $0x1a4] ss:$8 sps:$4 sm:$0xff]   ;;  %v9174_v41 = vld [vmem:[%s10008_s9 + $0x1b4] ss:$8 sps:$4 sm:$0xff]  }
 0x3a3   : > { %v3187_v24 = vsel %vm503_vm0, %v3182_v17, %v3183_v32  ;;  %3205 = vrot.lane.b32.xlu0 %v3196_v36, %s7635_s17  ;;  %v9150_v17 = vld [vmem:[%s10008_s9 + $0x194] ss:$8 sps:$4 sm:$0xff]  }
 0x3a4   : > { %v3188_v60 = vsel %vm505_vm1, %v3176_v30, %v3187_v24  ;;  %v9132_v30 = vld [vmem:[%s10008_s9 + $0x170] ss:$8 sps:$4 sm:$0xff]   ;;  %v9198_v24 = vld [vmem:[%s10008_s9 + $0x1d4] ss:$8 sps:$4 sm:$0xff]  }
 0x3a5   : > { %v8995_v5 = vmax.bf16 %v8851_v57, %v3188_v60  ;;  %v9204_v60 = vld [vmem:[%s10008_s9 + $0x1d0] ss:$8 sps:$4 sm:$0xff]  }
 0x3a7   : > { %3207 = vrot.lane.b32.xlu1 %v8995_v5, %s7635_s17 }
 0x3c8   : > { %v4115_v59 = vpop.permute.xlu0 %4114 }
 0x3c9   : > { %v4122_v33 = vrot.slane %v4115_v59, 4 }
 0x3e4   : > { %v4117_v46 = vpop.permute.xlu1 %4116 }
 0x3e5   : > { %v4119_v42 = vpop.permute.xlu0 %4118  ;;  %v4123_v47 = vrot.slane %v4117_v46, 4 }
 0x3e6   : > { %v4124_v26 = vrot.slane %v4119_v42, 4 }
 0x3e7   : > { %v4126_v40 = vsel %vm503_vm0, %v4122_v33, %v4123_v47  ;;  %v9222_v33 = vld [vmem:[%s10008_s9 + $0x1f4] ss:$8 sps:$4 sm:$0xff]  }
 0x3e8   : > { %v4128_v21 = vsel %vm503_vm0, %v4123_v47, %v4124_v26  ;;  %v3180_v43 = vpop.permute.xlu1 %3179  ;;  %v4127_v54 = vsel %vm505_vm1, %v4115_v59, %v4126_v40  ;;  %v9210_v59 = vld [vmem:[%s10008_s9 + $0x1e4] ss:$8 sps:$4 sm:$0xff]  }
 0x3e9   : > { %v4129_v57 = vsel %vm505_vm1, %v4117_v46, %v4128_v21  ;;  %v4121_v14 = vpop.permute.xlu0 %4120  ;;  %v3184_v29 = vrot.slane %v3180_v43, 4  ;;  %v9004_v8 = vmax.bf16 %v4127_v54, %v8867_v19  ;;  %v9216_v46 = vld [vmem:[%s10008_s9 + $0x1e0] ss:$8 sps:$4 sm:$0xff]  }
 0x3ea   : > { %v9007_v48 = vmax.bf16 %v4129_v57, %v8899_v3  ;;  %v4125_v49 = vrot.slane %v4121_v14, 4 }
 0x3eb   : > { %v3189_v15 = vsel %vm503_vm0, %v3183_v32, %v3184_v29  ;;  %4149 = vrot.lane.b32.xlu1 %v9004_v8, %s7635_s17  ;;  %v9028_v31 = vsel %vm505_vm1, %v3180_v43, %v3184_v29  ;;  %v9180_v32 = vld [vmem:[%s10008_s9 + $0x1b0] ss:$8 sps:$4 sm:$0xff]  }
 0x3ec   : > { %v4130_v12 = vsel %vm503_vm0, %v4124_v26, %v4125_v49  ;;  %4151 = vrot.lane.b32.xlu0 %v9007_v48, %s7635_s17  ;;  %v3190_v19 = vsel %vm505_vm1, %v3178_v38, %v3189_v15  ;;  %v9025_v61 = vsel %vm505_vm1, %v4121_v14, %v4125_v49  ;;  %v9168_v38 = vld [vmem:[%s10008_s9 + $0x1a0] ss:$8 sps:$4 sm:$0xff]   ;;  %v9234_v26 = vld [vmem:[%s10008_s9 + $0x204] ss:$8 sps:$4 sm:$0xff]  }
 0x3ed   : > { %v9016_v18 = vsel %vm505_vm1, %v4119_v42, %v4130_v12  ;;  %v9022_v3 = vmax.bf16 %v8856_v44, %v3190_v19  ;;  %v4144_v27 = vmax.bf16 %v9025_v61, %v8916_v9  ;;  %v9228_v42 = vld [vmem:[%s10008_s9 + $0x1f0] ss:$8 sps:$4 sm:$0xff]  }
 0x3ee   : > { %v4143_v6 = vmax.bf16 %v9016_v18, %v8901_v34  ;;  %v3200_v34 = vmax.bf16 %v8863_v23, %v9028_v31  ;;  %v9049_v23 = vld [vmem:[%s10008_s9 + $0x100] ss:$8 sps:$4 sm:$0xff]  }
 0x3ef   : > { %3209 = vrot.lane.b32.xlu1 %v9022_v3, %s7635_s17 }
 0x3f0   : > { %4153 = vrot.lane.b32.xlu0 %v4143_v6, %s7635_s17 }
 0x3f3   : > { %3211 = vrot.lane.b32.xlu1 %v3200_v34, %s7635_s17 }
 0x3f4   : > { %4155 = vrot.lane.b32.xlu0 %v4144_v27, %s7635_s17 }
 0x415   : > { %v3206_v44 = vpop.permute.xlu0 %3205 }
 0x416   : > { %v3213_v53 = vrot.slane %v3206_v44, 4 }
 0x419   : > { %v9039_v1 = vpop.permute.xlu1 %3207 }
 0x41a   : > { %v3214_v52 = vrot.slane %v9039_v1, 4 }
 0x41c   : > { %v3217_v25 = vsel %vm503_vm0, %v3213_v53, %v3214_v52 }
 0x41d   : > { %v3218_v10 = vsel %vm643_vm2, %v3206_v44, %v3217_v25 }
 0x41e   : > { %v3228_v9 = vmax.bf16 %v3218_v10, %v3196_v36  ;;  %v9186_v36 = vld [vmem:[%s10008_s9 + $0x1c4] ss:$8 sps:$4 sm:$0xff]  }
 0x420   : > { %v6876_v37 = vcombine.high %v3228_v9, %v3228_v9  ;;  %v6875_v56 = vcombine.low %v3228_v9, %v3228_v9  ;;  %v4105_v9 = vld [vmem:[#allocation4 + $0x34] sm:$0xf] }
 0x422   : > { %3961 = vmatprep.mubr.bf16.mxu0 %v6876_v37  ;;  %v3167_v37 = vld [vmem:[#allocation4 + $0x18] sm:$0xf] }
 0x423   : > { %3962 = vmatmul.mubr.bf16.vlgmr.msra.gmra.mrb[24].mxu0 %v6875_v56 }
 0x424   : > { %3971 = vmatpush1.bf16.msra.mxu0 %v9049_v23 }
 0x425   : > { %3972 = vmatprep.subr.bf16.mxu0 %v9054_v39 }
 0x428   : > { %3973 = vmatpush1.bf16.msra.mxu0 %v9060_v63 }
 0x429   : > { %3974 = vmatprep.subr.bf16.mxu0 %v9066_v16 }
 0x42c   : > { %3975 = vmatpush1.bf16.msra.mxu0 %v9072_v13 }
 0x42d   : > { %3976 = vmatprep.subr.bf16.mxu0 %v9078_v62 }
 0x430   : > { %3977 = vmatpush1.bf16.msra.mxu0 %v9084_v51 }
 0x431   : > { %3978 = vmatprep.subr.bf16.mxu0 %v9090_v35 }
 0x434   : > { %3979 = vmatpush1.bf16.msra.mxu0 %v9096_v55 }
 0x435   : > { %3980 = vmatprep.subr.bf16.mxu0 %v9102_v58 }
 0x438   : > { %3981 = vmatpush1.bf16.msra.mxu0 %v9108_v20 }
 0x439   : > { %3982 = vmatprep.subr.bf16.mxu0 %v9114_v45 }
 0x43c   : > { %3983 = vmatpush1.bf16.msra.mxu0 %v9120_v4 }
 0x43d   : > { %3984 = vmatprep.subr.bf16.mxu0 %v9126_v7 }
 0x440   : > { %3985 = vmatpush1.bf16.msra.mxu0 %v9132_v30 }
 0x441   : > { %3986 = vmatprep.subr.bf16.mxu0 %v9138_v0 }
 0x444   : > { %3987 = vmatpush1.bf16.msra.mxu0 %v9144_v22 }
 0x445   : > { %3988 = vmatprep.subr.bf16.mxu0 %v9150_v17 }
 0x448   : > { %3989 = vmatpush1.bf16.msra.mxu0 %v9156_v28 }
 0x449   : > { %3990 = vmatprep.subr.bf16.mxu0 %v9162_v50 }
 0x44c   : > { %3991 = vmatpush1.bf16.msra.mxu0 %v9168_v38 }
 0x44d   : > { %3992 = vmatprep.subr.bf16.mxu0 %v9174_v41 }
 0x450   : > { %3993 = vmatpush1.bf16.msra.mxu0 %v9180_v32 }
 0x451   : > { %3994 = vmatprep.subr.bf16.mxu0 %v9186_v36 }
 0x454   : > { %3995 = vmatpush1.bf16.msra.mxu0 %v9192_v11 }
 0x455   : > { %3996 = vmatprep.subr.bf16.mxu0 %v9198_v24 }
 0x458   : > { %3997 = vmatpush1.bf16.msra.mxu0 %v9204_v60 }
 0x459   : > { %3998 = vmatprep.subr.bf16.mxu0 %v9210_v59 }
 0x45c   : > { %3999 = vmatpush1.bf16.msra.mxu0 %v9216_v46 }
 0x45d   : > { %v4150_v47 = vpop.permute.xlu1 %4149  ;;  %4000 = vmatprep.subr.bf16.mxu0 %v9222_v33 }
 0x45e   : > { %v4152_v40 = vpop.permute.xlu0 %4151  ;;  %v4157_v21 = vrot.slane %v4150_v47, 4 }
 0x45f   : > { %v4158_v43 = vrot.slane %v4152_v40, 4 }
 0x460   : > { %4001 = vmatpush1.bf16.msra.mxu0 %v9228_v42 }
 0x461   : > { %v4161_v54 = vsel %vm503_vm0, %v4157_v21, %v4158_v43  ;;  %4011 = vmatprep.subr.bf16.mxu0 %v9234_v26  ;;  %v3210_v29 = vpop.permute.xlu1 %3209 }
 0x462   : > { %v4162_v57 = vsel %vm643_vm2, %v4150_v47, %v4161_v54  ;;  %v4154_v14 = vpop.permute.xlu0 %4153  ;;  %v3215_v12 = vrot.slane %v3210_v29, 4 }
 0x463   : > { %v4172_v49 = vmax.bf16 %v4162_v57, %v9004_v8  ;;  %v4159_v15 = vrot.slane %v4154_v14, 4 }
 0x464   : > { %v3219_v27 = vsel %vm503_vm0, %v3214_v52, %v3215_v12  ;;  %v4140_v52 = vmax.bf16 %v9025_v61, %v4105_v9  ;;  %v9266_v61 = vld [vmem:[%s10008_s9 + $0x200] ss:$8 sps:$4 sm:$0xff]   ;;  %v9517_v9 = vld [vmem:[%s10008_s9 + $0x314] ss:$8 sps:$4 sm:$0xff]  }
 0x465   : > { %v6995_v19 = vcombine.low %v4172_v49, %v4172_v49  ;;  %v4163_v6 = vsel %vm503_vm0, %v4158_v43, %v4159_v15  ;;  %v6996_v34 = vcombine.high %v4172_v49, %v4172_v49  ;;  %v3212_v53 = vpop.permute.xlu1 %3211  ;;  %v3220_v25 = vsel %vm643_vm2, %v9039_v1, %v3219_v27 }
 0x466   : > { %v4156_v44 = vpop.permute.xlu0 %4155  ;;  %v4164_v10 = vsel %vm643_vm2, %v4152_v40, %v4163_v6  ;;  %v3216_v56 = vrot.slane %v3212_v53, 4  ;;  %v3229_v47 = vmax.bf16 %v3220_v25, %v8995_v5  ;;  %v3199_v43 = vmax.bf16 %v9028_v31, %v3167_v37  ;;  %v9524_v37 = vld [vmem:[%s10008_s9 + $0x310] ss:$8 sps:$4 sm:$0xff]  }
 0x467   : > { %v4160_v8 = vrot.slane %v4156_v44, 4  ;;  %4905 = vmatprep.mubr.bf16.mxu1 %v6996_v34  ;;  %v9250_v21 = vmax.bf16 %v4164_v10, %v9007_v48 }
 0x468   : > { %4906 = vmatmul.mubr.bf16.vlgmr.msra.gmra.mrb[32].mxu1 %v6995_v19  ;;  %v3221_v40 = vsel %vm503_vm0, %v3215_v12, %v3216_v56  ;;  %v3223_v57 = vsel %vm643_vm2, %v3212_v53, %v3216_v56  ;;  %v6878_v48 = vcombine.high %v3229_v47, %v3229_v47  ;;  %v6877_v12 = vcombine.low %v3229_v47, %v3229_v47  ;;  %v9397_v53 = vld [vmem:[%s10008_s9 + $0x294] ss:$8 sps:$4 sm:$0xff]   ;;  %v7543_v56 = vld [vmem:[%s10008_s9 + $0x320] ss:$8 sps:$4 sm:$0xff]  }
 0x469   : > { %v4165_v54 = vsel %vm503_vm0, %v4159_v15, %v4160_v8  ;;  %v4167_v1 = vsel %vm643_vm2, %v4156_v44, %v4160_v8  ;;  %4915 = vmatpush1.bf16.msra.mxu1 %v9049_v23  ;;  %v9261_v5 = vmax.bf16 %v3223_v57, %v3199_v43  ;;  %v6998_v31 = vcombine.high %v9250_v21, %v9250_v21  ;;  %v4104_v15 = vld [vmem:[#allocation4 + $0x2c] sm:$0xff]  ;;  %v9274_v23 = vld [vmem:[%s10008_s9 + $0x214] ss:$8 sps:$4 sm:$0xff]  }
 0x46a   : > { %v9259_v49 = vmax.bf16 %v4167_v1, %v4140_v52  ;;  %4916 = vmatprep.subr.bf16.mxu1 %v9054_v39  ;;  %v3222_v19 = vsel %vm643_vm2, %v3210_v29, %v3221_v40  ;;  %v4139_v6 = vmax.bf16 %v9016_v18, %v4104_v15  ;;  %v4166_v27 = vsel %vm643_vm2, %v4154_v14, %v4165_v54  ;;  %v9289_v29 = vld [vmem:[%s10008_s9 + $0x210] ss:$8 sps:$4 sm:$0xff]   ;;  %v5052_v14 = vld [vmem:[#allocation5 + $0x10] sm:$0xf]  ;;  %v7545_v8 = vld [vmem:[%s10008_s9 + $0x324] ss:$8 sps:$4 sm:$0xff]  }
 0x46b   : > { %4002 = vmatprep.mubr.bf16.mxu0 %v6878_v48  ;;  %4946 = vmatprep.mubr.bf16.mxu1 %v6998_v31  ;;  %v9280_v39 = vmax.bf16 %v3222_v19, %v9022_v3  ;;  %v9298_v3 = vld [vmem:[%s10008_s9 + $0x224] ss:$8 sps:$4 sm:$0xff]   ;;  %v5075_v44 = vld [vmem:[#allocation5 + $0x10] sm:$0xf]  ;;  %v6997_v25 = vcombine.low %v9250_v21, %v9250_v21  ;;  %v7548_v47 = vld [vmem:[%s10008_s9 + $0x334] ss:$8 sps:$4 sm:$0xff]   ;;  %v6881_v31 = vcombine.low %v9261_v5, %v9261_v5 }
 0x46c   : > { %4003 = vmatmul.mubr.bf16.vlgmr.msra.gmra.mrb[24].mxu0 %v6877_v12  ;;  %v9283_v34 = vmax.bf16 %v4166_v27, %v4139_v6  ;;  %5060 = vrot.lane.b32.xlu1 %v5052_v14, %s7634_s16  ;;  %v7546_v21 = vld [vmem:[%s10008_s9 + $0x330] ss:$8 sps:$4 sm:$0xff]   ;;  %v7551_v52 = vld [vmem:[%s10008_s9 + $0x344] ss:$8 sps:$4 sm:$0xff]   ;;  %v7549_v43 = vld [vmem:[%s10008_s9 + $0x340] ss:$8 sps:$4 sm:$0xff]   ;;  %v7001_v15 = vcombine.low %v9259_v49, %v9259_v49 }
 0x46d   : > { %4917 = vmatpush1.bf16.msra.mxu1 %v9060_v63  ;;  %4012 = vmatpush1.bf16.msra.mxu0 %v9266_v61  ;;  %v6880_v18 = vcombine.high %v9280_v39, %v9280_v39  ;;  %v9305_v63 = vld [vmem:[%s10008_s9 + $0x220] ss:$8 sps:$4 sm:$0xff]   ;;  %v6879_v10 = vcombine.low %v9280_v39, %v9280_v39  ;;  %v7554_v54 = vld [vmem:[%s10008_s9 + $0x354] ss:$8 sps:$4 sm:$0xff]   ;;  %v7552_v1 = vld [vmem:[%s10008_s9 + $0x350] ss:$8 sps:$4 sm:$0xff]  }
 0x46e   : > { %4918 = vmatprep.subr.bf16.mxu1 %v9066_v16  ;;  %4013 = vmatprep.subr.bf16.mxu0 %v9274_v23  ;;  %v9312_v16 = vld [vmem:[%s10008_s9 + $0x234] ss:$8 sps:$4 sm:$0xff]   ;;  %v7557_v40 = vld [vmem:[%s10008_s9 + $0x364] ss:$8 sps:$4 sm:$0xff]   ;;  %v7555_v57 = vld [vmem:[%s10008_s9 + $0x360] ss:$8 sps:$4 sm:$0xff]   ;;  %v6999_v5 = vcombine.low %v9283_v34, %v9283_v34 }
 0x46f   : > { %4043 = vmatprep.mubr.bf16.mxu0 %v6880_v18  ;;  %5083 = vrot.lane.b32.xlu0 %v5075_v44, %s7633_s15  ;;  %v7560_v48 = vld [vmem:[%s10008_s9 + $0x374] ss:$8 sps:$4 sm:$0xff]   ;;  %v5122_v12 = vld [vmem:[#allocation5 + $0x10] sm:$0xf] }
 0x470   : > { %v5170_v19 = vld [vmem:[#allocation5 + $0x10] sm:$0xf] }
 0x471   : > { %4919 = vmatpush1.bf16.msra.mxu1 %v9072_v13  ;;  %4014 = vmatpush1.bf16.msra.mxu0 %v9289_v29  ;;  %v9319_v13 = vld [vmem:[%s10008_s9 + $0x230] ss:$8 sps:$4 sm:$0xff]   ;;  %v5193_v6 = vld [vmem:[#allocation5 + $0x10] sm:$0xf] }
 0x472   : > { %4920 = vmatprep.subr.bf16.mxu1 %v9078_v62  ;;  %4015 = vmatprep.subr.bf16.mxu0 %v9298_v3  ;;  %v9326_v62 = vld [vmem:[%s10008_s9 + $0x244] ss:$8 sps:$4 sm:$0xff]  }
 0x473   : > { %5130 = vrot.lane.b32.xlu0 %v5122_v12, %s7643_s22 }
 0x475   : > { %4921 = vmatpush1.bf16.msra.mxu1 %v9084_v51  ;;  %4016 = vmatpush1.bf16.msra.mxu0 %v9305_v63  ;;  %v9333_v51 = vld [vmem:[%s10008_s9 + $0x240] ss:$8 sps:$4 sm:$0xff]  }
 0x476   : > { %4922 = vmatprep.subr.bf16.mxu1 %v9090_v35  ;;  %4017 = vmatprep.subr.bf16.mxu0 %v9312_v16  ;;  %v9340_v35 = vld [vmem:[%s10008_s9 + $0x254] ss:$8 sps:$4 sm:$0xff]  }
 0x477   : > { %5178 = vrot.lane.b32.xlu0 %v5170_v19, %s7635_s17 }
 0x479   : > { %4923 = vmatpush1.bf16.msra.mxu1 %v9096_v55  ;;  %4018 = vmatpush1.bf16.msra.mxu0 %v9319_v13  ;;  %v9347_v55 = vld [vmem:[%s10008_s9 + $0x250] ss:$8 sps:$4 sm:$0xff]  }
 0x47a   : > { %4924 = vmatprep.subr.bf16.mxu1 %v9102_v58  ;;  %4019 = vmatprep.subr.bf16.mxu0 %v9326_v62  ;;  %v9354_v58 = vld [vmem:[%s10008_s9 + $0x264] ss:$8 sps:$4 sm:$0xff]  }
 0x47d   : > { %4925 = vmatpush1.bf16.msra.mxu1 %v9108_v20  ;;  %4020 = vmatpush1.bf16.msra.mxu0 %v9333_v51  ;;  %v9361_v20 = vld [vmem:[%s10008_s9 + $0x260] ss:$8 sps:$4 sm:$0xff]  }
 0x47e   : > { %4926 = vmatprep.subr.bf16.mxu1 %v9114_v45  ;;  %4021 = vmatprep.subr.bf16.mxu0 %v9340_v35  ;;  %v9368_v45 = vld [vmem:[%s10008_s9 + $0x274] ss:$8 sps:$4 sm:$0xff]  }
 0x481   : > { %4927 = vmatpush1.bf16.msra.mxu1 %v9120_v4  ;;  %4022 = vmatpush1.bf16.msra.mxu0 %v9347_v55  ;;  %v9375_v4 = vld [vmem:[%s10008_s9 + $0x270] ss:$8 sps:$4 sm:$0xff]  }
 0x482   : > { %4928 = vmatprep.subr.bf16.mxu1 %v9126_v7  ;;  %4023 = vmatprep.subr.bf16.mxu0 %v9354_v58  ;;  %v9382_v7 = vld [vmem:[%s10008_s9 + $0x284] ss:$8 sps:$4 sm:$0xff]  }
 0x485   : > { %4929 = vmatpush1.bf16.msra.mxu1 %v9132_v30  ;;  %4024 = vmatpush1.bf16.msra.mxu0 %v9361_v20  ;;  %v9390_v30 = vld [vmem:[%s10008_s9 + $0x280] ss:$8 sps:$4 sm:$0xff]  }
 0x486   : > { %4930 = vmatprep.subr.bf16.mxu1 %v9138_v0  ;;  %4025 = vmatprep.subr.bf16.mxu0 %v9368_v45  ;;  %v5098_v0 = vld [vmem:[#allocation5 + $0x10] sm:$0xf] }
 0x487   : > { %5106 = vrot.lane.b32.xlu1 %v5098_v0, %s7642_s29 }
 0x489   : > { %4931 = vmatpush1.bf16.msra.mxu1 %v9144_v22  ;;  %4026 = vmatpush1.bf16.msra.mxu0 %v9375_v4  ;;  %v9406_v22 = vld [vmem:[%s10008_s9 + $0x290] ss:$8 sps:$4 sm:$0xff]  }
 0x48a   : > { %4932 = vmatprep.subr.bf16.mxu1 %v9150_v17  ;;  %4027 = vmatprep.subr.bf16.mxu0 %v9382_v7  ;;  %v9413_v17 = vld [vmem:[%s10008_s9 + $0x2a4] ss:$8 sps:$4 sm:$0xff]  }
 0x48d   : > { %4933 = vmatpush1.bf16.msra.mxu1 %v9156_v28  ;;  %4028 = vmatpush1.bf16.msra.mxu0 %v9390_v30  ;;  %v9420_v28 = vld [vmem:[%s10008_s9 + $0x2a0] ss:$8 sps:$4 sm:$0xff]  }
 0x48e   : > { %4934 = vmatprep.subr.bf16.mxu1 %v9162_v50  ;;  %4029 = vmatprep.subr.bf16.mxu0 %v9397_v53  ;;  %v9427_v50 = vld [vmem:[%s10008_s9 + $0x2b4] ss:$8 sps:$4 sm:$0xff]  }
 0x491   : > { %4935 = vmatpush1.bf16.msra.mxu1 %v9168_v38  ;;  %4030 = vmatpush1.bf16.msra.mxu0 %v9406_v22  ;;  %v9434_v38 = vld [vmem:[%s10008_s9 + $0x2b0] ss:$8 sps:$4 sm:$0xff]  }
 0x492   : > { %4936 = vmatprep.subr.bf16.mxu1 %v9174_v41  ;;  %4031 = vmatprep.subr.bf16.mxu0 %v9413_v17  ;;  %v9441_v41 = vld [vmem:[%s10008_s9 + $0x2c4] ss:$8 sps:$4 sm:$0xff]  }
 0x495   : > { %4937 = vmatpush1.bf16.msra.mxu1 %v9180_v32  ;;  %4032 = vmatpush1.bf16.msra.mxu0 %v9420_v28  ;;  %v9448_v32 = vld [vmem:[%s10008_s9 + $0x2c0] ss:$8 sps:$4 sm:$0xff]  }
 0x496   : > { %4938 = vmatprep.subr.bf16.mxu1 %v9186_v36  ;;  %4033 = vmatprep.subr.bf16.mxu0 %v9427_v50  ;;  %v9455_v36 = vld [vmem:[%s10008_s9 + $0x2d4] ss:$8 sps:$4 sm:$0xff]  }
 0x499   : > { %4939 = vmatpush1.bf16.msra.mxu1 %v9192_v11  ;;  %4034 = vmatpush1.bf16.msra.mxu0 %v9434_v38  ;;  %v9462_v11 = vld [vmem:[%s10008_s9 + $0x2d0] ss:$8 sps:$4 sm:$0xff]  }
 0x49a   : > { %4940 = vmatprep.subr.bf16.mxu1 %v9198_v24  ;;  %4035 = vmatprep.subr.bf16.mxu0 %v9441_v41  ;;  %v9469_v24 = vld [vmem:[%s10008_s9 + $0x2e4] ss:$8 sps:$4 sm:$0xff]  }
 0x49d   : > { %4941 = vmatpush1.bf16.msra.mxu1 %v9204_v60  ;;  %4036 = vmatpush1.bf16.msra.mxu0 %v9448_v32  ;;  %v9476_v60 = vld [vmem:[%s10008_s9 + $0x2e0] ss:$8 sps:$4 sm:$0xff]  }
 0x49e   : > { %4942 = vmatprep.subr.bf16.mxu1 %v9210_v59  ;;  %4037 = vmatprep.subr.bf16.mxu0 %v9455_v36  ;;  %v9483_v59 = vld [vmem:[%s10008_s9 + $0x2f4] ss:$8 sps:$4 sm:$0xff]  }
 0x4a1   : > { %4943 = vmatpush1.bf16.msra.mxu1 %v9216_v46  ;;  %4038 = vmatpush1.bf16.msra.mxu0 %v9462_v11  ;;  %v9490_v46 = vld [vmem:[%s10008_s9 + $0x2f0] ss:$8 sps:$4 sm:$0xff]  }
 0x4a2   : > { %4944 = vmatprep.subr.bf16.mxu1 %v9222_v33  ;;  %4039 = vmatprep.subr.bf16.mxu0 %v9469_v24  ;;  %v7000_v33 = vcombine.high %v9283_v34, %v9283_v34 }
 0x4a5   : > { %4945 = vmatpush1.bf16.msra.mxu1 %v9228_v42  ;;  %4040 = vmatpush1.bf16.msra.mxu0 %v9476_v60  ;;  %v9501_v42 = vld [vmem:[%s10008_s9 + $0x304] ss:$8 sps:$4 sm:$0xff]  }
 0x4a6   : > { %4955 = vmatprep.subr.bf16.mxu1 %v9234_v26  ;;  %4041 = vmatprep.subr.bf16.mxu0 %v9483_v59  ;;  %v9508_v26 = vld [vmem:[%s10008_s9 + $0x300] ss:$8 sps:$4 sm:$0xff]  }
 0x4a8   : > { %4947 = vmatmul.mubr.bf16.vlgmr.msra.gmra.mrb[32].mxu1 %v6997_v25 }
 0x4a9   : > { %4956 = vmatpush1.bf16.msra.mxu1 %v9266_v61  ;;  %4987 = vmatprep.mubr.bf16.mxu1 %v7000_v33  ;;  %v7558_v61 = vld [vmem:[%s10008_s9 + $0x370] ss:$8 sps:$4 sm:$0xff]  }
 0x4aa   : > { %4042 = vmatpush1.bf16.msra.mxu0 %v9490_v46  ;;  %4957 = vmatprep.subr.bf16.mxu1 %v9274_v23  ;;  %v5146_v23 = vld [vmem:[#allocation5 + $0x10] sm:$0xf] }
 0x4ab   : > { %4052 = vmatprep.subr.bf16.mxu0 %v9501_v42  ;;  %5154 = vrot.lane.b32.xlu1 %v5146_v23, %s7644_s23 }
 0x4ad   : > { %4044 = vmatmul.mubr.bf16.vlgmr.msra.gmra.mrb[24].mxu0 %v6879_v10  ;;  %4958 = vmatpush1.bf16.msra.mxu1 %v9289_v29 }
 0x4ae   : > { %4053 = vmatpush1.bf16.msra.mxu0 %v9508_v26  ;;  %4959 = vmatprep.subr.bf16.mxu1 %v9298_v3 }
 0x4af   : > { %4054 = vmatprep.subr.bf16.mxu0 %v9517_v9  ;;  %4084 = vmatprep.mubr.bf16.mxu0 %v7640_v2 }
 0x4b0   : > { %5201 = vrot.lane.b32.xlu1 %v5193_v6, %s7636_s18 }
 0x4b1   : > { %4960 = vmatpush1.bf16.msra.mxu1 %v9305_v63 }
 0x4b2   : > { %4055 = vmatpush1.bf16.msra.mxu0 %v9524_v37  ;;  %4961 = vmatprep.subr.bf16.mxu1 %v9312_v16 }
 0x4b3   : > { %4056 = vmatprep.subr.bf16.mxu0 %v7545_v8 }
 0x4b5   : > { %4962 = vmatpush1.bf16.msra.mxu1 %v9319_v13 }
 0x4b6   : > { %4057 = vmatpush1.bf16.msra.mxu0 %v7543_v56  ;;  %4963 = vmatprep.subr.bf16.mxu1 %v9326_v62  ;;  %v5216_v62 = vld [vmem:[#allocation5 + $0x10] sm:$0xf] }
 0x4b7   : > { %4058 = vmatprep.subr.bf16.mxu0 %v7548_v47 }
 0x4b9   : > { %4964 = vmatpush1.bf16.msra.mxu1 %v9333_v51  ;;  %v5256_v51 = vld [vmem:[%s10005_s6] sm:$0xff] }
 0x4ba   : > { %4059 = vmatpush1.bf16.msra.mxu0 %v7546_v21  ;;  %4965 = vmatprep.subr.bf16.mxu1 %v9340_v35  ;;  %v5477_v35 = vld [vmem:[#allocation6 + $0x10] sm:$0xf] }
 0x4bb   : > { %4060 = vmatprep.subr.bf16.mxu0 %v7551_v52 }
 0x4bd   : > { %4966 = vmatpush1.bf16.msra.mxu1 %v9347_v55 }
 0x4be   : > { %4061 = vmatpush1.bf16.msra.mxu0 %v7549_v43  ;;  %4967 = vmatprep.subr.bf16.mxu1 %v9354_v58 }
 0x4bf   : > { %4062 = vmatprep.subr.bf16.mxu0 %v7554_v54 }
 0x4c1   : > { %4968 = vmatpush1.bf16.msra.mxu1 %v9361_v20 }
 0x4c2   : > { %4063 = vmatpush1.bf16.msra.mxu0 %v7552_v1  ;;  %4969 = vmatprep.subr.bf16.mxu1 %v9368_v45 }
 0x4c3   : > { %4064 = vmatprep.subr.bf16.mxu0 %v7557_v40 }
 0x4c5   : > { %4970 = vmatpush1.bf16.msra.mxu1 %v9375_v4 }
 0x4c6   : > { %4065 = vmatpush1.bf16.msra.mxu0 %v7555_v57  ;;  %4971 = vmatprep.subr.bf16.mxu1 %v9382_v7 }
 0x4c7   : > { %4066 = vmatprep.subr.bf16.mxu0 %v7560_v48 }
 0x4c9   : > { %4972 = vmatpush1.bf16.msra.mxu1 %v9390_v30 }
 0x4ca   : > { %4067 = vmatpush1.bf16.msra.mxu0 %v7558_v61  ;;  %4973 = vmatprep.subr.bf16.mxu1 %v9397_v53 }
 0x4cd   : > { %4085 = vmatmul.mubr.bf16.vlgmr.msra.gmra.mrb[24].mxu0 %v6881_v31  ;;  %4974 = vmatpush1.bf16.msra.mxu1 %v9406_v22 }
 0x4ce   : > { %4975 = vmatprep.subr.bf16.mxu1 %v9413_v17  ;;  %5399 = vmatprep.mubr.bf16.mxu0 %v7640_v2 }
 0x4d1   : > { %4976 = vmatpush1.bf16.msra.mxu1 %v9420_v28 }
 0x4d2   : > { %4977 = vmatprep.subr.bf16.mxu1 %v9427_v50 }
 0x4d5   : > { %4978 = vmatpush1.bf16.msra.mxu1 %v9434_v38 }
 0x4d6   : > { %4979 = vmatprep.subr.bf16.mxu1 %v9441_v41 }
 0x4d9   : > { %4980 = vmatpush1.bf16.msra.mxu1 %v9448_v32 }
 0x4da   : > { %4981 = vmatprep.subr.bf16.mxu1 %v9455_v36 }
 0x4dd   : > { %4982 = vmatpush1.bf16.msra.mxu1 %v9462_v11 }
 0x4de   : > { %4983 = vmatprep.subr.bf16.mxu1 %v9469_v24  ;;  %v5061_v55 = vpop.permute.xlu1 %5060 }
 0x4df   : > { %v5064_v38 = vrot.slane %v5061_v55, 4 }
 0x4e1   : > { %4984 = vmatpush1.bf16.msra.mxu1 %v9476_v60  ;;  %v5084_v58 = vpop.permute.xlu0 %5083 }
 0x4e2   : > { %4985 = vmatprep.subr.bf16.mxu1 %v9483_v59  ;;  %v5087_v41 = vrot.slane %v5084_v58, 4 }
 0x4e5   : > { %4986 = vmatpush1.bf16.msra.mxu1 %v9490_v46  ;;  %v5131_v45 = vpop.permute.xlu0 %5130 }
 0x4e6   : > { %4996 = vmatprep.subr.bf16.mxu1 %v9501_v42  ;;  %v5134_v36 = vrot.slane %v5131_v45, 4 }
 0x4e8   : > { %4988 = vmatmul.mubr.bf16.vlgmr.msra.gmra.mrb[32].mxu1 %v6999_v5 }
 0x4e9   : > { %4997 = vmatpush1.bf16.msra.mxu1 %v9508_v26  ;;  %5028 = vmatprep.mubr.bf16.mxu1 %v7640_v2  ;;  %v9653_v7 = vpop.permute.xlu0 %5178 }
 0x4ea   : > { %4998 = vmatprep.subr.bf16.mxu1 %v9517_v9  ;;  %v5182_v24 = vrot.slane %v9653_v7, 4 }
 0x4ed   : > { %4999 = vmatpush1.bf16.msra.mxu1 %v9524_v37 }
 0x4ee   : > { %5000 = vmatprep.subr.bf16.mxu1 %v7545_v8 }
 0x4f1   : > { %5001 = vmatpush1.bf16.msra.mxu1 %v7543_v56 }
 0x4f2   : > { %5002 = vmatprep.subr.bf16.mxu1 %v7548_v47 }
 0x4f5   : > { %5003 = vmatpush1.bf16.msra.mxu1 %v7546_v21 }
 0x4f6   : > { %5004 = vmatprep.subr.bf16.mxu1 %v7551_v52 }
 0x4f9   : > { %5005 = vmatpush1.bf16.msra.mxu1 %v7549_v43  ;;  %v5107_v20 = vpop.permute.xlu1 %5106 }
 0x4fa   : > { %5006 = vmatprep.subr.bf16.mxu1 %v7554_v54  ;;  %v5110_v32 = vrot.slane %v5107_v20, 4 }
 0x4fd   : > { %5007 = vmatpush1.bf16.msra.mxu1 %v7552_v1 }
 0x4fe   : > { %5008 = vmatprep.subr.bf16.mxu1 %v7557_v40 }
 0x501   : > { %5009 = vmatpush1.bf16.msra.mxu1 %v7555_v57 }
 0x502   : > { %5010 = vmatprep.subr.bf16.mxu1 %v7560_v48 }
 0x505   : > { %5011 = vmatpush1.bf16.msra.mxu1 %v7558_v61 }
 0x508   : > { %5029 = vmatmul.mubr.bf16.vlgmr.msra.gmra.mrb[32].mxu1 %v7001_v15 }
 0x509   : > { %5440 = vmatprep.mubr.bf16.mxu1 %v7640_v2 }
 0x51d   : > { %v9651_v4 = vpop.permute.xlu1 %5154 }
 0x51e   : > { %v5158_v11 = vrot.slane %v9651_v4, 4 }
 0x522   : > { %v9655_v14 = vpop.permute.xlu1 %5201 }
 0x523   : > { %v5205_v46 = vrot.slane %v9655_v14, 4 }
 0x5a0   : > { %v4086_v27 = vpop.f32.mrb[24].mxu0 }
 0x5a1   : > { %v4088_v39 = vpop.f32.mrb[25].mxu0 }
 0x5a2   : > { %v9610_v49 = vpack.c.bf16 %v4088_v39, %v4086_v27  ;;  %v4090_v34 = vpop.f32.mrb[26].mxu0 }
 0x5a3   : > { %v4091_v29 = vpop.f32.mrb[27].mxu0 }
 0x5a4   : > { %5079 = vrot.lane.b32.xlu0 %v9610_v49, %s7633_s15  ;;  %5056 = vrot.lane.b32.xlu1 %v9610_v49, %s7634_s16 }
 0x5a8   : > { %5126 = vrot.lane.b32.xlu0 %v9610_v49, %s7643_s22  ;;  %5102 = vrot.lane.b32.xlu1 %v9610_v49, %s7642_s29 }
 0x5ac   : > { %5174 = vrot.lane.b32.xlu0 %v9610_v49, %s7635_s17  ;;  %5150 = vrot.lane.b32.xlu1 %v9610_v49, %s7644_s23 }
 0x5b0   : > { %5220 = vrot.lane.b32.xlu0 %v9610_v49, %s7637_s19  ;;  %5197 = vrot.lane.b32.xlu1 %v9610_v49, %s7636_s18 }
 0x5db   : > { %v5030_v18 = vpop.f32.mrb[32].mxu1 }
 0x5dc   : > { %v5032_v3 = vpop.f32.mrb[33].mxu1 }
 0x5dd   : > { %v9628_v63 = vpack.c.bf16 %v5032_v3, %v5030_v18  ;;  %v5034_v16 = vpop.f32.mrb[34].mxu1 }
 0x5de   : > { %v5035_v13 = vpop.f32.mrb[35].mxu1 }
 0x5df   : > { %5058 = vrot.lane.b32.xlu0 %v9628_v63, %s7634_s16  ;;  %5081 = vrot.lane.b32.xlu1 %v9628_v63, %s7633_s15 }
 0x5e3   : > { %5104 = vrot.lane.b32.xlu0 %v9628_v63, %s7642_s29  ;;  %5128 = vrot.lane.b32.xlu1 %v9628_v63, %s7643_s22 }
 0x5e7   : > { %5152 = vrot.lane.b32.xlu0 %v9628_v63, %s7644_s23  ;;  %5176 = vrot.lane.b32.xlu1 %v9628_v63, %s7635_s17 }
 0x5eb   : > { %5199 = vrot.lane.b32.xlu0 %v9628_v63, %s7636_s18  ;;  %5222 = vrot.lane.b32.xlu1 %v9628_v63, %s7637_s19 }
 0x5ef   : > { %5224 = vrot.lane.b32.xlu0 %v5216_v62, %s7637_s19  ;;  %5259 = vperm.xlu1 %7392, %v5256_v51  }
 0x5f3   : > { %5485 = vrot.lane.b32.xlu0 %v5477_v35, %s7634_s16 }
 0x616   : > { %v5080_v44 = vpop.permute.xlu0 %5079  ;;  %v5057_v30 = vpop.permute.xlu1 %5056 }
 0x617   : > { %v5062_v25 = vrot.slane %v5057_v30, 4  ;;  %v5085_v26 = vrot.slane %v5080_v44, 4 }
 0x61a   : > { %v9657_v0 = vpop.permute.xlu0 %5126  ;;  %v5103_v53 = vpop.permute.xlu1 %5102 }
 0x61b   : > { %v5132_v10 = vrot.slane %v9657_v0, 4  ;;  %v5108_v56 = vrot.slane %v5103_v53, 4 }
 0x61e   : > { %v9659_v22 = vpop.permute.xlu0 %5174  ;;  %v9661_v17 = vpop.permute.xlu1 %5150 }
 0x61f   : > { %v5180_v61 = vrot.slane %v9659_v22, 4  ;;  %v5156_v27 = vrot.slane %v9661_v17, 4 }
 0x622   : > { %v9663_v28 = vpop.permute.xlu0 %5220  ;;  %v9665_v50 = vpop.permute.xlu1 %5197 }
 0x623   : > { %v5226_v62 = vrot.slane %v9663_v28, 4  ;;  %v5203_v7 = vrot.slane %v9665_v50, 4 }
 0x651   : > { %v5059_v60 = vpop.permute.xlu0 %5058  ;;  %v5082_v59 = vpop.permute.xlu1 %5081 }
 0x652   : > { %v5063_v33 = vrot.slane %v5059_v60, 4  ;;  %v5086_v42 = vrot.slane %v5082_v59, 4 }
 0x654   : > { %v5065_v9 = vsel %vm503_vm0, %v5062_v25, %v5063_v33  ;;  %v5067_v37 = vsel %vm503_vm0, %v5063_v33, %v5064_v38  ;;  %v5090_v8 = vsel %vm503_vm0, %v5086_v42, %v5087_v41  ;;  %v5088_v21 = vsel %vm503_vm0, %v5085_v26, %v5086_v42 }
 0x655   : > { %v5068_v47 = vsel %vm505_vm1, %v5059_v60, %v5067_v37  ;;  %v5105_v52 = vpop.permute.xlu0 %5104  ;;  %v5129_v43 = vpop.permute.xlu1 %5128  ;;  %v5066_v54 = vsel %vm505_vm1, %v5057_v30, %v5065_v9  ;;  %v5091_v31 = vsel %vm574_vm3, %v5082_v59, %v5090_v8  ;;  %v5089_v6 = vsel %vm574_vm3, %v5080_v44, %v5088_v21 }
 0x656   : > { %v7117_v1 = vcombine.low %v9628_v63, %v5068_v47  ;;  %v7118_v40 = vcombine.high %v9628_v63, %v5068_v47  ;;  %v5109_v57 = vrot.slane %v5105_v52, 4  ;;  %v5133_v48 = vrot.slane %v5129_v43, 4 }
 0x657   : > { %v7115_v5 = vcombine.low %v9610_v49, %v5066_v54  ;;  %v7116_v15 = vcombine.high %v9610_v49, %v5066_v54 }
 0x658   : > { %v5111_v12 = vsel %vm503_vm0, %v5108_v56, %v5109_v57  ;;  %v5114_v23 = vsel %vm503_vm0, %v5109_v57, %v5110_v32  ;;  %v5138_v19 = vsel %vm503_vm0, %v5133_v48, %v5134_v36  ;;  %5408 = vmatprep.subr.bf16.mxu1 %v7118_v40  ;;  %v5135_v34 = vsel %vm503_vm0, %v5132_v10, %v5133_v48  ;;  %v5237_v40 = vld [vmem:[%s10004_s5] sm:$0xf]  ;;  %v5523_v57 = vld [vmem:[#allocation6 + $0x10] sm:$0xf] }
 0x659   : > { %v5115_v39 = vsel %vm5112_vm9, %v5105_v52, %v5114_v23  ;;  %5367 = vmatprep.subr.bf16.mxu0 %v7116_v15  ;;  %v5153_v29 = vpop.permute.xlu0 %5152  ;;  %5409 = vmatpush1.bf16.msra.mxu1 %v7117_v1  ;;  %v5177_v18 = vpop.permute.xlu1 %5176  ;;  %v5113_v49 = vsel %vm5112_vm9, %v5103_v53, %v5111_v12  ;;  %v5139_v51 = vsel %vm5136_vm10, %v5129_v43, %v5138_v19  ;;  %v5500_v48 = vld [vmem:[#allocation6 + $0x10] sm:$0xf] }
 0x65a   : > { %v7121_v3 = vcombine.low %v5091_v31, %v5115_v39  ;;  %v7122_v63 = vcombine.high %v5091_v31, %v5115_v39  ;;  %v5157_v16 = vrot.slane %v5153_v29, 4  ;;  %5368 = vmatpush1.bf16.msra.mxu0 %v7115_v5  ;;  %v5181_v13 = vrot.slane %v5177_v18, 4  ;;  %5531 = vrot.lane.b32.xlu0 %v5523_v57, %s7642_s29  ;;  %v5546_v31 = vld [vmem:[#allocation6 + $0x10] sm:$0xf] }
 0x65b   : > { %v7119_v35 = vcombine.low %v5089_v6, %v5113_v49  ;;  %v7120_v55 = vcombine.high %v5089_v6, %v5113_v49  ;;  %v5137_v4 = vsel %vm5136_vm10, %v9657_v0, %v5135_v34  ;;  %5508 = vrot.lane.b32.xlu1 %v5500_v48, %s7633_s15  ;;  %v5615_v5 = vld [vmem:[#allocation6 + $0x10] sm:$0xf] }
 0x65c   : > { %v5159_v58 = vsel %vm503_vm0, %v5156_v27, %v5157_v16  ;;  %v5162_v20 = vsel %vm503_vm0, %v5157_v16, %v5158_v11  ;;  %v5185_v45 = vsel %vm503_vm0, %v5181_v13, %v5182_v24  ;;  %5410 = vmatprep.subr.bf16.mxu1 %v7122_v63  ;;  %v5183_v30 = vsel %vm503_vm0, %v5180_v61, %v5181_v13  ;;  %v5569_v61 = vld [vmem:[#allocation6 + $0x10] sm:$0xf] }
 0x65d   : > { %v5163_v44 = vsel %vm5160_vm11, %v5153_v29, %v5162_v20  ;;  %5369 = vmatprep.subr.bf16.mxu0 %v7120_v55  ;;  %v5200_v53 = vpop.permute.xlu0 %5199  ;;  %5411 = vmatpush1.bf16.msra.mxu1 %v7121_v3  ;;  %v5223_v38 = vpop.permute.xlu1 %5222  ;;  %v5161_v41 = vsel %vm5160_vm11, %v9661_v17, %v5159_v58  ;;  %v5186_v0 = vsel %vm643_vm2, %v5177_v18, %v5185_v45  ;;  %v5592_v15 = vld [vmem:[#allocation6 + $0x10] sm:$0xf]  ;;  %v5678_v20 = vld [vmem:[%s10007_s8] sm:$0xff] }
 0x65e   : > { %v7125_v32 = vcombine.low %v5139_v51, %v5163_v44  ;;  %v7126_v36 = vcombine.high %v5139_v51, %v5163_v44  ;;  %v5204_v11 = vrot.slane %v5200_v53, 4  ;;  %5370 = vmatpush1.bf16.msra.mxu0 %v7119_v35  ;;  %v5227_v24 = vrot.slane %v5223_v38, 4  ;;  %5577 = vrot.lane.b32.xlu0 %v5569_v61, %s7644_s23  ;;  %v5638_v58 = vld [vmem:[#allocation6 + $0x10] sm:$0xf] }
 0x65f   : > { %v7123_v60 = vcombine.low %v5137_v4, %v5161_v41  ;;  %v7124_v59 = vcombine.high %v5137_v4, %v5161_v41  ;;  %v5184_v17 = vsel %vm643_vm2, %v9659_v22, %v5183_v30  ;;  %5554 = vrot.lane.b32.xlu1 %v5546_v31, %s7643_s22 }
 0x660   : > { %v5206_v25 = vsel %vm503_vm0, %v5203_v7, %v5204_v11  ;;  %v5208_v33 = vsel %vm503_vm0, %v5204_v11, %v5205_v46  ;;  %v5229_v42 = vsel %vm503_vm0, %v5226_v62, %v5227_v24  ;;  %5412 = vmatprep.subr.bf16.mxu1 %v7126_v36 }
 0x661   : > { %v5209_v26 = vsel %vm712_vm4, %v5200_v53, %v5208_v33  ;;  %5371 = vmatprep.subr.bf16.mxu0 %v7124_v59  ;;  %v5225_v10 = vpop.permute.xlu0 %5224  ;;  %5413 = vmatpush1.bf16.msra.mxu1 %v7125_v32  ;;  %v5207_v9 = vsel %vm712_vm4, %v9665_v50, %v5206_v25  ;;  %v5230_v37 = vsel %vm781_vm5, %v9663_v28, %v5229_v42 }
 0x662   : > { %v7129_v14 = vcombine.low %v5186_v0, %v5209_v26  ;;  %v7130_v8 = vcombine.high %v5186_v0, %v5209_v26  ;;  %v5228_v46 = vrot.slane %v5225_v10, 4  ;;  %5372 = vmatpush1.bf16.msra.mxu0 %v7123_v60  ;;  %v7127_v56 = vcombine.low %v5184_v17, %v5207_v9  ;;  %5623 = vrot.lane.b32.xlu0 %v5615_v5, %s7636_s18 }
 0x663   : > { %v7128_v47 = vcombine.high %v5184_v17, %v5207_v9  ;;  %v7132_v52 = vcombine.high %v5230_v37, %v5230_v37  ;;  %v7131_v43 = vcombine.low %v5230_v37, %v5230_v37  ;;  %5600 = vrot.lane.b32.xlu1 %v5592_v15, %s7635_s17 }
 0x664   : > { %v5231_v21 = vsel %vm503_vm0, %v5227_v24, %v5228_v46  ;;  %5414 = vmatprep.subr.bf16.mxu1 %v7130_v8 }
 0x665   : > { %v5232_v22 = vsel %vm781_vm5, %v5223_v38, %v5231_v21  ;;  %5373 = vmatprep.subr.bf16.mxu0 %v7128_v47  ;;  %5415 = vmatpush1.bf16.msra.mxu1 %v7129_v14  ;;  %v5356_v1 = vsel %vm503_vm0, %v7131_v43, 0  ;;  %v5486_v45 = vpop.permute.xlu0 %5485 }
 0x666   : > { %5374 = vmatpush1.bf16.msra.mxu0 %v7127_v56  ;;  %v7134_v50 = vcombine.high %v5232_v22, %v5232_v22  ;;  %v7133_v54 = vcombine.low %v5232_v22, %v5232_v22  ;;  %v5489_v32 = vrot.slane %v5486_v45, 4 }
 0x667   : > { %7135 = vmatprep.subr.msk.bf16.mxu0 %vm503_vm0, %v7132_v52 }
 0x668   : > { %7137 = vmatprep.subr.msk.bf16.mxu1 %vm503_vm0, %v7134_v50  ;;  %v5362_v28 = vsel %vm503_vm0, %v7133_v54, 0 }
 0x669   : > { %5417 = vmatpush1.bf16.msra.mxu1 %v5362_v28 }
 0x66a   : > { %5376 = vmatpush1.bf16.msra.mxu0 %v5356_v1 }
 0x66c   : > { %7138 = vmatmul.mubr.msk.bf16.vlgmr.msra.gmra.mrb[36].mxu1 %vm850_vm6, %v5237_v40 }
 0x66d   : > { %7136 = vmatmul.mubr.msk.bf16.vlgmr.msra.gmra.mrb[28].mxu0 %vm850_vm6, %v5237_v40  ;;  %5862 = vmatprep.mubr.bf16.mxu1 %v7640_v2 }
 0x66e   : > { %5821 = vmatprep.mubr.bf16.mxu0 %v7640_v2  ;;  %v5260_v12 = vpop.permute.xlu1 %5259 }
 0x6cc   : > { %v5532_v7 = vpop.permute.xlu0 %5531 }
 0x6cd   : > { %v5509_v4 = vpop.permute.xlu1 %5508  ;;  %v5535_v56 = vrot.slane %v5532_v7, 4 }
 0x6ce   : > { %v5512_v8 = vrot.slane %v5509_v4, 4 }
 0x6d0   : > { %v5578_v30 = vpop.permute.xlu0 %5577 }
 0x6d1   : > { %v5555_v44 = vpop.permute.xlu1 %5554 }
 0x6d4   : > { %v9757_v38 = vpop.permute.xlu0 %5623 }
 0x6d5   : > { %v9755_v53 = vpop.permute.xlu1 %5600 }
 0x73f   : > { %v5442_v2 = vpop.f32.mrb[36].mxu1 }
 0x740   : > { %v5401_v23 = vpop.f32.mrb[28].mxu0  ;;  %v5443_v19 = vadd.f32 %v5442_v2, %v5260_v12  ;;  %v5444_v6 = vpop.f32.mrb[37].mxu1 }
 0x741   : > { %v5402_v27 = vadd.f32 %v5401_v23, %v5260_v12  ;;  %v5403_v39 = vpop.f32.mrb[29].mxu0  ;;  %v5445_v34 = vadd.f32 %v5444_v6, %v5260_v12  ;;  %v5446_v29 = vpop.f32.mrb[38].mxu1 }
 0x742   : > { %v5404_v18 = vadd.f32 %v5403_v39, %v5260_v12  ;;  %v5451_v49 = vmax.f32 %v5443_v19, 0.0  ;;  %v5405_v3 = vpop.f32.mrb[30].mxu0  ;;  %v5447_v63 = vpop.f32.mrb[39].mxu1  ;;  %v5558_v19 = vrot.slane %v5555_v44, 4 }
 0x743   : > { %v5449_v16 = vmax.f32 %v5402_v27, 0.0  ;;  %v5452_v13 = vmax.f32 %v5445_v34, 0.0  ;;  %v5406_v62 = vpop.f32.mrb[31].mxu0  ;;  %v5581_v27 = vrot.slane %v5578_v30, 4  ;;  %v5604_v30 = vrot.slane %v9755_v53, 4 }
 0x744   : > { %v5450_v51 = vmax.f32 %v5404_v18, 0.0 }
 0x745   : > { %v7255_v35 = vpack.c.bf16 %v5452_v13, %v5451_v49 }
 0x746   : > { %v7254_v55 = vpack.c.bf16 %v5450_v51, %v5449_v16 }
 0x747   : > { %5483 = vrot.lane.b32.xlu1 %v7255_v35, %s7634_s16 }
 0x748   : > { %5481 = vrot.lane.b32.xlu0 %v7254_v55, %s7634_s16 }
 0x74b   : > { %5504 = vrot.lane.b32.xlu1 %v7254_v55, %s7633_s15 }
 0x74c   : > { %5506 = vrot.lane.b32.xlu0 %v7255_v35, %s7633_s15 }
 0x74f   : > { %5529 = vrot.lane.b32.xlu1 %v7255_v35, %s7642_s29 }
 0x750   : > { %5527 = vrot.lane.b32.xlu0 %v7254_v55, %s7642_s29 }
 0x753   : > { %5550 = vrot.lane.b32.xlu1 %v7254_v55, %s7643_s22 }
 0x754   : > { %5552 = vrot.lane.b32.xlu0 %v7255_v35, %s7643_s22 }
 0x757   : > { %5575 = vrot.lane.b32.xlu1 %v7255_v35, %s7644_s23 }
 0x758   : > { %5573 = vrot.lane.b32.xlu0 %v7254_v55, %s7644_s23 }
 0x75b   : > { %5596 = vrot.lane.b32.xlu1 %v7254_v55, %s7635_s17 }
 0x75c   : > { %5598 = vrot.lane.b32.xlu0 %v7255_v35, %s7635_s17  ;;  %s7650_s17 = smov 120  }
 0x75f   : > { %5621 = vrot.lane.b32.xlu1 %v7255_v35, %s7636_s18 }
 0x760   : > { %5619 = vrot.lane.b32.xlu0 %v7254_v55, %s7636_s18  ;;  %s7652_s18 = smov 118  }
 0x763   : > { %5642 = vrot.lane.b32.xlu1 %v7254_v55, %s7637_s19 }
 0x764   : > { %5644 = vrot.lane.b32.xlu0 %v7255_v35, %s7637_s19 }
 0x767   : > { %5646 = vrot.lane.b32.xlu1 %v5638_v58, %s7637_s19  ;;  %s7654_s19 = smov 111  }
 0x768   : > { %5681 = vperm.xlu0 %7391, %v5678_v20  }
 0x7b9   : > { %v5484_v41 = vpop.permute.xlu1 %5483 }
 0x7ba   : > { %v5482_v36 = vpop.permute.xlu0 %5481  ;;  %v5488_v11 = vrot.slane %v5484_v41, 4 }
 0x7bb   : > { %v5487_v24 = vrot.slane %v5482_v36, 4 }
 0x7bc   : > { %v5492_v0 = vsel %vm503_vm0, %v5488_v11, %v5489_v32  ;;  %v5627_v32 = vrot.slane %v9757_v38, 4 }
 0x7bd   : > { %v5490_v60 = vsel %vm503_vm0, %v5487_v24, %v5488_v11  ;;  %v5493_v59 = vsel %vm505_vm1, %v5484_v41, %v5492_v0  ;;  %v5505_v25 = vpop.permute.xlu1 %5504 }
 0x7be   : > { %v7143_v33 = vcombine.low %v7255_v35, %v5493_v59  ;;  %v7144_v42 = vcombine.high %v7255_v35, %v5493_v59  ;;  %v5507_v17 = vpop.permute.xlu0 %5506  ;;  %v5510_v26 = vrot.slane %v5505_v25, 4  ;;  %v5491_v10 = vsel %vm505_vm1, %v5482_v36, %v5490_v60 }
 0x7bf   : > { %v5511_v9 = vrot.slane %v5507_v17, 4  ;;  %v7141_v37 = vcombine.low %v7254_v55, %v5491_v10  ;;  %v7142_v14 = vcombine.high %v7254_v55, %v5491_v10 }
 0x7c0   : > { %5830 = vmatprep.subr.bf16.mxu1 %v7144_v42 }
 0x7c1   : > { %5789 = vmatprep.subr.bf16.mxu0 %v7142_v14  ;;  %5831 = vmatpush1.bf16.msra.mxu1 %v7143_v33  ;;  %v5530_v46 = vpop.permute.xlu1 %5529  ;;  %v5515_v47 = vsel %vm503_vm0, %v5511_v9, %v5512_v8  ;;  %v5513_v21 = vsel %vm503_vm0, %v5510_v26, %v5511_v9 }
 0x7c2   : > { %v5528_v22 = vpop.permute.xlu0 %5527  ;;  %5790 = vmatpush1.bf16.msra.mxu0 %v7141_v37  ;;  %v5534_v52 = vrot.slane %v5530_v46, 4  ;;  %v5516_v54 = vsel %vm574_vm3, %v5507_v17, %v5515_v47  ;;  %v5514_v28 = vsel %vm574_vm3, %v5505_v25, %v5513_v21 }
 0x7c3   : > { %v5533_v43 = vrot.slane %v5528_v22, 4 }
 0x7c4   : > { %v5538_v50 = vsel %vm503_vm0, %v5534_v52, %v5535_v56 }
 0x7c5   : > { %v5536_v1 = vsel %vm503_vm0, %v5533_v43, %v5534_v52  ;;  %v5539_v40 = vsel %vm5112_vm9, %v5530_v46, %v5538_v50  ;;  %v5551_v57 = vpop.permute.xlu1 %5550 }
 0x7c6   : > { %v7147_v48 = vcombine.low %v5516_v54, %v5539_v40  ;;  %v7148_v61 = vcombine.high %v5516_v54, %v5539_v40  ;;  %v5553_v31 = vpop.permute.xlu0 %5552  ;;  %v5556_v5 = vrot.slane %v5551_v57, 4  ;;  %v5537_v15 = vsel %vm5112_vm9, %v5528_v22, %v5536_v1  ;;  %v5659_v1 = vld [vmem:[%s10006_s7] sm:$0xf] }
 0x7c7   : > { %v5557_v12 = vrot.slane %v5553_v31, 4  ;;  %v7145_v2 = vcombine.low %v5514_v28, %v5537_v15  ;;  %v7146_v23 = vcombine.high %v5514_v28, %v5537_v15 }
 0x7c8   : > { %5832 = vmatprep.subr.bf16.mxu1 %v7148_v61 }
 0x7c9   : > { %5791 = vmatprep.subr.bf16.mxu0 %v7146_v23  ;;  %5833 = vmatpush1.bf16.msra.mxu1 %v7147_v48  ;;  %v5576_v6 = vpop.permute.xlu1 %5575  ;;  %v5561_v39 = vsel %vm503_vm0, %v5557_v12, %v5558_v19  ;;  %v5559_v34 = vsel %vm503_vm0, %v5556_v5, %v5557_v12 }
 0x7ca   : > { %v5574_v29 = vpop.permute.xlu0 %5573  ;;  %5792 = vmatpush1.bf16.msra.mxu0 %v7145_v2  ;;  %v5580_v18 = vrot.slane %v5576_v6, 4  ;;  %v5562_v63 = vsel %vm5136_vm10, %v5553_v31, %v5561_v39  ;;  %v5560_v16 = vsel %vm5136_vm10, %v5551_v57, %v5559_v34 }
 0x7cb   : > { %v5579_v49 = vrot.slane %v5574_v29, 4 }
 0x7cc   : > { %v5584_v3 = vsel %vm503_vm0, %v5580_v18, %v5581_v27 }
 0x7cd   : > { %v5582_v13 = vsel %vm503_vm0, %v5579_v49, %v5580_v18  ;;  %v5585_v62 = vsel %vm5160_vm11, %v5576_v6, %v5584_v3  ;;  %v5597_v51 = vpop.permute.xlu1 %5596 }
 0x7ce   : > { %v7151_v35 = vcombine.low %v5562_v63, %v5585_v62  ;;  %v7152_v55 = vcombine.high %v5562_v63, %v5585_v62  ;;  %v5599_v58 = vpop.permute.xlu0 %5598  ;;  %v5602_v20 = vrot.slane %v5597_v51, 4  ;;  %v5583_v45 = vsel %vm5160_vm11, %v5574_v29, %v5582_v13  ;;  %v7561_v62 = vld [vmem:[%s10009_s10 + $0x40] sm:$0xff]  }
 0x7cf   : > { %v5603_v4 = vrot.slane %v5599_v58, 4  ;;  %v7149_v7 = vcombine.low %v5560_v16, %v5583_v45  ;;  %v7150_v44 = vcombine.high %v5560_v16, %v5583_v45  ;;  %v7568_v45 = vld [vmem:[%s10009_s10 + $0x48] sm:$0xff]  }
 0x7d0   : > { %5834 = vmatprep.subr.bf16.mxu1 %v7152_v55  ;;  %v7564_v55 = vld [vmem:[%s10009_s10 + $0x40] sm:$0xff]  }
 0x7d1   : > { %5793 = vmatprep.subr.bf16.mxu0 %v7150_v44  ;;  %5835 = vmatpush1.bf16.msra.mxu1 %v7151_v35  ;;  %v5622_v41 = vpop.permute.xlu1 %5621  ;;  %v5607_v36 = vsel %vm503_vm0, %v5603_v4, %v5604_v30  ;;  %v5605_v11 = vsel %vm503_vm0, %v5602_v20, %v5603_v4  ;;  %v7563_v35 = vld [vmem:[%s10009_s10 + $0x48] sm:$0xff]   ;;  %v7567_v44 = vld [vmem:[%s10009_s10 + $0x50] sm:$0xff]  }
 0x7d2   : > { %v5620_v24 = vpop.permute.xlu0 %5619  ;;  %5794 = vmatpush1.bf16.msra.mxu0 %v7149_v7  ;;  %v5626_v0 = vrot.slane %v5622_v41, 4  ;;  %v5608_v25 = vsel %vm643_vm2, %v5599_v58, %v5607_v36  ;;  %v5606_v53 = vsel %vm643_vm2, %v5597_v51, %v5605_v11  ;;  %v7562_v51 = vld [vmem:[%s10009_s10] sm:$0xff]   ;;  %v7565_v4 = vld [vmem:[%s10009_s10 + $0x8] sm:$0xff]   ;;  %v9836_v7 = vld [vmem:[#allocation7 + $0x10] sm:$0xf]  ;;  %vm6628_vm2 = vcmask 9216  }
 0x7d3   : > { %v5625_v60 = vrot.slane %v5620_v24, 4  ;;  %v7566_v58 = vld [vmem:[%s10009_s10] sm:$0xff]   ;;  %v7570_v30 = vld [vmem:[%s10009_s10 + $0x8] sm:$0xff]   ;;  %v7571_v36 = vld [vmem:[%s10009_s10 + $0x58] sm:$0xff]  }
 0x7d4   : > { %v5630_v59 = vsel %vm503_vm0, %v5626_v0, %v5627_v32  ;;  %v7569_v32 = vld [vmem:[%s10009_s10 + $0x10] sm:$0xff]  }
 0x7d5   : > { %v5628_v33 = vsel %vm503_vm0, %v5625_v60, %v5626_v0  ;;  %v5631_v42 = vsel %vm712_vm4, %v5622_v41, %v5630_v59  ;;  %v5643_v17 = vpop.permute.xlu1 %5642  ;;  %v7572_v41 = vld [vmem:[%s10009_s10 + $0x50] sm:$0xff]   ;;  %v7573_v0 = vld [vmem:[%s10009_s10 + $0x18] sm:$0xff]   ;;  %v7575_v60 = vld [vmem:[%s10009_s10 + $0x60] sm:$0xff]  }
 0x7d6   : > { %v7155_v38 = vcombine.low %v5608_v25, %v5631_v42  ;;  %v7156_v26 = vcombine.high %v5608_v25, %v5631_v42  ;;  %v5645_v10 = vpop.permute.xlu0 %5644  ;;  %v5648_v9 = vrot.slane %v5643_v17, 4  ;;  %v5629_v37 = vsel %vm712_vm4, %v5620_v24, %v5628_v33  ;;  %v7574_v11 = vld [vmem:[%s10009_s10 + $0x10] sm:$0xff]   ;;  %v7576_v24 = vld [vmem:[%s10009_s10 + $0x58] sm:$0xff]   ;;  %v7577_v25 = vld [vmem:[%s10009_s10 + $0x20] sm:$0xff]  }
 0x7d7   : > { %v5649_v14 = vrot.slane %v5645_v10, 4  ;;  %v7153_v8 = vcombine.low %v5606_v53, %v5629_v37  ;;  %v7154_v46 = vcombine.high %v5606_v53, %v5629_v37  ;;  %v7578_v59 = vld [vmem:[%s10009_s10 + $0x18] sm:$0xff]   ;;  %v7579_v53 = vld [vmem:[%s10009_s10 + $0x68] sm:$0xff]   ;;  %v7580_v33 = vld [vmem:[%s10009_s10 + $0x60] sm:$0xff]  }
 0x7d8   : > { %5836 = vmatprep.subr.bf16.mxu1 %v7156_v26  ;;  %v7581_v42 = vld [vmem:[%s10009_s10 + $0x28] sm:$0xff]  }
 0x7d9   : > { %v5651_v56 = vsel %vm503_vm0, %v5648_v9, %v5649_v14  ;;  %5795 = vmatprep.subr.bf16.mxu0 %v7154_v46  ;;  %5837 = vmatpush1.bf16.msra.mxu1 %v7155_v38  ;;  %v5647_v47 = vpop.permute.xlu1 %5646  ;;  %v7583_v38 = vld [vmem:[%s10009_s10 + $0x70] sm:$0xff]   ;;  %v7584_v26 = vld [vmem:[%s10009_s10 + $0x68] sm:$0xff]  }
 0x7da   : > { %v5652_v21 = vsel %vm781_vm5, %v5643_v17, %v5651_v56  ;;  %5796 = vmatpush1.bf16.msra.mxu0 %v7153_v8  ;;  %v5650_v22 = vrot.slane %v5647_v47, 4  ;;  %v7582_v17 = vld [vmem:[%s10009_s10 + $0x20] sm:$0xff]   ;;  %v7585_v9 = vld [vmem:[%s10009_s10 + $0x30] sm:$0xff]   ;;  %v7586_v37 = vld [vmem:[%s10009_s10 + $0x28] sm:$0xff]  }
 0x7db   : > { %v7157_v52 = vcombine.low %v5652_v21, %v5652_v21  ;;  %v7158_v43 = vcombine.high %v5652_v21, %v5652_v21  ;;  %v7588_v8 = vld [vmem:[%s10009_s10 + $0x70] sm:$0xff]   ;;  %v7589_v56 = vld [vmem:[%s10009_s10 + $0x38] sm:$0xff]  }
 0x7dc   : > { %v5653_v50 = vsel %vm503_vm0, %v5649_v14, %v5650_v22  ;;  %v7587_v14 = vld [vmem:[%s10009_s10 + $0x78] sm:$0xff]   ;;  %v7590_v47 = vld [vmem:[%s10009_s10 + $0x30] sm:$0xff]  }
 0x7dd   : > { %v5654_v54 = vsel %vm781_vm5, %v5645_v10, %v5653_v50  ;;  %7161 = vmatprep.subr.msk.bf16.mxu0 %vm503_vm0, %v7158_v43  ;;  %v5778_v28 = vsel %vm503_vm0, %v7157_v52, 0 }
 0x7de   : > { %5798 = vmatpush1.bf16.msra.mxu0 %v5778_v28  ;;  %v7160_v40 = vcombine.high %v5654_v54, %v5654_v54  ;;  %v7159_v57 = vcombine.low %v5654_v54, %v5654_v54  ;;  %v7591_v54 = vld [vmem:[%s10009_s10 + $0x78] sm:$0xff]  }
 0x7df   : > { %7258 = vmatprep.subr.bf16.mxu0 %v7561_v62 }
 0x7e0   : > { %7163 = vmatprep.subr.msk.bf16.mxu1 %vm503_vm0, %v7160_v40  ;;  %v5784_v48 = vsel %vm503_vm0, %v7159_v57, 0  ;;  %v7592_v40 = vld [vmem:[%s10009_s10 + $0x38] sm:$0xff]  }
 0x7e1   : > { %7162 = vmatmul.mubr.msk.bf16.vlgmr.msra.gmra.mrb[32].mxu0 %vm850_vm6, %v5659_v1  ;;  %5839 = vmatpush1.bf16.msra.mxu1 %v5784_v48 }
 0x7e2   : > { %7259 = vmatpush3.bf16.msra.mxu0 %v7562_v51  ;;  %7280 = vmatprep.subr.bf16.mxu1 %v7564_v55 }
 0x7e3   : > { %7260 = vmatprep.subr.bf16.mxu0 %v7563_v35 }
 0x7e4   : > { %7164 = vmatmul.mubr.msk.bf16.vlgmr.msra.gmra.mrb[40].mxu1 %vm850_vm6, %v5659_v1 }
 0x7e5   : > { %7281 = vmatpush3.bf16.msra.mxu1 %v7566_v58 }
 0x7e6   : > { %7282 = vmatprep.subr.bf16.mxu1 %v7568_v45  ;;  %7261 = vmatpush3.bf16.msra.mxu0 %v7565_v4 }
 0x7e7   : > { %v5682_v61 = vpop.permute.xlu0 %5681  ;;  %7262 = vmatprep.subr.bf16.mxu0 %v7567_v44 }
 0x7e9   : > { %7283 = vmatpush3.bf16.msra.mxu1 %v7570_v30 }
 0x7ea   : > { %7284 = vmatprep.subr.bf16.mxu1 %v7572_v41  ;;  %7263 = vmatpush3.bf16.msra.mxu0 %v7569_v32 }
 0x7eb   : > { %7264 = vmatprep.subr.bf16.mxu0 %v7571_v36 }
 0x7ed   : > { %7285 = vmatpush3.bf16.msra.mxu1 %v7574_v11 }
 0x7ee   : > { %7286 = vmatprep.subr.bf16.mxu1 %v7576_v24  ;;  %7265 = vmatpush3.bf16.msra.mxu0 %v7573_v0  ;;  %v7645_v0 = vmov 0.0  }
 0x7ef   : > { %7266 = vmatprep.subr.bf16.mxu0 %v7575_v60 }
 0x7f1   : > { %7287 = vmatpush3.bf16.msra.mxu1 %v7578_v59 }
 0x7f2   : > { %7267 = vmatpush3.bf16.msra.mxu0 %v7577_v25  ;;  %7288 = vmatprep.subr.bf16.mxu1 %v7580_v33 }
 0x7f3   : > { %7268 = vmatprep.subr.bf16.mxu0 %v7579_v53 }
 0x7f5   : > { %7289 = vmatpush3.bf16.msra.mxu1 %v7582_v17 }
 0x7f6   : > { %7269 = vmatpush3.bf16.msra.mxu0 %v7581_v42  ;;  %7290 = vmatprep.subr.bf16.mxu1 %v7584_v26 }
 0x7f7   : > { %7270 = vmatprep.subr.bf16.mxu0 %v7583_v38 }
 0x7f9   : > { %7291 = vmatpush3.bf16.msra.mxu1 %v7586_v37 }
 0x7fa   : > { %7271 = vmatpush3.bf16.msra.mxu0 %v7585_v9  ;;  %7292 = vmatprep.subr.bf16.mxu1 %v7588_v8 }
 0x7fb   : > { %7272 = vmatprep.subr.bf16.mxu0 %v7587_v14 }
 0x7fd   : > { %7293 = vmatpush3.bf16.msra.mxu1 %v7590_v47 }
 0x7fe   : > { %7273 = vmatpush3.bf16.msra.mxu0 %v7589_v56  ;;  %7294 = vmatprep.subr.bf16.mxu1 %v7591_v54 }
 0x7ff   : > { %7311 = vmatprep.subr.bf16.mxu0 %v7645_v0 }
 0x801   : > { %7295 = vmatpush3.bf16.msra.mxu1 %v7592_v40 }
 0x8b4   : > { %v5823_v31 = vpop.f32.mrb[32].mxu0 }
 0x8b5   : > { %v5824_v5 = vadd.f32 %v5823_v31, %v5682_v61  ;;  %v5825_v15 = vpop.f32.mrb[33].mxu0 }
 0x8b6   : > { %v5826_v12 = vadd.f32 %v5825_v15, %v5682_v61  ;;  %v5827_v2 = vpop.f32.mrb[34].mxu0 }
 0x8b7   : > { %v5871_v23 = vmax.f32 %v5824_v5, 0.0  ;;  %v5828_v19 = vpop.f32.mrb[35].mxu0  ;;  %v5864_v6 = vpop.f32.mrb[40].mxu1 }
 0x8b8   : > { %v5872_v27 = vmax.f32 %v5826_v12, 0.0  ;;  %v5865_v39 = vadd.f32 %v5864_v6, %v5682_v61  ;;  %v5866_v34 = vpop.f32.mrb[41].mxu1 }
 0x8b9   : > { %v5867_v29 = vadd.f32 %v5866_v34, %v5682_v61  ;;  %v5868_v18 = vpop.f32.mrb[42].mxu1 }
 0x8ba   : > { %v9802_v49 = vpack.c.bf16 %v5872_v27, %v5871_v23  ;;  %v5873_v3 = vmax.f32 %v5865_v39, 0.0  ;;  %v5869_v63 = vpop.f32.mrb[43].mxu1 }
 0x8bb   : > { %v5874_v16 = vmax.f32 %v5867_v29, 0.0 }
 0x8bc   : > { %5897 = vrot.lane.b32.xlu1 %v9802_v49, %s7634_s16 }
 0x8bd   : > { %v9806_v13 = vpack.c.bf16 %v5874_v16, %v5873_v3 }
 0x8bf   : > { %5892 = vst [vmem:[#allocation7 + $0x8] sm:$0xff] %v9806_v13 }
 0x8c0   : > { %6103 = vrot.lane.b32.xlu1 %v9806_v13, %s7634_s16 }
 0x8c6   : > { %v9826_v20 = vld [vmem:[#allocation7 + $0x8] sm:$0xf] }
 0x8c7   : > { %5899 = vrot.lane.b32.xlu0 %v9826_v20, %s7634_s16 }
 0x8cb   : > { %6105 = vrot.lane.b32.xlu0 %v9836_v7, %s7634_s16 }
 0x92e   : > { %v5898_v10 = vpop.permute.xlu1 %5897 }
 0x92f   : > { %v5901_v21 = vrot.slane %v5898_v10, 4 }
 0x932   : > { %v6104_v43 = vpop.permute.xlu1 %6103 }
 0x933   : > { %v6107_v57 = vrot.slane %v6104_v43, 4 }
 0x939   : > { %v5900_v46 = vpop.permute.xlu0 %5899 }
 0x93a   : > { %v5902_v22 = vrot.slane %v5900_v46, 4  ;;  %v5908_v52 = vmax.bf16 %v5900_v46, %v9826_v20 }
 0x93c   : > { %v5903_v50 = vsel %vm503_vm0, %v5901_v21, %v5902_v22  ;;  %5913 = vrot.lane.b32.xlu0 %v5908_v52, %s7642_s29 }
 0x93d   : > { %v6106_v28 = vpop.permute.xlu0 %6105  ;;  %v5904_v1 = vsel %vm505_vm1, %v5898_v10, %v5903_v50 }
 0x93e   : > { %v6108_v48 = vrot.slane %v6106_v28, 4  ;;  %v6115_v61 = vmax.bf16 %v6106_v28, %v9836_v7  ;;  %v5906_v31 = vmax.bf16 %v9802_v49, %v5904_v1 }
 0x940   : > { %v6109_v5 = vsel %vm503_vm0, %v6107_v57, %v6108_v48  ;;  %6120 = vrot.lane.b32.xlu0 %v6115_v61, %s7642_s29  ;;  %5911 = vrot.lane.b32.xlu1 %v5906_v31, %s7642_s29 }
 0x941   : > { %v6110_v15 = vsel %vm505_vm1, %v6104_v43, %v6109_v5  ;;  %v6567_v5 = vld [vmem:[%s10011_s12] sm:$0xff]  ;;  %vm6626_vm1 = vcmask 15360  }
 0x942   : > { %v6114_v12 = vmax.bf16 %v9806_v13, %v6110_v15 }
 0x944   : > { %6118 = vrot.lane.b32.xlu1 %v6114_v12, %s7642_s29 }
 0x9ae   : > { %v5914_v2 = vpop.permute.xlu0 %5913 }
 0x9af   : > { %v5916_v19 = vrot.slane %v5914_v2, 4 }
 0x9b2   : > { %v5912_v23 = vpop.permute.xlu1 %5911  ;;  %v6121_v27 = vpop.permute.xlu0 %6120 }
 0x9b3   : > { %v5915_v6 = vrot.slane %v5912_v23, 4  ;;  %v6123_v18 = vrot.slane %v6121_v27, 4 }
 0x9b5   : > { %v5917_v39 = vsel %vm503_vm0, %v5915_v6, %v5916_v19 }
 0x9b6   : > { %v5918_v34 = vsel %vm5112_vm9, %v5912_v23, %v5917_v39  ;;  %v6119_v29 = vpop.permute.xlu1 %6118 }
 0x9b7   : > { %v5920_v49 = vmax.bf16 %v5918_v34, %v5906_v31  ;;  %v6122_v3 = vrot.slane %v6119_v29, 4 }
 0x9b9   : > { %v7167_v63 = vcombine.low %v5920_v49, %v5920_v49  ;;  %v6124_v16 = vsel %vm503_vm0, %v6122_v3, %v6123_v18  ;;  %v7168_v62 = vcombine.high %v5920_v49, %v5920_v49  ;;  %vm6315_vm0 = vcmask 11272  }
 0x9ba   : > { %v6125_v13 = vsel %vm5112_vm9, %v6119_v29, %v6124_v16 }
 0x9bb   : > { %v6127_v51 = vmax.bf16 %v6125_v13, %v6114_v12  ;;  %6088 = vmatprep.mubr.bf16.mxu0 %v7168_v62  ;;  %v6568_v12 = vld [vmem:[%s10011_s12 + $0x8] sm:$0x3] }
 0x9bc   : > { %6089 = vmatmul.mubr.bf16.vlgmr.msra.gmra.mrb[36].mxu0 %v7167_v63 }
 0x9bd   : > { %v7185_v35 = vcombine.low %v6127_v51, %v6127_v51  ;;  %v7186_v55 = vcombine.high %v6127_v51, %v6127_v51  ;;  %7327 = vmatprep.mubr.msk.bf16.mxu0 %vm7660_vm13, %v7645_v0 }
 0x9bf   : > { %6295 = vmatprep.mubr.bf16.mxu1 %v7186_v55 }
 0x9c0   : > { %6296 = vmatmul.mubr.bf16.vlgmr.msra.gmra.mrb[44].mxu1 %v7185_v35 }
 0xa8f   : > { %v7274_v58 = vpop.f32.mrb[36].mxu0 }
 0xa90   : > { %v7275_v20 = vpop.f32.mrb[37].mxu0 }
 0xa91   : > { %v7276_v45 = vadd.f32 %v7275_v20, %v7274_v58  ;;  %v7277_v4 = vpop.f32.mrb[38].mxu0 }
 0xa92   : > { %v7278_v7 = vpop.f32.mrb[39].mxu0 }
 0xa93   : > { %v6096_v44 = vpack.c.bf16 %v7276_v45, %v7276_v45  ;;  %v7296_v30 = vpop.f32.mrb[44].mxu1 }
 0xa94   : > { %v7297_v41 = vpop.f32.mrb[45].mxu1 }
 0xa95   : > { %6097 = vst [vmem:[#allocation8] sm:$0xf] %v6096_v44  ;;  %v7298_v32 = vadd.f32 %v7297_v41, %v7296_v30  ;;  %v7299_v36 = vpop.f32.mrb[46].mxu1 }
 0xa96   : > { %v7300_v11 = vpop.f32.mrb[47].mxu1 }
 0xa97   : > { %v6303_v24 = vpack.c.bf16 %v7298_v32, %v7298_v32 }
 0xa99   : > { %6304 = vst [vmem:[#allocation8 + $0x4] sm:$0xf] %v6303_v24 }
 0xa9c   : > { %v7593_v60 = vld [vmem:[#allocation8] ss:$0 sps:$4 sm:$0xff]  }
 0xa9d   : > { %6321 = vrot.lane.b32.xlu1 %v7593_v60, %s7634_s16  ;;  %v7594_v59 = vld [vmem:[#allocation8] ss:$0 sps:$4 sm:$0xff]  }
 0xa9e   : > { %v7597_v53 = vld [vmem:[#allocation8] ss:$0 sps:$4 sm:$0xff]  }
 0xa9f   : > { %v7598_v42 = vld [vmem:[#allocation8] ss:$0 sps:$4 sm:$0xff]  }
 0xaa0   : > { %v7595_v25 = vld [vmem:[#allocation8 + $0x4] ss:$0 sps:$4 sm:$0xff]   ;;  %v7601_v38 = vld [vmem:[#allocation8] ss:$0 sps:$4 sm:$0xff]  }
 0xaa1   : > { %6337 = vrot.lane.b32.xlu1 %v7594_v59, %s7633_s15  ;;  %6312 = vrot.lane.b32.xlu0 %v7595_v25, %s7646_s28  ;;  %v7596_v33 = vld [vmem:[#allocation8 + $0x4] ss:$0 sps:$4 sm:$0xff]   ;;  %v7602_v10 = vld [vmem:[#allocation8] ss:$0 sps:$4 sm:$0xff]  }
 0xaa2   : > { %v7599_v17 = vld [vmem:[#allocation8 + $0x4] ss:$0 sps:$4 sm:$0xff]   ;;  %v6305_v37 = vld [vmem:[#allocation8] sm:$0xf] }
 0xaa3   : > { %v7600_v26 = vld [vmem:[#allocation8 + $0x4] ss:$0 sps:$4 sm:$0xff]   ;;  %6307 = vst.msk [vmem:[#allocation9] sm:$0xf] %vm6306_vm12, %v6305_v37  ;;  %v7605_v8 = vld [vmem:[#allocation8] ss:$0 sps:$4 sm:$0xff]  }
 0xaa4   : > { %v7603_v9 = vld [vmem:[#allocation8 + $0x4] ss:$0 sps:$4 sm:$0xff]   ;;  %v7606_v46 = vld [vmem:[#allocation8] ss:$0 sps:$4 sm:$0xff]  }
 0xaa5   : > { %6345 = vrot.lane.b32.xlu1 %v7596_v33, %s7634_s16  ;;  %6353 = vrot.lane.b32.xlu0 %v7597_v53, %s7647_s30  ;;  %s7651_s16 = smov 119   ;;  %v7604_v14 = vld [vmem:[#allocation8 + $0x4] ss:$0 sps:$4 sm:$0xff]   ;;  %v7609_v21 = vld [vmem:[#allocation8] ss:$0 sps:$4 sm:$0xff]  }
 0xaa6   : > { %v7607_v56 = vld [vmem:[#allocation8 + $0x4] ss:$0 sps:$4 sm:$0xff]   ;;  %v7610_v22 = vld [vmem:[#allocation8] ss:$0 sps:$4 sm:$0xff]  }
 0xaa7   : > { %v7608_v47 = vld [vmem:[#allocation8 + $0x4] ss:$0 sps:$4 sm:$0xff]   ;;  %v7613_v50 = vld [vmem:[#allocation8] ss:$0 sps:$4 sm:$0xff]  }
 0xaa8   : > { %v7611_v52 = vld [vmem:[#allocation8 + $0x4] ss:$0 sps:$4 sm:$0xff]   ;;  %v7614_v54 = vld [vmem:[#allocation8] ss:$0 sps:$4 sm:$0xff]  }
 0xaa9   : > { %6369 = vrot.lane.b32.xlu1 %v7598_v42, %s7648_s14  ;;  %6361 = vrot.lane.b32.xlu0 %v7599_v17, %s7633_s15  ;;  %s7653_s15 = smov 115   ;;  %v7612_v43 = vld [vmem:[#allocation8 + $0x4] ss:$0 sps:$4 sm:$0xff]   ;;  %v7617_v40 = vld [vmem:[#allocation8] ss:$0 sps:$4 sm:$0xff]  }
 0xaaa   : > { %v7615_v28 = vld [vmem:[#allocation8 + $0x4] ss:$0 sps:$4 sm:$0xff]   ;;  %v7618_v57 = vld [vmem:[#allocation8] ss:$0 sps:$4 sm:$0xff]  }
 0xaab   : > { %v7616_v1 = vld [vmem:[#allocation8 + $0x4] ss:$0 sps:$4 sm:$0xff]   ;;  %v7621_v31 = vld [vmem:[#allocation8] ss:$0 sps:$4 sm:$0xff]  }
 0xaac   : > { %v7619_v48 = vld [vmem:[#allocation8 + $0x4] ss:$0 sps:$4 sm:$0xff]  }
 0xaad   : > { %6377 = vrot.lane.b32.xlu1 %v7600_v26, %s7649_s20  ;;  %6385 = vrot.lane.b32.xlu0 %v7601_v38, %s7650_s17  ;;  %v7620_v61 = vld [vmem:[#allocation8 + $0x4] ss:$0 sps:$4 sm:$0xff]  }
 0xaae   : > { %v7622_v15 = vld [vmem:[#allocation8 + $0x4] ss:$0 sps:$4 sm:$0xff]  }
 0xaaf   : > { %v7623_v2 = vld [vmem:[#allocation8 + $0x4] ss:$0 sps:$4 sm:$0xff]  }
 0xab1   : > { %6401 = vrot.lane.b32.xlu1 %v7602_v10, %s7651_s16  ;;  %6393 = vrot.lane.b32.xlu0 %v7603_v9, %s7648_s14  ;;  %v7624_v10 = vld [vmem:[%s10010_s11] sm:$0x1f]  }
 0xab5   : > { %6409 = vrot.lane.b32.xlu1 %v7604_v14, %s7650_s17  ;;  %6417 = vrot.lane.b32.xlu0 %v7605_v8, %s7652_s18 }
 0xab9   : > { %6433 = vrot.lane.b32.xlu1 %v7606_v46, %s7642_s29  ;;  %6425 = vrot.lane.b32.xlu0 %v7607_v56, %s7651_s16  ;;  %s7237_s16 = sshll.u32 %s10016_s26, 4 }
 0xabd   : > { %6441 = vrot.lane.b32.xlu1 %v7608_v47, %s7653_s15  ;;  %6449 = vrot.lane.b32.xlu0 %v7609_v21, %s7643_s22 }
 0xac1   : > { %6465 = vrot.lane.b32.xlu1 %v7610_v22, %s7644_s23  ;;  %6457 = vrot.lane.b32.xlu0 %v7611_v52, %s7642_s29  ;;  %s7658_s29 = smov 105  }
 0xac5   : > { %6473 = vrot.lane.b32.xlu1 %v7612_v43, %s7643_s22  ;;  %6481 = vrot.lane.b32.xlu0 %v7613_v50, %s7654_s19  ;;  %s7659_s22 = smov 104   ;;  %s442_s19 = scalar_lea.vmem %s10012_s13, %s7237_s16 }
 0xac9   : > { %6497 = vrot.lane.b32.xlu1 %v7614_v54, %s7655_s21  ;;  %6489 = vrot.lane.b32.xlu0 %v7615_v28, %s7644_s23 }
 0xacd   : > { %6505 = vrot.lane.b32.xlu1 %v7616_v1, %s7656_s24  ;;  %6513 = vrot.lane.b32.xlu0 %v7617_v40, %s7657_s27 }
 0xad1   : > { %6529 = vrot.lane.b32.xlu1 %v7618_v57, %s7658_s29  ;;  %6521 = vrot.lane.b32.xlu0 %v7619_v48, %s7655_s21 }
 0xad5   : > { %6537 = vrot.lane.b32.xlu1 %v7620_v61, %s7657_s27  ;;  %6545 = vrot.lane.b32.xlu0 %v7621_v31, %s7659_s22 }
 0xad9   : > { %6571 = vperm.xlu1 %7392, %v6567_v5   ;;  %6553 = vrot.lane.b32.xlu0 %v7622_v15, %s7658_s29 }
 0xadd   : > { %6576 = vperm.xlu0 %7391, %v6568_v12  }
 0xb0f   : > { %v6322_v23 = vpop.permute.xlu1 %6321 }
 0xb10   : > { %6325 = vst.msk [vmem:[#allocation9] sm:$0xf0] %vm6324_vm14, %v6322_v23 }
 0xb11   : > { %6332 = vst.msk [vmem:[#allocation9] sm:$0xf0] %vm6331_vm15, %v7623_v2 }
 0xb13   : > { %v6313_v19 = vpop.permute.xlu0 %6312  ;;  %v6338_v6 = vpop.permute.xlu1 %6337 }
 0xb14   : > { %6316 = vst.msk [vmem:[#allocation9] sm:$0xf] %vm6315_vm0, %v6313_v19 }
 0xb15   : > { %6340 = vst.msk [vmem:[#allocation9 + $0x8] sm:$0xf] %vm6306_vm12, %v6338_v6 }
 0xb17   : > { %v6354_v27 = vpop.permute.xlu0 %6353  ;;  %v6346_v39 = vpop.permute.xlu1 %6345 }
 0xb18   : > { %6356 = vst.msk [vmem:[#allocation9 + $0x8] sm:$0xf0] %vm6324_vm14, %v6354_v27 }
 0xb19   : > { %6348 = vst.msk [vmem:[#allocation9 + $0x8] sm:$0xf] %vm6315_vm0, %v6346_v39 }
 0xb1b   : > { %v6362_v34 = vpop.permute.xlu0 %6361  ;;  %v6370_v29 = vpop.permute.xlu1 %6369  ;;  %v6559_v18 = vld [vmem:[#allocation9] sm:$0xff] }
 0xb1c   : > { %6364 = vst.msk [vmem:[#allocation9 + $0x8] sm:$0xf0] %vm6331_vm15, %v6362_v34  ;;  %7312 = vmatpush3.bf16.msra.mxu0 %v6559_v18 }
 0xb1d   : > { %6372 = vst.msk [vmem:[#allocation9 + $0x10] sm:$0xf] %vm6306_vm12, %v6370_v29  ;;  %7313 = vmatprep.subr.bf16.mxu0 %v7645_v0 }
 0xb1f   : > { %v6386_v49 = vpop.permute.xlu0 %6385  ;;  %v6378_v3 = vpop.permute.xlu1 %6377 }
 0xb20   : > { %6388 = vst.msk [vmem:[#allocation9 + $0x10] sm:$0xf0] %vm6324_vm14, %v6386_v49 }
 0xb21   : > { %6380 = vst.msk [vmem:[#allocation9 + $0x10] sm:$0xf] %vm6315_vm0, %v6378_v3 }
 0xb23   : > { %v6394_v63 = vpop.permute.xlu0 %6393  ;;  %v6402_v16 = vpop.permute.xlu1 %6401  ;;  %v6560_v62 = vld [vmem:[#allocation9 + $0x8] sm:$0xff] }
 0xb24   : > { %6396 = vst.msk [vmem:[#allocation9 + $0x10] sm:$0xf0] %vm6331_vm15, %v6394_v63  ;;  %7314 = vmatpush3.bf16.msra.mxu0 %v6560_v62 }
 0xb25   : > { %6404 = vst.msk [vmem:[#allocation9 + $0x18] sm:$0xf] %vm6306_vm12, %v6402_v16  ;;  %7315 = vmatprep.subr.bf16.mxu0 %v7645_v0 }
 0xb27   : > { %v6418_v13 = vpop.permute.xlu0 %6417  ;;  %v6410_v51 = vpop.permute.xlu1 %6409 }
 0xb28   : > { %6420 = vst.msk [vmem:[#allocation9 + $0x18] sm:$0xf0] %vm6324_vm14, %v6418_v13 }
 0xb29   : > { %6412 = vst.msk [vmem:[#allocation9 + $0x18] sm:$0xf] %vm6315_vm0, %v6410_v51 }
 0xb2b   : > { %v6426_v35 = vpop.permute.xlu0 %6425  ;;  %v6434_v55 = vpop.permute.xlu1 %6433  ;;  %v6561_v58 = vld [vmem:[#allocation9 + $0x10] sm:$0xff] }
 0xb2c   : > { %6428 = vst.msk [vmem:[#allocation9 + $0x18] sm:$0xf0] %vm6331_vm15, %v6426_v35  ;;  %7316 = vmatpush3.bf16.msra.mxu0 %v6561_v58 }
 0xb2d   : > { %6436 = vst.msk [vmem:[#allocation9 + $0x20] sm:$0xf] %vm6306_vm12, %v6434_v55  ;;  %7317 = vmatprep.subr.bf16.mxu0 %v7645_v0 }
 0xb2f   : > { %v6450_v20 = vpop.permute.xlu0 %6449  ;;  %v6442_v45 = vpop.permute.xlu1 %6441 }
 0xb30   : > { %6452 = vst.msk [vmem:[#allocation9 + $0x20] sm:$0xf0] %vm6324_vm14, %v6450_v20 }
 0xb31   : > { %6444 = vst.msk [vmem:[#allocation9 + $0x20] sm:$0xf] %vm6315_vm0, %v6442_v45 }
 0xb33   : > { %v6458_v4 = vpop.permute.xlu0 %6457  ;;  %v6466_v7 = vpop.permute.xlu1 %6465  ;;  %v6562_v44 = vld [vmem:[#allocation9 + $0x18] sm:$0xff] }
 0xb34   : > { %6460 = vst.msk [vmem:[#allocation9 + $0x20] sm:$0xf0] %vm6331_vm15, %v6458_v4  ;;  %7318 = vmatpush3.bf16.msra.mxu0 %v6562_v44 }
 0xb35   : > { %6468 = vst.msk [vmem:[#allocation9 + $0x28] sm:$0xf] %vm6306_vm12, %v6466_v7  ;;  %7319 = vmatprep.subr.bf16.mxu0 %v7645_v0 }
 0xb37   : > { %v6482_v30 = vpop.permute.xlu0 %6481  ;;  %v6474_v41 = vpop.permute.xlu1 %6473 }
 0xb38   : > { %6484 = vst.msk [vmem:[#allocation9 + $0x28] sm:$0xf0] %vm6324_vm14, %v6482_v30 }
 0xb39   : > { %6476 = vst.msk [vmem:[#allocation9 + $0x28] sm:$0xf] %vm6315_vm0, %v6474_v41 }
 0xb3b   : > { %v6490_v32 = vpop.permute.xlu0 %6489  ;;  %v6498_v36 = vpop.permute.xlu1 %6497  ;;  %v6563_v11 = vld [vmem:[#allocation9 + $0x20] sm:$0xff] }
 0xb3c   : > { %6492 = vst.msk [vmem:[#allocation9 + $0x28] sm:$0xf0] %vm6331_vm15, %v6490_v32  ;;  %7320 = vmatpush3.bf16.msra.mxu0 %v6563_v11 }
 0xb3d   : > { %6500 = vst.msk [vmem:[#allocation9 + $0x30] sm:$0xf] %vm6306_vm12, %v6498_v36  ;;  %7321 = vmatprep.subr.bf16.mxu0 %v7645_v0 }
 0xb3f   : > { %v6514_v24 = vpop.permute.xlu0 %6513  ;;  %v6506_v60 = vpop.permute.xlu1 %6505 }
 0xb40   : > { %6516 = vst.msk [vmem:[#allocation9 + $0x30] sm:$0xf0] %vm6324_vm14, %v6514_v24 }
 0xb41   : > { %6508 = vst.msk [vmem:[#allocation9 + $0x30] sm:$0xf] %vm6315_vm0, %v6506_v60 }
 0xb43   : > { %v6522_v59 = vpop.permute.xlu0 %6521  ;;  %v6530_v25 = vpop.permute.xlu1 %6529  ;;  %v6564_v53 = vld [vmem:[#allocation9 + $0x28] sm:$0xff] }
 0xb44   : > { %6524 = vst.msk [vmem:[#allocation9 + $0x30] sm:$0xf0] %vm6331_vm15, %v6522_v59  ;;  %7322 = vmatpush3.bf16.msra.mxu0 %v6564_v53 }
 0xb45   : > { %6532 = vst.msk [vmem:[#allocation9 + $0x38] sm:$0xf] %vm6306_vm12, %v6530_v25  ;;  %7323 = vmatprep.subr.bf16.mxu0 %v7645_v0 }
 0xb47   : > { %v6546_v33 = vpop.permute.xlu0 %6545  ;;  %v6538_v42 = vpop.permute.xlu1 %6537 }
 0xb48   : > { %6548 = vst.msk [vmem:[#allocation9 + $0x38] sm:$0xf0] %vm6324_vm14, %v6546_v33 }
 0xb49   : > { %6540 = vst.msk [vmem:[#allocation9 + $0x38] sm:$0xf] %vm6315_vm0, %v6538_v42 }
 0xb4b   : > { %v6554_v17 = vpop.permute.xlu0 %6553  ;;  %v6565_v38 = vld [vmem:[#allocation9 + $0x30] sm:$0xff] }
 0xb4c   : > { %6556 = vst.msk [vmem:[#allocation9 + $0x38] sm:$0xf0] %vm6331_vm15, %v6554_v17  ;;  %7324 = vmatpush3.bf16.msra.mxu0 %v6565_v38 }
 0xb4d   : > { %7325 = vmatprep.subr.bf16.mxu0 %v7645_v0 }
 0xb53   : > { %v6566_v26 = vld [vmem:[#allocation9 + $0x38] sm:$0xff] }
 0xb54   : > { %7326 = vmatpush3.bf16.msra.mxu0 %v6566_v26 }
 0xb57   : > { %7328 = vmatmul.mubr.bf16.vlgmr.msra.gmra.mrb[40].mxu0 %v7624_v10 }
 0xb58   : > { %v6572_v9 = vpop.permute.xlu1 %6571 }
 0xb5c   : > { %v6577_v0 = vpop.permute.xlu0 %6576 }
 0xc2a   : > { %v6619_v37 = vpop.f32.mrb[40].mxu0 }
 0xc2b   : > { %v6620_v14 = vadd.f32 %v6619_v37, %v6572_v9  ;;  %v7329_v8 = vpop.f32.mrb[41].mxu0 }
 0xc2c   : > { %v6622_v46 = vpop.f32.mrb[42].mxu0 }
 0xc2d   : > { %6627 = vst.msk [vmem:[%s442_s19] sm:$0xff] %vm6626_vm1, %v6620_v14  ;;  %v6623_v56 = vadd.f32 %v6622_v46, %v6577_v0  ;;  %v7330_v47 = vpop.f32.mrb[43].mxu0 }
 0xc2f   : > { %6629 = vst.msk [vmem:[%s442_s19 + $0x8] sm:$0x3] %vm6628_vm2, %v6623_v56 }
 0xc30 PF: > { %s23_s25 = sadd.s32 1, %s7631_s25  }
 0xc31   : > { %p20_p5 = scmp.ge.s32.totalorder %s23_s25, 4  }
 0xc33   :  { %22 = sbr.rel (!%p20_p5) target bundleno = 1 (0x1), region = 102 }

</bundles_post_ra>
